<compile_context>
chip_gen: v7x
topology: tpu7x:2x2x1
jax: 0.10.0
libtpu: 0.0.40
codegen_flags: <defaults>
</compile_context>

<pallas_src>
import jax
import jax.numpy as jnp
from jax.experimental import pallas as pl
from jax.experimental.pallas import tpu as pltpu  # noqa: F401  (TPU backend)

KSIZE = 4
STRIDES = (1, 2, 2, 2)
PADS = (0, 1, 1, 1)
BN_EPS = 1e-5


# ----------------------------- Pallas kernels ------------------------------

def _convt_bn_relu_kernel(x_ref, w_ref, b_ref, g_ref, beta_ref, o_ref):
    """Fused ConvTranspose matmul + bias + BatchNorm(batch stats) + ReLU.

    x_ref: (Kd, M) bf16   w_ref: (Co, Kd) bf16   b/g/beta: (Co, 1) f32
    o_ref: (Co, M) bf16, M = N*OH*OW on the lane axis (lane-dense).
    """
    y = jnp.dot(w_ref[...], x_ref[...], preferred_element_type=jnp.float32)
    y = y + b_ref[...]          # conv bias (exactly cancelled by BN; kept for clarity)
    m = y.shape[1]
    inv_m = 1.0 / m
    # One pass over y: var = E[y^2] - E[y]^2 (biased, matching PyTorch training mode).
    s1 = jnp.sum(y, axis=1, keepdims=True)
    s2 = jnp.sum(y * y, axis=1, keepdims=True)
    mean = s1 * inv_m
    var = s2 * inv_m - mean * mean
    scale = g_ref[...] * jax.lax.rsqrt(var + BN_EPS)
    shift = beta_ref[...] - mean * scale
    o_ref[...] = jnp.maximum(y * scale + shift, 0.0).astype(o_ref.dtype)


def _convt_tanh_kernel(x_ref, w_ref, b_ref, o_ref):
    """Fused ConvTranspose matmul + bias + Tanh (final layer)."""
    y = jnp.dot(w_ref[...], x_ref[...], preferred_element_type=jnp.float32)
    o_ref[...] = jnp.tanh(y + b_ref[...]).astype(o_ref.dtype)


def fused_convt_bn_relu(x_col, w_t, b, gamma, beta):
    co = w_t.shape[0]
    m = x_col.shape[1]
    return pl.pallas_call(
        _convt_bn_relu_kernel,
        out_shape=jax.ShapeDtypeStruct((co, m), jnp.bfloat16),
    )(x_col, w_t, b, gamma, beta)


def fused_convt_tanh(x_col, w_t, b):
    co = w_t.shape[0]
    m = x_col.shape[1]
    return pl.pallas_call(
        _convt_tanh_kernel,
        out_shape=jax.ShapeDtypeStruct((co, m), jnp.float32),
    )(x_col, w_t, b)


# ------------------------------- XLA glue ----------------------------------

def conv_transpose_cols(h, stride, padding, k=KSIZE):
    """ConvTranspose2d im2col in transposed / channel-first layout.

    h: (Ci, N, IH, IW)  ->  X: (Ci*k*k, N*OH*OW), row order (ci, kh, kw) where
    (kh, kw) index the spatially *flipped* kernel (matches prepare_params).
    """
    ci, n, ih, iw = h.shape
    oh = (ih - 1) * stride - 2 * padding + k
    ow = (iw - 1) * stride - 2 * padding + k
    if stride == 1:
        xd = h
    else:  # dilate with zeros
        dh, dw = (ih - 1) * stride + 1, (iw - 1) * stride + 1
        xd = jnp.zeros((ci, n, dh, dw), h.dtype).at[:, :, ::stride, ::stride].set(h)
    pad = k - 1 - padding
    xp = jnp.pad(xd, ((0, 0), (0, 0), (pad, pad), (pad, pad)))
    patches = [xp[:, :, r:r + oh, c:c + ow] for r in range(k) for c in range(k)]
    x_col = jnp.stack(patches, axis=1).reshape(ci * k * k, n * oh * ow)
    return x_col, (n, oh, ow)


def init_params(key, input_dim, img_channels, features_g):
    channel_defs = [
        (input_dim, features_g * 8),
        (features_g * 8, features_g * 4),
        (features_g * 4, features_g * 2),
        (features_g * 2, img_channels),
    ]
    params = []
    for i, (ci, co) in enumerate(channel_defs):
        key, k_w, k_b = jax.random.split(key, 3)
        layer = {
            "w": jax.random.normal(k_w, (ci, co, KSIZE, KSIZE), jnp.float32) * 0.05,
            "b": jax.random.normal(k_b, (co,), jnp.float32) * 0.01,
        }
        if i < 3:  # blocks 1-3 carry a BatchNorm (default affine init: 1, 0)
            layer["gamma"] = jnp.ones((co,), jnp.float32)
            layer["beta"] = jnp.zeros((co,), jnp.float32)
        params.append(layer)
    return params


def prepare_params(params):
    """One-time conversion from PyTorch layout to kernel layout (off the hot path)."""
    prepped = []
    for p in params:
        ci, co, k, _ = p["w"].shape
        co_pad = -(-co // 8) * 8                 # pad channels to a sublane multiple
        wf = p["w"][:, :, ::-1, ::-1]            # spatially flipped kernel
        w_t = wf.transpose(1, 0, 2, 3).reshape(co, ci * k * k)
        w_t = jnp.pad(w_t, ((0, co_pad - co), (0, 0))).astype(jnp.bfloat16)
        q = {
            "w_t": w_t,
            "b": jnp.pad(p["b"].reshape(co, 1), ((0, co_pad - co), (0, 0))),
        }
        if "gamma" in p:
            q["gamma"] = jnp.pad(p["gamma"].reshape(co, 1), ((0, co_pad - co), (0, 0)))
            q["beta"] = jnp.pad(p["beta"].reshape(co, 1), ((0, co_pad - co), (0, 0)))
        prepped.append(q)
    return prepped


def generator_forward(prepped, x, img_channels=3):
    """x: (N, input_dim, 1, 1) NCHW -> (N, img_channels, 32, 32), PyTorch semantics."""
    # Channel-first internal layout; bf16 activations feed the bf16 MXU matmuls.
    h = jnp.transpose(x, (1, 0, 2, 3)).astype(jnp.bfloat16)     # (Ci, N, 1, 1)
    for i in range(3):
        q = prepped[i]
        x_col, (n, oh, ow) = conv_transpose_cols(h, STRIDES[i], PADS[i])
        y = fused_convt_bn_relu(x_col, q["w_t"], q["b"], q["gamma"], q["beta"])
        h = y.reshape(q["w_t"].shape[0], n, oh, ow)             # (Co, N, OH, OW) bf16
    q = prepped[3]
    x_col, (n, oh, ow) = conv_transpose_cols(h, STRIDES[3], PADS[3])
    y = fused_convt_tanh(x_col, q["w_t"], q["b"])               # (Co_pad, M) f32
    y = y[:img_channels]                                        # drop sublane padding
    return y.reshape(img_channels, n, oh, ow).transpose(1, 0, 2, 3)  # NCHW at boundary


# --------------------------------- main -------------------------------------

if __name__ == "__main__":
    input_dim, img_channels, features_g = 32, 3, 8
    batch = 2

    key = jax.random.PRNGKey(0)
    key, k_params, k_x = jax.random.split(key, 3)
    params = init_params(k_params, input_dim, img_channels, features_g)
    prepped = prepare_params(params)
    x = jax.random.normal(k_x, (batch, input_dim, 1, 1), jnp.float32)

    fwd = jax.jit(generator_forward)
    out = jax.block_until_ready(fwd(prepped, x))

    assert out.shape == (batch, img_channels, 32, 32), out.shape
    assert out.dtype == jnp.float32
    assert bool(jnp.all(jnp.isfinite(out)))
    assert bool(jnp.all(jnp.abs(out) <= 1.0))  # tanh range

    print("KERNEL_OK")
</pallas_src>

<mosaic_0001>
module attributes {stable_mosaic.version = 11 : i64} {
  func.func @_convt_bn_relu_kernel(%arg0: memref<512x32xbf16, #tpu.memory_space<vmem>>, %arg1: memref<64x512xbf16, #tpu.memory_space<vmem>>, %arg2: memref<64x1xf32, #tpu.memory_space<vmem>>, %arg3: memref<64x1xf32, #tpu.memory_space<vmem>>, %arg4: memref<64x1xf32, #tpu.memory_space<vmem>>, %arg5: memref<64x32xbf16, #tpu.memory_space<vmem>>) attributes {dimension_semantics = [], scalar_prefetch = 0 : i64, scratch_operands = 0 : i64, tpu.core_type = #tpu.core_type<tc>} {
    %c0 = arith.constant 0 : index
    %c0_0 = arith.constant 0 : index
    %0 = vector.load %arg1[%c0, %c0_0] : memref<64x512xbf16, #tpu.memory_space<vmem>>, vector<64x512xbf16>
    %c0_1 = arith.constant 0 : index
    %c0_2 = arith.constant 0 : index
    %1 = vector.load %arg0[%c0_1, %c0_2] : memref<512x32xbf16, #tpu.memory_space<vmem>>, vector<512x32xbf16>
    %cst = arith.constant dense<0.000000e+00> : vector<64x32xf32>
    %2 = tpu.matmul %0, %1, %cst {dimension_numbers = #tpu.dot_dimension_numbers<[1], [0], [0], [1], [0, 0, 1, 1], [], []>} : vector<64x512xbf16>, vector<512x32xbf16>, vector<64x32xf32> -> vector<64x32xf32>
    %c0_3 = arith.constant 0 : index
    %c0_4 = arith.constant 0 : index
    %3 = vector.load %arg2[%c0_3, %c0_4] : memref<64x1xf32, #tpu.memory_space<vmem>>, vector<64x1xf32>
    %4 = vector.broadcast %3 : vector<64x1xf32> to vector<64x32xf32>
    %5 = arith.addf %2, %4 : vector<64x32xf32>
    %cst_5 = arith.constant dense<0.000000e+00> : vector<64xf32>
    %6 = vector.multi_reduction <add>, %5, %cst_5 [1] : vector<64x32xf32> to vector<64xf32>
    %7 = vector.shape_cast %6 : vector<64xf32> to vector<64x1xf32>
    %8 = arith.mulf %5, %5 : vector<64x32xf32>
    %cst_6 = arith.constant dense<0.000000e+00> : vector<64xf32>
    %9 = vector.multi_reduction <add>, %8, %cst_6 [1] : vector<64x32xf32> to vector<64xf32>
    %10 = vector.shape_cast %9 : vector<64xf32> to vector<64x1xf32>
    %cst_7 = arith.constant 3.125000e-02 : f32
    %11 = vector.broadcast %cst_7 : f32 to vector<64x1xf32>
    %12 = arith.mulf %7, %11 : vector<64x1xf32>
    %cst_8 = arith.constant 3.125000e-02 : f32
    %13 = vector.broadcast %cst_8 : f32 to vector<64x1xf32>
    %14 = arith.mulf %10, %13 : vector<64x1xf32>
    %15 = arith.mulf %12, %12 : vector<64x1xf32>
    %16 = arith.subf %14, %15 : vector<64x1xf32>
    %c0_9 = arith.constant 0 : index
    %c0_10 = arith.constant 0 : index
    %17 = vector.load %arg3[%c0_9, %c0_10] : memref<64x1xf32, #tpu.memory_space<vmem>>, vector<64x1xf32>
    %cst_11 = arith.constant 9.99999974E-6 : f32
    %18 = vector.broadcast %cst_11 : f32 to vector<64x1xf32>
    %19 = arith.addf %16, %18 : vector<64x1xf32>
    %20 = math.rsqrt %19 : vector<64x1xf32>
    %21 = arith.mulf %17, %20 : vector<64x1xf32>
    %c0_12 = arith.constant 0 : index
    %c0_13 = arith.constant 0 : index
    %22 = vector.load %arg4[%c0_12, %c0_13] : memref<64x1xf32, #tpu.memory_space<vmem>>, vector<64x1xf32>
    %23 = arith.mulf %12, %21 : vector<64x1xf32>
    %24 = arith.subf %22, %23 : vector<64x1xf32>
    %25 = vector.broadcast %21 : vector<64x1xf32> to vector<64x32xf32>
    %26 = arith.mulf %5, %25 : vector<64x32xf32>
    %27 = vector.broadcast %24 : vector<64x1xf32> to vector<64x32xf32>
    %28 = arith.addf %26, %27 : vector<64x32xf32>
    %cst_14 = arith.constant 0.000000e+00 : f32
    %29 = vector.broadcast %cst_14 : f32 to vector<64x32xf32>
    %30 = arith.maximumf %28, %29 : vector<64x32xf32>
    %31 = arith.truncf %30 : vector<64x32xf32> to vector<64x32xbf16>
    %c0_15 = arith.constant 0 : index
    %c0_16 = arith.constant 0 : index
    %32 = vector.load %arg5[%c0_15, %c0_16] : memref<64x32xbf16, #tpu.memory_space<vmem>>, vector<64x32xbf16>
    tpu.vector_store %arg5[%c0_15, %c0_16], %31 {strides = array<i32>} : memref<64x32xbf16, #tpu.memory_space<vmem>>, vector<64x32xbf16>,
    return
  }
}

module attributes {stable_mosaic.version = 11 : i64} {
  func.func @_convt_bn_relu_kernel(%arg0: memref<1024x128xbf16, #tpu.memory_space<vmem>>, %arg1: memref<32x1024xbf16, #tpu.memory_space<vmem>>, %arg2: memref<32x1xf32, #tpu.memory_space<vmem>>, %arg3: memref<32x1xf32, #tpu.memory_space<vmem>>, %arg4: memref<32x1xf32, #tpu.memory_space<vmem>>, %arg5: memref<32x128xbf16, #tpu.memory_space<vmem>>) attributes {dimension_semantics = [], scalar_prefetch = 0 : i64, scratch_operands = 0 : i64, tpu.core_type = #tpu.core_type<tc>} {
    %c0 = arith.constant 0 : index
    %c0_0 = arith.constant 0 : index
    %0 = vector.load %arg1[%c0, %c0_0] : memref<32x1024xbf16, #tpu.memory_space<vmem>>, vector<32x1024xbf16>
    %c0_1 = arith.constant 0 : index
    %c0_2 = arith.constant 0 : index
    %1 = vector.load %arg0[%c0_1, %c0_2] : memref<1024x128xbf16, #tpu.memory_space<vmem>>, vector<1024x128xbf16>
    %cst = arith.constant dense<0.000000e+00> : vector<32x128xf32>
    %2 = tpu.matmul %0, %1, %cst {dimension_numbers = #tpu.dot_dimension_numbers<[1], [0], [0], [1], [0, 0, 1, 1], [], []>} : vector<32x1024xbf16>, vector<1024x128xbf16>, vector<32x128xf32> -> vector<32x128xf32>
    %c0_3 = arith.constant 0 : index
    %c0_4 = arith.constant 0 : index
    %3 = vector.load %arg2[%c0_3, %c0_4] : memref<32x1xf32, #tpu.memory_space<vmem>>, vector<32x1xf32>
    %4 = vector.broadcast %3 : vector<32x1xf32> to vector<32x128xf32>
    %5 = arith.addf %2, %4 : vector<32x128xf32>
    %cst_5 = arith.constant dense<0.000000e+00> : vector<32xf32>
    %6 = vector.multi_reduction <add>, %5, %cst_5 [1] : vector<32x128xf32> to vector<32xf32>
    %7 = vector.shape_cast %6 : vector<32xf32> to vector<32x1xf32>
    %8 = arith.mulf %5, %5 : vector<32x128xf32>
    %cst_6 = arith.constant dense<0.000000e+00> : vector<32xf32>
    %9 = vector.multi_reduction <add>, %8, %cst_6 [1] : vector<32x128xf32> to vector<32xf32>
    %10 = vector.shape_cast %9 : vector<32xf32> to vector<32x1xf32>
    %cst_7 = arith.constant 7.812500e-03 : f32
    %11 = vector.broadcast %cst_7 : f32 to vector<32x1xf32>
    %12 = arith.mulf %7, %11 : vector<32x1xf32>
    %cst_8 = arith.constant 7.812500e-03 : f32
    %13 = vector.broadcast %cst_8 : f32 to vector<32x1xf32>
    %14 = arith.mulf %10, %13 : vector<32x1xf32>
    %15 = arith.mulf %12, %12 : vector<32x1xf32>
    %16 = arith.subf %14, %15 : vector<32x1xf32>
    %c0_9 = arith.constant 0 : index
    %c0_10 = arith.constant 0 : index
    %17 = vector.load %arg3[%c0_9, %c0_10] : memref<32x1xf32, #tpu.memory_space<vmem>>, vector<32x1xf32>
    %cst_11 = arith.constant 9.99999974E-6 : f32
    %18 = vector.broadcast %cst_11 : f32 to vector<32x1xf32>
    %19 = arith.addf %16, %18 : vector<32x1xf32>
    %20 = math.rsqrt %19 : vector<32x1xf32>
    %21 = arith.mulf %17, %20 : vector<32x1xf32>
    %c0_12 = arith.constant 0 : index
    %c0_13 = arith.constant 0 : index
    %22 = vector.load %arg4[%c0_12, %c0_13] : memref<32x1xf32, #tpu.memory_space<vmem>>, vector<32x1xf32>
    %23 = arith.mulf %12, %21 : vector<32x1xf32>
    %24 = arith.subf %22, %23 : vector<32x1xf32>
    %25 = vector.broadcast %21 : vector<32x1xf32> to vector<32x128xf32>
    %26 = arith.mulf %5, %25 : vector<32x128xf32>
    %27 = vector.broadcast %24 : vector<32x1xf32> to vector<32x128xf32>
    %28 = arith.addf %26, %27 : vector<32x128xf32>
    %cst_14 = arith.constant 0.000000e+00 : f32
    %29 = vector.broadcast %cst_14 : f32 to vector<32x128xf32>
    %30 = arith.maximumf %28, %29 : vector<32x128xf32>
    %31 = arith.truncf %30 : vector<32x128xf32> to vector<32x128xbf16>
    %c0_15 = arith.constant 0 : index
    %c0_16 = arith.constant 0 : index
    %32 = vector.load %arg5[%c0_15, %c0_16] : memref<32x128xbf16, #tpu.memory_space<vmem>>, vector<32x128xbf16>
    tpu.vector_store %arg5[%c0_15, %c0_16], %31 {strides = array<i32>} : memref<32x128xbf16, #tpu.memory_space<vmem>>, vector<32x128xbf16>,
    return
  }
}

module attributes {stable_mosaic.version = 11 : i64} {
  func.func @_convt_bn_relu_kernel(%arg0: memref<512x512xbf16, #tpu.memory_space<vmem>>, %arg1: memref<16x512xbf16, #tpu.memory_space<vmem>>, %arg2: memref<16x1xf32, #tpu.memory_space<vmem>>, %arg3: memref<16x1xf32, #tpu.memory_space<vmem>>, %arg4: memref<16x1xf32, #tpu.memory_space<vmem>>, %arg5: memref<16x512xbf16, #tpu.memory_space<vmem>>) attributes {dimension_semantics = [], scalar_prefetch = 0 : i64, scratch_operands = 0 : i64, tpu.core_type = #tpu.core_type<tc>} {
    %c0 = arith.constant 0 : index
    %c0_0 = arith.constant 0 : index
    %0 = vector.load %arg1[%c0, %c0_0] : memref<16x512xbf16, #tpu.memory_space<vmem>>, vector<16x512xbf16>
    %c0_1 = arith.constant 0 : index
    %c0_2 = arith.constant 0 : index
    %1 = vector.load %arg0[%c0_1, %c0_2] : memref<512x512xbf16, #tpu.memory_space<vmem>>, vector<512x512xbf16>
    %cst = arith.constant dense<0.000000e+00> : vector<16x512xf32>
    %2 = tpu.matmul %0, %1, %cst {dimension_numbers = #tpu.dot_dimension_numbers<[1], [0], [0], [1], [0, 0, 1, 1], [], []>} : vector<16x512xbf16>, vector<512x512xbf16>, vector<16x512xf32> -> vector<16x512xf32>
    %c0_3 = arith.constant 0 : index
    %c0_4 = arith.constant 0 : index
    %3 = vector.load %arg2[%c0_3, %c0_4] : memref<16x1xf32, #tpu.memory_space<vmem>>, vector<16x1xf32>
    %4 = vector.broadcast %3 : vector<16x1xf32> to vector<16x512xf32>
    %5 = arith.addf %2, %4 : vector<16x512xf32>
    %cst_5 = arith.constant dense<0.000000e+00> : vector<16xf32>
    %6 = vector.multi_reduction <add>, %5, %cst_5 [1] : vector<16x512xf32> to vector<16xf32>
    %7 = vector.shape_cast %6 : vector<16xf32> to vector<16x1xf32>
    %8 = arith.mulf %5, %5 : vector<16x512xf32>
    %cst_6 = arith.constant dense<0.000000e+00> : vector<16xf32>
    %9 = vector.multi_reduction <add>, %8, %cst_6 [1] : vector<16x512xf32> to vector<16xf32>
    %10 = vector.shape_cast %9 : vector<16xf32> to vector<16x1xf32>
    %cst_7 = arith.constant 0.001953125 : f32
    %11 = vector.broadcast %cst_7 : f32 to vector<16x1xf32>
    %12 = arith.mulf %7, %11 : vector<16x1xf32>
    %cst_8 = arith.constant 0.001953125 : f32
    %13 = vector.broadcast %cst_8 : f32 to vector<16x1xf32>
    %14 = arith.mulf %10, %13 : vector<16x1xf32>
    %15 = arith.mulf %12, %12 : vector<16x1xf32>
    %16 = arith.subf %14, %15 : vector<16x1xf32>
    %c0_9 = arith.constant 0 : index
    %c0_10 = arith.constant 0 : index
    %17 = vector.load %arg3[%c0_9, %c0_10] : memref<16x1xf32, #tpu.memory_space<vmem>>, vector<16x1xf32>
    %cst_11 = arith.constant 9.99999974E-6 : f32
    %18 = vector.broadcast %cst_11 : f32 to vector<16x1xf32>
    %19 = arith.addf %16, %18 : vector<16x1xf32>
    %20 = math.rsqrt %19 : vector<16x1xf32>
    %21 = arith.mulf %17, %20 : vector<16x1xf32>
    %c0_12 = arith.constant 0 : index
    %c0_13 = arith.constant 0 : index
    %22 = vector.load %arg4[%c0_12, %c0_13] : memref<16x1xf32, #tpu.memory_space<vmem>>, vector<16x1xf32>
    %23 = arith.mulf %12, %21 : vector<16x1xf32>
    %24 = arith.subf %22, %23 : vector<16x1xf32>
    %25 = vector.broadcast %21 : vector<16x1xf32> to vector<16x512xf32>
    %26 = arith.mulf %5, %25 : vector<16x512xf32>
    %27 = vector.broadcast %24 : vector<16x1xf32> to vector<16x512xf32>
    %28 = arith.addf %26, %27 : vector<16x512xf32>
    %cst_14 = arith.constant 0.000000e+00 : f32
    %29 = vector.broadcast %cst_14 : f32 to vector<16x512xf32>
    %30 = arith.maximumf %28, %29 : vector<16x512xf32>
    %31 = arith.truncf %30 : vector<16x512xf32> to vector<16x512xbf16>
    %c0_15 = arith.constant 0 : index
    %c0_16 = arith.constant 0 : index
    %32 = vector.load %arg5[%c0_15, %c0_16] : memref<16x512xbf16, #tpu.memory_space<vmem>>, vector<16x512xbf16>
    tpu.vector_store %arg5[%c0_15, %c0_16], %31 {strides = array<i32>} : memref<16x512xbf16, #tpu.memory_space<vmem>>, vector<16x512xbf16>,
    return
  }
}

module attributes {stable_mosaic.version = 11 : i64} {
  func.func @_convt_tanh_kernel(%arg0: memref<256x2048xbf16, #tpu.memory_space<vmem>>, %arg1: memref<8x256xbf16, #tpu.memory_space<vmem>>, %arg2: memref<8x1xf32, #tpu.memory_space<vmem>>, %arg3: memref<8x2048xf32, #tpu.memory_space<vmem>>) attributes {dimension_semantics = [], scalar_prefetch = 0 : i64, scratch_operands = 0 : i64, tpu.core_type = #tpu.core_type<tc>} {
    %c0 = arith.constant 0 : index
    %c0_0 = arith.constant 0 : index
    %0 = vector.load %arg1[%c0, %c0_0] : memref<8x256xbf16, #tpu.memory_space<vmem>>, vector<8x256xbf16>
    %c0_1 = arith.constant 0 : index
    %c0_2 = arith.constant 0 : index
    %1 = vector.load %arg0[%c0_1, %c0_2] : memref<256x2048xbf16, #tpu.memory_space<vmem>>, vector<256x2048xbf16>
    %cst = arith.constant dense<0.000000e+00> : vector<8x2048xf32>
    %2 = tpu.matmul %0, %1, %cst {dimension_numbers = #tpu.dot_dimension_numbers<[1], [0], [0], [1], [0, 0, 1, 1], [], []>} : vector<8x256xbf16>, vector<256x2048xbf16>, vector<8x2048xf32> -> vector<8x2048xf32>
    %c0_3 = arith.constant 0 : index
    %c0_4 = arith.constant 0 : index
    %3 = vector.load %arg2[%c0_3, %c0_4] : memref<8x1xf32, #tpu.memory_space<vmem>>, vector<8x1xf32>
    %4 = vector.broadcast %3 : vector<8x1xf32> to vector<8x2048xf32>
    %5 = arith.addf %2, %4 : vector<8x2048xf32>
    %6 = math.tanh %5 : vector<8x2048xf32>
    %c0_5 = arith.constant 0 : index
    %c0_6 = arith.constant 0 : index
    %7 = vector.load %arg3[%c0_5, %c0_6] : memref<8x2048xf32, #tpu.memory_space<vmem>>, vector<8x2048xf32>
    tpu.vector_store %arg3[%c0_5, %c0_6], %6 {strides = array<i32>} : memref<8x2048xf32, #tpu.memory_space<vmem>>, vector<8x2048xf32>,
    return
  }
}

</mosaic_0001>

<bundles_post_ra>
// kernel: generator_forward.4
= control target key start
LH: loop header
LB: loop body
LE: loop exit
PB: predicated region body
PF: predicated region fallthrough
CT: control target
= control target key end

     0   :  { %10 = vsyncpa [#allocation3], 0  ;;  %s1106_s18 = smov [#allocation2]   ;;  %s1436_s0 = inlined_call_operand.vmem [shape: bf16[512,32], index: 0, kind: input, shape index: {}]   ;;  %s1437_s1 = inlined_call_operand.hbm [shape: bf16[64,512], index: 1, kind: input, shape index: {}]   ;;  %s1438_s2 = inlined_call_operand.vmem [shape: f32[64,1], index: 2, kind: input, shape index: {}]   ;;  %s1439_s3 = inlined_call_operand.vmem [shape: f32[64,1], index: 3, kind: input, shape index: {}]   ;;  %s1440_s4 = inlined_call_operand.vmem [shape: f32[64,1], index: 4, kind: input, shape index: {}]   ;;  %s1441_s5 = inlined_call_operand.vmem [shape: bf16[64,32], index: 5, kind: output, shape index: {}]  }
   0x1   :  { %s18_s19 = sshll.u32 %s1106_s18, 4  ;;  %s1082_s22 = scalar_lea.hbm %s1437_s1, 2048  ;;  %s19_s19 = int_to_ptr.vmem [resolvable:$true] %s18_s19 }
   0x2   :  { %p1083_p0 = scmp.ne.s32.totalorder %s1437_s1, %s1082_s22  ;;  %p1086_p1 = scmp.lt.u32.totalorder %s1082_s22, %s1437_s1 }
   0x4   :  { %p1088_p2 = pnand %p1086_p1, %p1083_p0 }
   0x6   :  { %1091 = shalt.err (!%p1088_p2)
}
   0x7   :  { %s1092_s27 = scalar_lea.vmem %s19_s19, 2048  ;;  %p1097_p4 = scmp.lt.s32.totalorder %s19_s19, %s19_s19 }
   0x8   :  { %p1093_p3 = scmp.ne.s32.totalorder %s19_s19, %s1092_s27  ;;  %p1098_p5 = scmp.lt.s32.totalorder %s1092_s27, %s1092_s27 }
   0xa   :  { %p1099_p6 = por %p1098_p5, %p1097_p4 }
   0xc   :  { %p1100_p7 = pnand %p1099_p6, %p1093_p3 }
   0xe   :  { %1103 = shalt.err (!%p1100_p7)
}
   0xf   :  { %s1107_s28 = smov 256   ;;  %s1108_s29 = smov 16  }
  0x10   :  { %24 = dma.hbm_to_vmem [thread:$0]  %s1437_s1, 2048, %s19_s19, [#allocation3], %s1107_s28, %s1107_s28, %s1108_s29  }
  0x11   :  { %1104 = dma.done.wait [#allocation3], 2048  }
  0x12   :  { %1105 = vsyncadd [#allocation3], 4294965248  ;;  %v1109_v0 = vmov 0   ;;  %v1010_v1 = vld [vmem:[%s1436_s0 + $0x40] sm:$0xff]   ;;  %v1014_v5 = vld [vmem:[%s1436_s0 + $0x48] sm:$0xff]   ;;  %vm565_vm0 = vcmask 261120  }
  0x13   :  { %1008 = vset.pattern.permute.xlu0 %v1109_v0  ;;  %1009 = vset.pattern.permute.xlu1 %v1109_v0  ;;  %v1011_v2 = vld [vmem:[%s1436_s0 + $0xc0] sm:$0xff]   ;;  %v1015_v6 = vld [vmem:[%s1436_s0 + $0xc8] sm:$0xff]   ;;  %v1018_v9 = vld [vmem:[%s1436_s0 + $0x50] sm:$0xff]   ;;  %vm846_vm1 = vcmask 257024  }
  0x14   :  { %924 = vmatprep.subr.bf16.mxu0 %v1010_v1  ;;  %v1012_v3 = vld [vmem:[%s1436_s0] sm:$0xff]   ;;  %964 = vmatprep.subr.bf16.mxu1 %v1011_v2  ;;  %v1016_v7 = vld [vmem:[%s1436_s0 + $0x8] sm:$0xff]   ;;  %v1019_v10 = vld [vmem:[%s1436_s0 + $0xd0] sm:$0xff]  }
  0x15   :  { %v1013_v4 = vld [vmem:[%s1436_s0 + $0x80] sm:$0xff]   ;;  %925 = vmatpush3.bf16.msra.mxu0 %v1012_v3  ;;  %v1017_v8 = vld [vmem:[%s1436_s0 + $0x88] sm:$0xff]   ;;  %v1020_v11 = vld [vmem:[%s1436_s0 + $0x10] sm:$0xff]  }
  0x16   :  { %965 = vmatpush3.bf16.msra.mxu1 %v1013_v4  ;;  %926 = vmatprep.subr.bf16.mxu0 %v1014_v5  ;;  %v1021_v12 = vld [vmem:[%s1436_s0 + $0x90] sm:$0xff]   ;;  %v1022_v13 = vld [vmem:[%s1436_s0 + $0x58] sm:$0xff]   ;;  %v1026_v17 = vld [vmem:[%s1436_s0 + $0x60] sm:$0xff]  }
  0x17   :  { %966 = vmatprep.subr.bf16.mxu1 %v1015_v6  ;;  %v1023_v14 = vld [vmem:[%s1436_s0 + $0xd8] sm:$0xff]   ;;  %v1027_v18 = vld [vmem:[%s1436_s0 + $0xe0] sm:$0xff]   ;;  %v1030_v21 = vld [vmem:[%s1436_s0 + $0x68] sm:$0xff]  }
  0x18   :  { %v1024_v15 = vld [vmem:[%s1436_s0 + $0x18] sm:$0xff]   ;;  %v1028_v19 = vld [vmem:[%s1436_s0 + $0x20] sm:$0xff]   ;;  %v1031_v22 = vld [vmem:[%s1436_s0 + $0xe8] sm:$0xff]  }
  0x19   :  { %927 = vmatpush3.bf16.msra.mxu0 %v1016_v7  ;;  %v1025_v16 = vld [vmem:[%s1436_s0 + $0x98] sm:$0xff]   ;;  %v1029_v20 = vld [vmem:[%s1436_s0 + $0xa0] sm:$0xff]   ;;  %v1032_v23 = vld [vmem:[%s1436_s0 + $0x28] sm:$0xff]  }
  0x1a   :  { %967 = vmatpush3.bf16.msra.mxu1 %v1017_v8  ;;  %928 = vmatprep.subr.bf16.mxu0 %v1018_v9  ;;  %v1033_v24 = vld [vmem:[%s1436_s0 + $0xa8] sm:$0xff]   ;;  %v1034_v25 = vld [vmem:[%s1436_s0 + $0x70] sm:$0xff]   ;;  %v1038_v29 = vld [vmem:[%s1436_s0 + $0x78] sm:$0xff]  }
  0x1b   :  { %968 = vmatprep.subr.bf16.mxu1 %v1019_v10  ;;  %v1035_v26 = vld [vmem:[%s1436_s0 + $0xf0] sm:$0xff]   ;;  %v1039_v30 = vld [vmem:[%s1436_s0 + $0xf8] sm:$0xff]   ;;  %v115_v43 = vld [vmem:[%s1438_s2] sm:$0xff] }
  0x1c   :  { %v1036_v27 = vld [vmem:[%s1436_s0 + $0x30] sm:$0xff]   ;;  %v1040_v31 = vld [vmem:[%s1436_s0 + $0x38] sm:$0xff]   ;;  %125 = vperm.xlu0 %1008, %v115_v43   ;;  %v116_v45 = vld [vmem:[%s1438_s2 + $0x8] sm:$0xff] }
  0x1d   :  { %929 = vmatpush3.bf16.msra.mxu0 %v1020_v11  ;;  %v1037_v28 = vld [vmem:[%s1436_s0 + $0xb0] sm:$0xff]   ;;  %v1041_v32 = vld [vmem:[%s1436_s0 + $0xb8] sm:$0xff]   ;;  %v119_v48 = vld [vmem:[%s1438_s2 + $0x20] sm:$0xff] }
  0x1e   :  { %969 = vmatpush3.bf16.msra.mxu1 %v1021_v12  ;;  %930 = vmatprep.subr.bf16.mxu0 %v1022_v13  ;;  %v1042_v33 = vld [vmem:[#allocation2] ss:$16 sps:$4 sm:$0xff]   ;;  %v1044_v34 = vld [vmem:[#allocation2 + $0x4] ss:$16 sps:$4 sm:$0xff]   ;;  %v1045_v35 = vld [vmem:[#allocation2 + $0x8] ss:$16 sps:$4 sm:$0xff]  }
  0x1f   :  { %970 = vmatprep.subr.bf16.mxu1 %v1023_v14  ;;  %v1047_v36 = vld [vmem:[#allocation2 + $0xc] ss:$16 sps:$4 sm:$0xff]   ;;  %467 = vmatprep.mubr.bf16.mxu0 %v1044_v34  ;;  %v1048_v37 = vld [vmem:[#allocation2 + $0x24] ss:$16 sps:$4 sm:$0xff]   ;;  %v1050_v39 = vld [vmem:[#allocation2 + $0x20] ss:$16 sps:$4 sm:$0xff]  }
  0x20   :  { %532 = vmatprep.mubr.bf16.mxu1 %v1047_v36  ;;  %v1051_v38 = vld [vmem:[#allocation2 + $0x2c] ss:$16 sps:$4 sm:$0xff]   ;;  %v1053_v40 = vld [vmem:[#allocation2 + $0x28] ss:$16 sps:$4 sm:$0xff]   ;;  %v1054_v41 = vld [vmem:[#allocation2 + $0x44] ss:$16 sps:$4 sm:$0xff]   ;;  %130 = vperm.xlu0 %1008, %v116_v45  }
  0x21   :  { %931 = vmatpush3.bf16.msra.mxu0 %v1024_v15  ;;  %v1057_v42 = vld [vmem:[#allocation2 + $0x4c] ss:$16 sps:$4 sm:$0xff]   ;;  %v117_v44 = vld [vmem:[%s1438_s2 + $0x10] sm:$0xff]  ;;  %v1059_v49 = vld [vmem:[#allocation2 + $0x48] ss:$16 sps:$4 sm:$0xff]  }
  0x22   :  { %971 = vmatpush3.bf16.msra.mxu1 %v1025_v16  ;;  %932 = vmatprep.subr.bf16.mxu0 %v1026_v17  ;;  %v118_v46 = vld [vmem:[%s1438_s2 + $0x18] sm:$0xff]  ;;  %v1056_v47 = vld [vmem:[#allocation2 + $0x40] ss:$16 sps:$4 sm:$0xff]   ;;  %v1060_v50 = vld [vmem:[#allocation2 + $0x64] ss:$16 sps:$4 sm:$0xff]  }
  0x23   :  { %972 = vmatprep.subr.bf16.mxu1 %v1027_v18  ;;  %135 = vperm.xlu1 %1009, %v117_v44   ;;  %v120_v51 = vld [vmem:[%s1438_s2 + $0x28] sm:$0xff]  ;;  %v121_v53 = vld [vmem:[%s1438_s2 + $0x30] sm:$0xff]  ;;  %v122_v54 = vld [vmem:[%s1438_s2 + $0x38] sm:$0xff] }
  0x24   :  { %v1063_v52 = vld [vmem:[#allocation2 + $0x6c] ss:$16 sps:$4 sm:$0xff]   ;;  %145 = vperm.xlu0 %1008, %v119_v48   ;;  %v1062_v55 = vld [vmem:[#allocation2 + $0x60] ss:$16 sps:$4 sm:$0xff]   ;;  %v1065_v56 = vld [vmem:[#allocation2 + $0x68] ss:$16 sps:$4 sm:$0xff]  }
  0x25   :  { %933 = vmatpush3.bf16.msra.mxu0 %v1028_v19 }
  0x26   :  { %973 = vmatpush3.bf16.msra.mxu1 %v1029_v20  ;;  %934 = vmatprep.subr.bf16.mxu0 %v1030_v21 }
  0x27   :  { %974 = vmatprep.subr.bf16.mxu1 %v1031_v22  ;;  %140 = vperm.xlu1 %1009, %v118_v46  }
  0x28   :  { %155 = vperm.xlu0 %1008, %v121_v53  }
  0x29   :  { %935 = vmatpush3.bf16.msra.mxu0 %v1032_v23 }
  0x2a   :  { %975 = vmatpush3.bf16.msra.mxu1 %v1033_v24  ;;  %936 = vmatprep.subr.bf16.mxu0 %v1034_v25 }
  0x2b   :  { %976 = vmatprep.subr.bf16.mxu1 %v1035_v26  ;;  %150 = vperm.xlu1 %1009, %v120_v51  }
  0x2d   :  { %937 = vmatpush3.bf16.msra.mxu0 %v1036_v27 }
  0x2e   :  { %977 = vmatpush3.bf16.msra.mxu1 %v1037_v28  ;;  %938 = vmatprep.subr.bf16.mxu0 %v1038_v29 }
  0x2f   :  { %978 = vmatprep.subr.bf16.mxu1 %v1039_v30  ;;  %160 = vperm.xlu1 %1009, %v122_v54  }
  0x31   :  { %939 = vmatpush3.bf16.msra.mxu0 %v1040_v31 }
  0x32   :  { %979 = vmatpush3.bf16.msra.mxu1 %v1041_v32 }
  0x34   :  { %468 = vmatmul.mubr.bf16.vlgmr.msra.gmra.mrb[0].mxu0 %v1042_v33 }
  0x35   :  { %533 = vmatmul.mubr.bf16.vlgmr.msra.gmra.mrb[0].mxu1 %v1045_v35  ;;  %475 = vmatprep.mubr.bf16.mxu0 %v1048_v37 }
  0x36   :  { %540 = vmatprep.mubr.bf16.mxu1 %v1051_v38 }
  0x3c   :  { %476 = vmatmul.mubr.bf16.gmra.mrb[4].mxu0 %v1050_v39 }
  0x3d   :  { %541 = vmatmul.mubr.bf16.gmra.mrb[4].mxu1 %v1053_v40  ;;  %483 = vmatprep.mubr.bf16.mxu0 %v1054_v41 }
  0x3e   :  { %548 = vmatprep.mubr.bf16.mxu1 %v1057_v42 }
  0x44   :  { %484 = vmatmul.mubr.bf16.gmra.mrb[8].mxu0 %v1056_v47 }
  0x45   :  { %549 = vmatmul.mubr.bf16.gmra.mrb[8].mxu1 %v1059_v49  ;;  %491 = vmatprep.mubr.bf16.mxu0 %v1060_v50 }
  0x46   :  { %556 = vmatprep.mubr.bf16.mxu1 %v1063_v52 }
  0x4c   :  { %492 = vmatmul.mubr.bf16.gmra.mrb[12].mxu0 %v1062_v55 }
  0x4d   :  { %557 = vmatmul.mubr.bf16.gmra.mrb[12].mxu1 %v1065_v56 }
  0x9b   :  { %v126_v57 = vpop.permute.xlu0 %125 }
  0x9f   :  { %v131_v6 = vpop.permute.xlu0 %130 }
  0xa2   :  { %v136_v10 = vpop.permute.xlu1 %135 }
  0xa3   :  { %v146_v34 = vpop.permute.xlu0 %145 }
  0xa6   :  { %v141_v29 = vpop.permute.xlu1 %140 }
  0xaa   :  { %v151_v53 = vpop.permute.xlu1 %150 }
 0x107   :  { %v940_v58 = vpop.f32.mrb[0].mxu0 }
 0x108   :  { %v980_v59 = vpop.f32.mrb[0].mxu1  ;;  %v941_v60 = vpop.f32.mrb[1].mxu0 }
 0x109   :  { %v942_v61 = vadd.f32 %v941_v60, %v940_v58  ;;  %v981_v62 = vpop.f32.mrb[1].mxu1  ;;  %v943_v63 = vpop.f32.mrb[2].mxu0 }
 0x10a   :  { %v982_v0 = vadd.f32 %v981_v62, %v980_v59  ;;  %v983_v1 = vpop.f32.mrb[2].mxu1  ;;  %v944_v2 = vpop.f32.mrb[3].mxu0 }
 0x10b   :  { %v470_v3 = vadd.f32 %v942_v61, %v126_v57  ;;  %v945_v4 = vadd.f32 %v944_v2, %v943_v63  ;;  %v984_v5 = vpop.f32.mrb[3].mxu1  ;;  %v156_v57 = vpop.permute.xlu0 %155 }
 0x10c   :  { %v985_v7 = vadd.f32 %v984_v5, %v983_v1 }
 0x10d   :  { %v1272_v8 = vadd.f32 %v982_v0, %v470_v3  ;;  %v473_v9 = vadd.f32 %v945_v4, %v131_v6 }
 0x10f   :  { %v1274_v11 = vadd.f32 %v985_v7, %v473_v9  ;;  %v946_v12 = vpop.f32.mrb[4].mxu0  ;;  %v566_v13 = vsel %vm565_vm0, %v1272_v8, 0.0  ;;  %v590_v21 = vmul.f32 %v1272_v8, %v1272_v8 }
 0x110   :  { %v947_v14 = vpop.f32.mrb[5].mxu0  ;;  %v986_v15 = vpop.f32.mrb[4].mxu1  ;;  %567 = vadd.xlane.f32.xlu0 %v566_v13 }
 0x111   :  { %v948_v16 = vadd.f32 %v947_v14, %v946_v12  ;;  %v949_v17 = vpop.f32.mrb[6].mxu0  ;;  %v987_v18 = vpop.f32.mrb[5].mxu1  ;;  %v569_v19 = vsel %vm565_vm0, %v1274_v11, 0.0  ;;  %v591_v20 = vmul.f32 %v1274_v11, %v1274_v11  ;;  %v598_v33 = vsel %vm565_vm0, %v590_v21, 0.0 }
 0x112   :  { %v988_v22 = vadd.f32 %v987_v18, %v986_v15  ;;  %v950_v23 = vpop.f32.mrb[7].mxu0  ;;  %v989_v24 = vpop.f32.mrb[6].mxu1  ;;  %570 = vadd.xlane.f32.xlu1 %v569_v19 }
 0x113   :  { %v478_v25 = vadd.f32 %v948_v16, %v136_v10  ;;  %v951_v26 = vadd.f32 %v950_v23, %v949_v17  ;;  %v990_v27 = vpop.f32.mrb[7].mxu1  ;;  %v601_v28 = vsel %vm565_vm0, %v591_v20, 0.0  ;;  %v161_v15 = vpop.permute.xlu1 %160 }
 0x114   :  { %v991_v30 = vadd.f32 %v990_v27, %v989_v24  ;;  %602 = vadd.xlane.f32.xlu0 %v601_v28 }
 0x115   :  { %v1285_v31 = vadd.f32 %v988_v22, %v478_v25  ;;  %v481_v32 = vadd.f32 %v951_v26, %v141_v29 }
 0x116   :  { %599 = vadd.xlane.f32.xlu1 %v598_v33 }
 0x117   :  { %v1288_v35 = vadd.f32 %v991_v30, %v481_v32  ;;  %v952_v36 = vpop.f32.mrb[8].mxu0  ;;  %v572_v37 = vsel %vm565_vm0, %v1285_v31, 0.0  ;;  %v592_v38 = vmul.f32 %v1285_v31, %v1285_v31 }
 0x118   :  { %v953_v39 = vpop.f32.mrb[9].mxu0  ;;  %573 = vadd.xlane.f32.xlu0 %v572_v37  ;;  %v992_v40 = vpop.f32.mrb[8].mxu1 }
 0x119   :  { %v954_v41 = vadd.f32 %v953_v39, %v952_v36  ;;  %v955_v42 = vpop.f32.mrb[10].mxu0  ;;  %v993_v43 = vpop.f32.mrb[9].mxu1  ;;  %v604_v44 = vsel %vm565_vm0, %v592_v38, 0.0  ;;  %v575_v51 = vsel %vm565_vm0, %v1288_v35, 0.0  ;;  %v593_v52 = vmul.f32 %v1288_v35, %v1288_v35 }
 0x11a   :  { %v956_v45 = vpop.f32.mrb[11].mxu0  ;;  %v994_v46 = vadd.f32 %v993_v43, %v992_v40  ;;  %605 = vadd.xlane.f32.xlu1 %v604_v44  ;;  %v995_v47 = vpop.f32.mrb[10].mxu1 }
 0x11b   :  { %v486_v48 = vadd.f32 %v954_v41, %v146_v34  ;;  %v957_v49 = vadd.f32 %v956_v45, %v955_v42  ;;  %v996_v50 = vpop.f32.mrb[11].mxu1  ;;  %v607_v61 = vsel %vm565_vm0, %v593_v52, 0.0 }
 0x11c   :  { %v997_v54 = vadd.f32 %v996_v50, %v995_v47  ;;  %576 = vadd.xlane.f32.xlu0 %v575_v51 }
 0x11d   :  { %v489_v55 = vadd.f32 %v957_v49, %v151_v53  ;;  %v1299_v56 = vadd.f32 %v994_v46, %v486_v48 }
 0x11f   :  { %v1301_v58 = vadd.f32 %v997_v54, %v489_v55  ;;  %v958_v59 = vpop.f32.mrb[12].mxu0  ;;  %v578_v60 = vsel %vm565_vm0, %v1299_v56, 0.0  ;;  %v594_v62 = vmul.f32 %v1299_v56, %v1299_v56 }
 0x120   :  { %v959_v63 = vpop.f32.mrb[13].mxu0  ;;  %579 = vadd.xlane.f32.xlu1 %v578_v60  ;;  %608 = vadd.xlane.f32.xlu0 %v607_v61  ;;  %v998_v0 = vpop.f32.mrb[12].mxu1  ;;  %v655_v60 = vld [vmem:[%s1439_s3 + $0x8] sm:$0xff] }
 0x121   :  { %v960_v1 = vadd.f32 %v959_v63, %v958_v59  ;;  %v961_v2 = vpop.f32.mrb[14].mxu0  ;;  %v999_v3 = vpop.f32.mrb[13].mxu1  ;;  %v610_v7 = vsel %vm565_vm0, %v594_v62, 0.0  ;;  %v581_v13 = vsel %vm565_vm0, %v1301_v58, 0.0  ;;  %v595_v14 = vmul.f32 %v1301_v58, %v1301_v58 }
 0x122   :  { %v962_v4 = vpop.f32.mrb[15].mxu0  ;;  %v1000_v5 = vadd.f32 %v999_v3, %v998_v0  ;;  %v1001_v6 = vpop.f32.mrb[14].mxu1 }
 0x123   :  { %v494_v9 = vadd.f32 %v960_v1, %v156_v57  ;;  %v963_v10 = vadd.f32 %v962_v4, %v961_v2  ;;  %v1002_v12 = vpop.f32.mrb[15].mxu1  ;;  %v613_v21 = vsel %vm565_vm0, %v595_v14, 0.0  ;;  %v654_v4 = vld [vmem:[%s1439_s3] sm:$0xff] }
 0x124   :  { %v1003_v16 = vadd.f32 %v1002_v12, %v1001_v6  ;;  %611 = vadd.xlane.f32.xlu1 %v610_v7  ;;  %582 = vadd.xlane.f32.xlu0 %v581_v13  ;;  %v687_v13 = vld [vmem:[%s1440_s4 + $0x8] sm:$0xff] }
 0x125   :  { %v497_v17 = vadd.f32 %v963_v10, %v161_v15  ;;  %v1313_v18 = vadd.f32 %v1000_v5, %v494_v9 }
 0x127   :  { %v1315_v19 = vadd.f32 %v1003_v16, %v497_v17  ;;  %v584_v20 = vsel %vm565_vm0, %v1313_v18, 0.0  ;;  %v596_v22 = vmul.f32 %v1313_v18, %v1313_v18 }
 0x128   :  { %585 = vadd.xlane.f32.xlu1 %v584_v20  ;;  %614 = vadd.xlane.f32.xlu0 %v613_v21  ;;  %v686_v21 = vld [vmem:[%s1440_s4] sm:$0xff] }
 0x129   :  { %v616_v23 = vsel %vm565_vm0, %v596_v22, 0.0  ;;  %v587_v24 = vsel %vm565_vm0, %v1315_v19, 0.0  ;;  %v597_v25 = vmul.f32 %v1315_v19, %v1315_v19  ;;  %v656_v22 = vld [vmem:[%s1439_s3 + $0x10] sm:$0xff] }
 0x12b   :  { %v619_v26 = vsel %vm565_vm0, %v597_v25, 0.0 }
 0x12c   :  { %617 = vadd.xlane.f32.xlu1 %v616_v23  ;;  %588 = vadd.xlane.f32.xlu0 %v587_v24 }
 0x130   :  { %620 = vadd.xlane.f32.xlu0 %v619_v26 }
 0x19d   :  { %v568_v27 = vpop.xlane.xlu0 %567 }
 0x19e   :  { %v622_v29 = vmul.f32 0.03125, %v568_v27 }
 0x19f   :  { %v571_v28 = vpop.xlane.xlu1 %570 }
 0x1a0   :  { %v623_v30 = vmul.f32 0.03125, %v571_v28  ;;  %v638_v37 = vmul.f32 %v622_v29, %v622_v29 }
 0x1a1   :  { %v603_v32 = vpop.xlane.xlu0 %602 }
 0x1a2   :  { %v639_v33 = vmul.f32 %v623_v30, %v623_v30  ;;  %v631_v34 = vmul.f32 0.03125, %v603_v32 }
 0x1a3   :  { %v600_v36 = vpop.xlane.xlu1 %599 }
 0x1a4   :  { %v647_v38 = vsub.f32 %v631_v34, %v639_v33  ;;  %v630_v39 = vmul.f32 0.03125, %v600_v36 }
 0x1a5   :  { %v574_v40 = vpop.xlane.xlu0 %573 }
 0x1a6   :  { %v663_v41 = vadd.f32 1e-05, %v647_v38  ;;  %v646_v42 = vsub.f32 %v630_v39, %v638_v37  ;;  %v624_v43 = vmul.f32 0.03125, %v574_v40  ;;  %v688_v38 = vld [vmem:[%s1440_s4 + $0x10] sm:$0xff]  ;;  %v657_v40 = vld [vmem:[%s1439_s3 + $0x18] sm:$0xff] }
 0x1a7   :  { %v606_v44 = vpop.xlane.xlu1 %605 }
 0x1a8   :  { %1066 = vrsqrt.f32 %v663_v41  ;;  %v662_v45 = vadd.f32 1e-05, %v646_v42  ;;  %v640_v46 = vmul.f32 %v624_v43, %v624_v43  ;;  %v632_v47 = vmul.f32 0.03125, %v606_v44 }
 0x1a9   :  { %v577_v48 = vpop.xlane.xlu0 %576 }
 0x1aa   :  { %1068 = vrsqrt.f32 %v662_v45  ;;  %v648_v49 = vsub.f32 %v632_v47, %v640_v46  ;;  %v1328_v50 = vmul.f32 0.03125, %v577_v48 }
 0x1ac   :  { %v664_v51 = vadd.f32 1e-05, %v648_v49  ;;  %v641_v54 = vmul.f32 %v1328_v50, %v1328_v50 }
 0x1ad   :  { %v580_v52 = vpop.xlane.xlu1 %579  ;;  %v609_v53 = vpop.xlane.xlu0 %608 }
 0x1ae   :  { %1070 = vrsqrt.f32 %v664_v51  ;;  %v1332_v55 = vmul.f32 0.03125, %v580_v52  ;;  %v633_v57 = vmul.f32 0.03125, %v609_v53 }
 0x1b0   :  { %v649_v59 = vsub.f32 %v633_v57, %v641_v54  ;;  %v642_v0 = vmul.f32 %v1332_v55, %v1332_v55  ;;  %v689_v54 = vld [vmem:[%s1440_s4 + $0x18] sm:$0xff] }
 0x1b1   :  { %v612_v61 = vpop.xlane.xlu1 %611  ;;  %v583_v62 = vpop.xlane.xlu0 %582 }
 0x1b2   :  { %v1067_v63 = vpop.eup %1066  ;;  %v665_v1 = vadd.f32 1e-05, %v649_v59  ;;  %v634_v2 = vmul.f32 0.03125, %v612_v61  ;;  %v1339_v3 = vmul.f32 0.03125, %v583_v62  ;;  %v690_v59 = vld [vmem:[%s1440_s4 + $0x20] sm:$0xff] }
 0x1b3   :  { %v679_v5 = vmul.f32 %v1067_v63, %v655_v60  ;;  %v659_v60 = vld [vmem:[%s1439_s3 + $0x28] sm:$0xff] }
 0x1b4   :  { %v1069_v6 = vpop.eup %1068  ;;  %1072 = vrsqrt.f32 %v665_v1  ;;  %v650_v7 = vsub.f32 %v634_v2, %v642_v0  ;;  %v643_v16 = vmul.f32 %v1339_v3, %v1339_v3  ;;  %v660_v1 = vld [vmem:[%s1439_s3 + $0x30] sm:$0xff] }
 0x1b5   :  { %v586_v9 = vpop.xlane.xlu1 %585  ;;  %717 = vperm.xlu0 %1008, %v679_v5   ;;  %v615_v10 = vpop.xlane.xlu0 %614  ;;  %v678_v12 = vmul.f32 %v1069_v6, %v654_v4  ;;  %v695_v14 = vmul.f32 %v679_v5, %v623_v30  ;;  %v691_v5 = vld [vmem:[%s1440_s4 + $0x28] sm:$0xff] }
 0x1b6   :  { %v666_v15 = vadd.f32 1e-05, %v650_v7  ;;  %v1349_v17 = vmul.f32 0.03125, %v586_v9  ;;  %v635_v20 = vmul.f32 0.03125, %v615_v10  ;;  %v661_v7 = vld [vmem:[%s1439_s3 + $0x38] sm:$0xff] }
 0x1b7   :  { %712 = vperm.xlu1 %1009, %v678_v12   ;;  %v694_v23 = vmul.f32 %v678_v12, %v622_v29  ;;  %v703_v30 = vsub.f32 %v687_v13, %v695_v14 }
 0x1b8   :  { %v1071_v24 = vpop.eup %1070  ;;  %1074 = vrsqrt.f32 %v666_v15  ;;  %v651_v25 = vsub.f32 %v635_v20, %v643_v16  ;;  %v644_v33 = vmul.f32 %v1349_v17, %v1349_v17  ;;  %v693_v15 = vld [vmem:[%s1440_s4 + $0x38] sm:$0xff] }
 0x1b9   :  { %v618_v26 = vpop.xlane.xlu1 %617  ;;  %v589_v27 = vpop.xlane.xlu0 %588  ;;  %v702_v28 = vsub.f32 %v686_v21, %v694_v23  ;;  %v680_v32 = vmul.f32 %v1071_v24, %v656_v22 }
 0x1ba   :  { %v667_v34 = vadd.f32 1e-05, %v651_v25  ;;  %v636_v36 = vmul.f32 0.03125, %v618_v26  ;;  %v629_v37 = vmul.f32 0.03125, %v589_v27 }
 0x1bb   :  { %760 = vperm.xlu0 %1008, %v702_v28   ;;  %765 = vperm.xlu1 %1009, %v703_v30   ;;  %v696_v29 = vmul.f32 %v680_v32, %v624_v43  ;;  %v658_v43 = vld [vmem:[%s1439_s3 + $0x20] sm:$0xff] }
 0x1bc   :  { %1076 = vrsqrt.f32 %v667_v34  ;;  %v652_v39 = vsub.f32 %v636_v36, %v644_v33  ;;  %v645_v46 = vmul.f32 %v629_v37, %v629_v37 }
 0x1bd   :  { %v621_v41 = vpop.xlane.xlu0 %620  ;;  %v704_v42 = vsub.f32 %v688_v38, %v696_v29 }
 0x1be   :  { %v1073_v44 = vpop.eup %1072  ;;  %v668_v45 = vadd.f32 1e-05, %v652_v39  ;;  %v637_v47 = vmul.f32 0.03125, %v621_v41 }
 0x1bf   :  { %722 = vperm.xlu1 %1009, %v680_v32   ;;  %770 = vperm.xlu0 %1008, %v704_v42   ;;  %v681_v48 = vmul.f32 %v1073_v44, %v657_v40 }
 0x1c0   :  { %1078 = vrsqrt.f32 %v668_v45  ;;  %v653_v49 = vsub.f32 %v637_v47, %v645_v46 }
 0x1c1   :  { %v697_v51 = vmul.f32 %v681_v48, %v1328_v50 }
 0x1c2   :  { %v1075_v52 = vpop.eup %1074  ;;  %v669_v53 = vadd.f32 1e-05, %v653_v49 }
 0x1c3   :  { %727 = vperm.xlu1 %1009, %v681_v48   ;;  %v682_v57 = vmul.f32 %v1075_v52, %v658_v43  ;;  %v705_v61 = vsub.f32 %v689_v54, %v697_v51 }
 0x1c4   :  { %1080 = vrsqrt.f32 %v669_v53 }
 0x1c5   :  { %732 = vperm.xlu0 %1008, %v682_v57   ;;  %v698_v50 = vmul.f32 %v682_v57, %v1332_v55  ;;  %v692_v55 = vld [vmem:[%s1440_s4 + $0x30] sm:$0xff] }
 0x1c6   :  { %v1077_v62 = vpop.eup %1076 }
 0x1c7   :  { %775 = vperm.xlu1 %1009, %v705_v61   ;;  %v706_v63 = vsub.f32 %v690_v59, %v698_v50  ;;  %v683_v0 = vmul.f32 %v1077_v62, %v659_v60 }
 0x1c9   :  { %780 = vperm.xlu0 %1008, %v706_v63   ;;  %v699_v2 = vmul.f32 %v683_v0, %v1339_v3 }
 0x1ca   :  { %v1079_v4 = vpop.eup %1078 }
 0x1cb   :  { %737 = vperm.xlu1 %1009, %v683_v0   ;;  %v684_v6 = vmul.f32 %v1079_v4, %v660_v1  ;;  %v707_v9 = vsub.f32 %v691_v5, %v699_v2 }
 0x1cd   :  { %742 = vperm.xlu0 %1008, %v684_v6   ;;  %v700_v10 = vmul.f32 %v684_v6, %v1349_v17 }
 0x1ce   :  { %v1081_v3 = vpop.eup %1080 }
 0x1cf   :  { %785 = vperm.xlu1 %1009, %v707_v9   ;;  %v708_v12 = vsub.f32 %v692_v55, %v700_v10  ;;  %v685_v13 = vmul.f32 %v1081_v3, %v661_v7 }
 0x1d1   :  { %790 = vperm.xlu0 %1008, %v708_v12   ;;  %v701_v14 = vmul.f32 %v685_v13, %v629_v37 }
 0x1d3   :  { %747 = vperm.xlu1 %1009, %v685_v13   ;;  %v709_v16 = vsub.f32 %v693_v15, %v701_v14 }
 0x1d7   :  { %795 = vperm.xlu1 %1009, %v709_v16  }
 0x234   :  { %v718_v20 = vpop.permute.xlu0 %717 }
 0x235   :  { %v751_v22 = vmul.f32 %v718_v20, %v1274_v11 }
 0x236   :  { %v713_v21 = vpop.permute.xlu1 %712 }
 0x237   :  { %v750_v23 = vmul.f32 %v713_v21, %v1272_v8 }
 0x23a   :  { %v766_v17 = vpop.permute.xlu1 %765  ;;  %v761_v24 = vpop.permute.xlu0 %760 }
 0x23b   :  { %v799_v25 = vadd.f32 %v766_v17, %v751_v22  ;;  %v798_v26 = vadd.f32 %v761_v24, %v750_v23 }
 0x23d   :  { %v807_v27 = vmax.f32 %v799_v25, 0.0  ;;  %v806_v28 = vmax.f32 %v798_v26, 0.0 }
 0x23e   :  { %v723_v30 = vpop.permute.xlu1 %722  ;;  %v771_v36 = vpop.permute.xlu0 %770 }
 0x23f   :  { %v917_v32 = vpack.c.bf16 %v807_v27, %v807_v27  ;;  %v916_v33 = vpack.c.bf16 %v806_v28, %v806_v28  ;;  %v752_v34 = vmul.f32 %v723_v30, %v1285_v31 }
 0x241   :  { %848 = vst.msk [vmem:[%s1441_s5 + $0x4] sm:$0xf] %vm846_vm1, %v917_v32  ;;  %847 = vst.msk [vmem:[%s1441_s5] sm:$0xf] %vm846_vm1, %v916_v33  ;;  %v800_v8 = vadd.f32 %v771_v36, %v752_v34 }
 0x242   :  { %v728_v11 = vpop.permute.xlu1 %727 }
 0x243   :  { %v808_v37 = vmax.f32 %v800_v8, 0.0  ;;  %v753_v39 = vmul.f32 %v728_v11, %v1288_v35 }
 0x244   :  { %v733_v38 = vpop.permute.xlu0 %732 }
 0x245   :  { %v918_v29 = vpack.c.bf16 %v808_v37, %v808_v37  ;;  %v754_v31 = vmul.f32 %v733_v38, %v1299_v56 }
 0x246   :  { %v776_v40 = vpop.permute.xlu1 %775 }
 0x247   :  { %849 = vst.msk [vmem:[%s1441_s5 + $0x8] sm:$0xf] %vm846_vm1, %v918_v29  ;;  %v801_v41 = vadd.f32 %v776_v40, %v753_v39 }
 0x248   :  { %v781_v42 = vpop.permute.xlu0 %780 }
 0x249   :  { %v809_v44 = vmax.f32 %v801_v41, 0.0  ;;  %v802_v45 = vadd.f32 %v781_v42, %v754_v31 }
 0x24a   :  { %v738_v46 = vpop.permute.xlu1 %737 }
 0x24b   :  { %v919_v47 = vpack.c.bf16 %v809_v44, %v809_v44  ;;  %v810_v48 = vmax.f32 %v802_v45, 0.0  ;;  %v755_v43 = vmul.f32 %v738_v46, %v1301_v58 }
 0x24c   :  { %v743_v49 = vpop.permute.xlu0 %742 }
 0x24d   :  { %850 = vst.msk [vmem:[%s1441_s5 + $0xc] sm:$0xf] %vm846_vm1, %v919_v47  ;;  %v920_v35 = vpack.c.bf16 %v810_v48, %v810_v48  ;;  %v756_v56 = vmul.f32 %v743_v49, %v1313_v18 }
 0x24e   :  { %v786_v51 = vpop.permute.xlu1 %785 }
 0x24f   :  { %851 = vst.msk [vmem:[%s1441_s5 + $0x10] sm:$0xf] %vm846_vm1, %v920_v35  ;;  %v803_v52 = vadd.f32 %v786_v51, %v755_v43 }
 0x250   :  { %v791_v53 = vpop.permute.xlu0 %790 }
 0x251   :  { %v811_v54 = vmax.f32 %v803_v52, 0.0  ;;  %v804_v57 = vadd.f32 %v791_v53, %v756_v56 }
 0x252   :  { %v748_v59 = vpop.permute.xlu1 %747 }
 0x253   :  { %v921_v60 = vpack.c.bf16 %v811_v54, %v811_v54  ;;  %v812_v61 = vmax.f32 %v804_v57, 0.0  ;;  %v757_v50 = vmul.f32 %v748_v59, %v1315_v19 }
 0x255   :  { %852 = vst.msk [vmem:[%s1441_s5 + $0x14] sm:$0xf] %vm846_vm1, %v921_v60  ;;  %v922_v58 = vpack.c.bf16 %v812_v61, %v812_v61 }
 0x256   :  { %v796_v62 = vpop.permute.xlu1 %795 }
 0x257   :  { %853 = vst.msk [vmem:[%s1441_s5 + $0x18] sm:$0xf] %vm846_vm1, %v922_v58  ;;  %v805_v18 = vadd.f32 %v796_v62, %v757_v50 }
 0x259   :  { %v813_v63 = vmax.f32 %v805_v18, 0.0 }
 0x25b   :  { %v923_v0 = vpack.c.bf16 %v813_v63, %v813_v63 }
 0x25d   :  { %854 = vst.msk [vmem:[%s1441_s5 + $0x1c] sm:$0xf] %vm846_vm1, %v923_v0 }
 0x25e   :  { %859 = vsyncpa [#allocation3], 1 }

// kernel: generator_forward.5
= control target key start
LH: loop header
LB: loop body
LE: loop exit
PB: predicated region body
PF: predicated region fallthrough
CT: control target
= control target key end

     0   :  { %v1275_v1 = vmov 0   ;;  %s1612_s0 = inlined_call_operand.vmem [shape: bf16[1024,128], index: 0, kind: input, shape index: {}]   ;;  %s1613_s1 = inlined_call_operand.vmem [shape: bf16[32,1024], index: 1, kind: input, shape index: {}]   ;;  %s1614_s2 = inlined_call_operand.vmem [shape: f32[32,1], index: 2, kind: input, shape index: {}]   ;;  %s1615_s3 = inlined_call_operand.vmem [shape: f32[32,1], index: 3, kind: input, shape index: {}]   ;;  %s1616_s4 = inlined_call_operand.vmem [shape: f32[32,1], index: 4, kind: input, shape index: {}]   ;;  %s1617_s5 = inlined_call_operand.vmem [shape: bf16[32,128], index: 5, kind: output, shape index: {}]  }
   0x1   :  { %v1203_v0 = vld [vmem:[%s1612_s0 + $0x40] sm:$0xff]   ;;  %1201 = vset.pattern.permute.xlu0 %v1275_v1  ;;  %1202 = vset.pattern.permute.xlu1 %v1275_v1  ;;  %v1207_v5 = vld [vmem:[%s1612_s0 + $0x48] sm:$0xff]   ;;  %v1211_v9 = vld [vmem:[%s1612_s0 + $0x50] sm:$0xff]  }
   0x2   :  { %v1204_v2 = vld [vmem:[%s1612_s0 + $0xc0] sm:$0xff]   ;;  %1088 = vmatprep.subr.bf16.mxu0 %v1203_v0  ;;  %v1208_v6 = vld [vmem:[%s1612_s0 + $0xc8] sm:$0xff]   ;;  %v1212_v10 = vld [vmem:[%s1612_s0 + $0xd0] sm:$0xff]  }
   0x3   :  { %v1205_v3 = vld [vmem:[%s1612_s0] sm:$0xff]   ;;  %1116 = vmatprep.subr.bf16.mxu1 %v1204_v2  ;;  %v1209_v7 = vld [vmem:[%s1612_s0 + $0x8] sm:$0xff]   ;;  %v1213_v11 = vld [vmem:[%s1612_s0 + $0x10] sm:$0xff]  }
   0x4   :  { %v1206_v4 = vld [vmem:[%s1612_s0 + $0x80] sm:$0xff]   ;;  %1089 = vmatpush3.bf16.msra.mxu0 %v1205_v3  ;;  %v1210_v8 = vld [vmem:[%s1612_s0 + $0x88] sm:$0xff]   ;;  %v1214_v12 = vld [vmem:[%s1612_s0 + $0x90] sm:$0xff]  }
   0x5   :  { %1117 = vmatpush3.bf16.msra.mxu1 %v1206_v4  ;;  %1090 = vmatprep.subr.bf16.mxu0 %v1207_v5  ;;  %v1215_v13 = vld [vmem:[%s1612_s0 + $0x58] sm:$0xff]   ;;  %v1219_v17 = vld [vmem:[%s1612_s0 + $0x60] sm:$0xff]   ;;  %v1223_v21 = vld [vmem:[%s1612_s0 + $0x68] sm:$0xff]  }
   0x6   :  { %1118 = vmatprep.subr.bf16.mxu1 %v1208_v6  ;;  %v1216_v14 = vld [vmem:[%s1612_s0 + $0xd8] sm:$0xff]   ;;  %v1220_v18 = vld [vmem:[%s1612_s0 + $0xe0] sm:$0xff]   ;;  %v1224_v22 = vld [vmem:[%s1612_s0 + $0xe8] sm:$0xff]  }
   0x7   :  { %v1217_v15 = vld [vmem:[%s1612_s0 + $0x18] sm:$0xff]   ;;  %v1221_v19 = vld [vmem:[%s1612_s0 + $0x20] sm:$0xff]   ;;  %v1225_v23 = vld [vmem:[%s1612_s0 + $0x28] sm:$0xff]  }
   0x8   :  { %1091 = vmatpush3.bf16.msra.mxu0 %v1209_v7  ;;  %v1218_v16 = vld [vmem:[%s1612_s0 + $0x98] sm:$0xff]   ;;  %v1222_v20 = vld [vmem:[%s1612_s0 + $0xa0] sm:$0xff]   ;;  %v1226_v24 = vld [vmem:[%s1612_s0 + $0xa8] sm:$0xff]  }
   0x9   :  { %1119 = vmatpush3.bf16.msra.mxu1 %v1210_v8  ;;  %1092 = vmatprep.subr.bf16.mxu0 %v1211_v9  ;;  %v1227_v25 = vld [vmem:[%s1612_s0 + $0x70] sm:$0xff]   ;;  %v1231_v29 = vld [vmem:[%s1612_s0 + $0x78] sm:$0xff]   ;;  %v21_v33 = vld [vmem:[%s1613_s1] sm:$0xff] }
   0xa   :  { %1120 = vmatprep.subr.bf16.mxu1 %v1212_v10  ;;  %v1228_v26 = vld [vmem:[%s1612_s0 + $0xf0] sm:$0xff]   ;;  %v1232_v30 = vld [vmem:[%s1612_s0 + $0xf8] sm:$0xff]   ;;  %v25_v34 = vld [vmem:[%s1613_s1 + $0x20] sm:$0xff] }
   0xb   :  { %v1229_v27 = vld [vmem:[%s1612_s0 + $0x30] sm:$0xff]   ;;  %v1233_v31 = vld [vmem:[%s1612_s0 + $0x38] sm:$0xff]   ;;  %v22_v35 = vld [vmem:[%s1613_s1 + $0x8] sm:$0xff]  ;;  %v989_v36 = vcombine.low %v21_v33, %v25_v34  ;;  %v990_v37 = vcombine.high %v21_v33, %v25_v34 }
   0xc   :  { %1093 = vmatpush3.bf16.msra.mxu0 %v1213_v11  ;;  %v1230_v28 = vld [vmem:[%s1612_s0 + $0xb0] sm:$0xff]   ;;  %v1234_v32 = vld [vmem:[%s1612_s0 + $0xb8] sm:$0xff]   ;;  %v26_v38 = vld [vmem:[%s1613_s1 + $0x28] sm:$0xff] }
   0xd   :  { %1121 = vmatpush3.bf16.msra.mxu1 %v1214_v12  ;;  %1094 = vmatprep.subr.bf16.mxu0 %v1215_v13  ;;  %v991_v39 = vcombine.low %v22_v35, %v26_v38  ;;  %v992_v40 = vcombine.high %v22_v35, %v26_v38  ;;  %v1235_v41 = vld [vmem:[%s1612_s0 + $0x140] sm:$0xff]   ;;  %v1239_v45 = vld [vmem:[%s1612_s0 + $0x148] sm:$0xff]   ;;  %v1243_v49 = vld [vmem:[%s1612_s0 + $0x150] sm:$0xff]  }
   0xe   :  { %1122 = vmatprep.subr.bf16.mxu1 %v1216_v14  ;;  %685 = vmatprep.mubr.bf16.mxu0 %v990_v37  ;;  %v1236_v42 = vld [vmem:[%s1612_s0 + $0x1c0] sm:$0xff]   ;;  %v1240_v46 = vld [vmem:[%s1612_s0 + $0x1c8] sm:$0xff]   ;;  %v1244_v50 = vld [vmem:[%s1612_s0 + $0x1d0] sm:$0xff]  }
   0xf   :  { %734 = vmatprep.mubr.bf16.mxu1 %v992_v40  ;;  %v1237_v43 = vld [vmem:[%s1612_s0 + $0x100] sm:$0xff]   ;;  %v1241_v47 = vld [vmem:[%s1612_s0 + $0x108] sm:$0xff]   ;;  %v1245_v51 = vld [vmem:[%s1612_s0 + $0x110] sm:$0xff]  }
  0x10   :  { %1095 = vmatpush3.bf16.msra.mxu0 %v1217_v15  ;;  %v1238_v44 = vld [vmem:[%s1612_s0 + $0x180] sm:$0xff]   ;;  %v1242_v48 = vld [vmem:[%s1612_s0 + $0x188] sm:$0xff]   ;;  %v1246_v52 = vld [vmem:[%s1612_s0 + $0x190] sm:$0xff]  }
  0x11   :  { %1123 = vmatpush3.bf16.msra.mxu1 %v1218_v16  ;;  %1096 = vmatprep.subr.bf16.mxu0 %v1219_v17  ;;  %v1247_v53 = vld [vmem:[%s1612_s0 + $0x158] sm:$0xff]   ;;  %v1251_v57 = vld [vmem:[%s1612_s0 + $0x160] sm:$0xff]   ;;  %v1255_v0 = vld [vmem:[%s1612_s0 + $0x168] sm:$0xff]  }
  0x12   :  { %1124 = vmatprep.subr.bf16.mxu1 %v1220_v18  ;;  %v1248_v54 = vld [vmem:[%s1612_s0 + $0x1d8] sm:$0xff]   ;;  %v1252_v58 = vld [vmem:[%s1612_s0 + $0x1e0] sm:$0xff]   ;;  %v1256_v2 = vld [vmem:[%s1612_s0 + $0x1e8] sm:$0xff]  }
  0x13   :  { %v1249_v55 = vld [vmem:[%s1612_s0 + $0x118] sm:$0xff]   ;;  %v1253_v59 = vld [vmem:[%s1612_s0 + $0x120] sm:$0xff]   ;;  %v1257_v3 = vld [vmem:[%s1612_s0 + $0x128] sm:$0xff]  }
  0x14   :  { %1097 = vmatpush3.bf16.msra.mxu0 %v1221_v19  ;;  %v1250_v56 = vld [vmem:[%s1612_s0 + $0x198] sm:$0xff]   ;;  %v1254_v60 = vld [vmem:[%s1612_s0 + $0x1a0] sm:$0xff]   ;;  %v1258_v4 = vld [vmem:[%s1612_s0 + $0x1a8] sm:$0xff]  }
  0x15   :  { %1125 = vmatpush3.bf16.msra.mxu1 %v1222_v20  ;;  %1098 = vmatprep.subr.bf16.mxu0 %v1223_v21  ;;  %v29_v61 = vld [vmem:[%s1613_s1 + $0x40] sm:$0xff]  ;;  %v30_v5 = vld [vmem:[%s1613_s1 + $0x48] sm:$0xff]  ;;  %v1259_v9 = vld [vmem:[%s1612_s0 + $0x170] sm:$0xff]  }
  0x16   :  { %1126 = vmatprep.subr.bf16.mxu1 %v1224_v22  ;;  %v33_v62 = vld [vmem:[%s1613_s1 + $0x60] sm:$0xff]  ;;  %v34_v6 = vld [vmem:[%s1613_s1 + $0x68] sm:$0xff]  ;;  %v1260_v10 = vld [vmem:[%s1612_s0 + $0x1f0] sm:$0xff]  }
  0x17   :  { %v998_v63 = vcombine.high %v29_v61, %v33_v62  ;;  %v997_v1 = vcombine.low %v29_v61, %v33_v62  ;;  %v1000_v7 = vcombine.high %v30_v5, %v34_v6  ;;  %v999_v8 = vcombine.low %v30_v5, %v34_v6  ;;  %v1261_v11 = vld [vmem:[%s1612_s0 + $0x130] sm:$0xff]   ;;  %v1263_v13 = vld [vmem:[%s1612_s0 + $0x178] sm:$0xff]   ;;  %v166_v33 = vld [vmem:[%s1614_s2 + $0x8] sm:$0xff] }
  0x18   :  { %1099 = vmatpush3.bf16.msra.mxu0 %v1225_v23  ;;  %v1262_v12 = vld [vmem:[%s1612_s0 + $0x1b0] sm:$0xff]   ;;  %v1264_v14 = vld [vmem:[%s1612_s0 + $0x1f8] sm:$0xff]  }
  0x19   :  { %1127 = vmatpush3.bf16.msra.mxu1 %v1226_v24  ;;  %1100 = vmatprep.subr.bf16.mxu0 %v1227_v25  ;;  %v1265_v15 = vld [vmem:[%s1612_s0 + $0x138] sm:$0xff]   ;;  %v23_v17 = vld [vmem:[%s1613_s1 + $0x10] sm:$0xff] }
  0x1a   :  { %1128 = vmatprep.subr.bf16.mxu1 %v1228_v26  ;;  %v1266_v16 = vld [vmem:[%s1612_s0 + $0x1b8] sm:$0xff]   ;;  %v27_v18 = vld [vmem:[%s1613_s1 + $0x30] sm:$0xff] }
  0x1b   :  { %v24_v19 = vld [vmem:[%s1613_s1 + $0x18] sm:$0xff]  ;;  %v993_v21 = vcombine.low %v23_v17, %v27_v18  ;;  %v994_v22 = vcombine.high %v23_v17, %v27_v18  ;;  %v31_v25 = vld [vmem:[%s1613_s1 + $0x50] sm:$0xff] }
  0x1c   :  { %1101 = vmatpush3.bf16.msra.mxu0 %v1229_v27  ;;  %v28_v20 = vld [vmem:[%s1613_s1 + $0x38] sm:$0xff]  ;;  %v35_v26 = vld [vmem:[%s1613_s1 + $0x70] sm:$0xff] }
  0x1d   :  { %1129 = vmatpush3.bf16.msra.mxu1 %v1230_v28  ;;  %1102 = vmatprep.subr.bf16.mxu0 %v1231_v29  ;;  %v995_v23 = vcombine.low %v24_v19, %v28_v20  ;;  %v996_v24 = vcombine.high %v24_v19, %v28_v20  ;;  %v32_v27 = vld [vmem:[%s1613_s1 + $0x58] sm:$0xff]  ;;  %v1002_v28 = vcombine.high %v31_v25, %v35_v26 }
  0x1e   :  { %1130 = vmatprep.subr.bf16.mxu1 %v1232_v30  ;;  %v36_v29 = vld [vmem:[%s1613_s1 + $0x78] sm:$0xff]  ;;  %v1001_v35 = vcombine.low %v31_v25, %v35_v26 }
  0x1f   :  { %v1004_v30 = vcombine.high %v32_v27, %v36_v29  ;;  %v168_v34 = vld [vmem:[%s1614_s2 + $0x18] sm:$0xff] }
  0x20   :  { %1103 = vmatpush3.bf16.msra.mxu0 %v1233_v31  ;;  %v165_v31 = vld [vmem:[%s1614_s2] sm:$0xff] }
  0x21   :  { %1131 = vmatpush3.bf16.msra.mxu1 %v1234_v32  ;;  %1144 = vmatprep.subr.bf16.mxu0 %v1235_v41  ;;  %v167_v32 = vld [vmem:[%s1614_s2 + $0x10] sm:$0xff] }
  0x22   :  { %1172 = vmatprep.subr.bf16.mxu1 %v1236_v42  ;;  %171 = vperm.xlu0 %1201, %v165_v31  }
  0x23   :  { %686 = vmatmul.mubr.bf16.vlgmr.msra.gmra.mrb[0].mxu0 %v989_v36  ;;  %181 = vperm.xlu1 %1202, %v167_v32   ;;  %v1003_v36 = vcombine.low %v32_v27, %v36_v29 }
  0x24   :  { %735 = vmatmul.mubr.bf16.vlgmr.msra.gmra.mrb[0].mxu1 %v991_v39  ;;  %1145 = vmatpush3.bf16.msra.mxu0 %v1237_v43 }
  0x25   :  { %1173 = vmatpush3.bf16.msra.mxu1 %v1238_v44  ;;  %1146 = vmatprep.subr.bf16.mxu0 %v1239_v45 }
  0x26   :  { %1174 = vmatprep.subr.bf16.mxu1 %v1240_v46  ;;  %693 = vmatprep.mubr.bf16.mxu0 %v998_v63 }
  0x27   :  { %742 = vmatprep.mubr.bf16.mxu1 %v1000_v7  ;;  %176 = vperm.xlu0 %1201, %v166_v33  }
  0x28   :  { %1147 = vmatpush3.bf16.msra.mxu0 %v1241_v47  ;;  %186 = vperm.xlu1 %1202, %v168_v34  }
  0x29   :  { %1175 = vmatpush3.bf16.msra.mxu1 %v1242_v48  ;;  %1148 = vmatprep.subr.bf16.mxu0 %v1243_v49 }
  0x2a   :  { %1176 = vmatprep.subr.bf16.mxu1 %v1244_v50 }
  0x2b   :  { %694 = vmatmul.mubr.bf16.gmra.mrb[4].mxu0 %v997_v1 }
  0x2c   :  { %1149 = vmatpush3.bf16.msra.mxu0 %v1245_v51  ;;  %743 = vmatmul.mubr.bf16.gmra.mrb[4].mxu1 %v999_v8 }
  0x2d   :  { %1177 = vmatpush3.bf16.msra.mxu1 %v1246_v52  ;;  %1150 = vmatprep.subr.bf16.mxu0 %v1247_v53 }
  0x2e   :  { %1178 = vmatprep.subr.bf16.mxu1 %v1248_v54  ;;  %783 = vmatprep.mubr.bf16.mxu0 %v994_v22 }
  0x2f   :  { %832 = vmatprep.mubr.bf16.mxu1 %v996_v24 }
  0x30   :  { %1151 = vmatpush3.bf16.msra.mxu0 %v1249_v55 }
  0x31   :  { %1179 = vmatpush3.bf16.msra.mxu1 %v1250_v56  ;;  %1152 = vmatprep.subr.bf16.mxu0 %v1251_v57 }
  0x32   :  { %1180 = vmatprep.subr.bf16.mxu1 %v1252_v58 }
  0x34   :  { %1153 = vmatpush3.bf16.msra.mxu0 %v1253_v59 }
  0x35   :  { %1181 = vmatpush3.bf16.msra.mxu1 %v1254_v60  ;;  %1154 = vmatprep.subr.bf16.mxu0 %v1255_v0 }
  0x36   :  { %1182 = vmatprep.subr.bf16.mxu1 %v1256_v2 }
  0x38   :  { %1155 = vmatpush3.bf16.msra.mxu0 %v1257_v3 }
  0x39   :  { %1183 = vmatpush3.bf16.msra.mxu1 %v1258_v4  ;;  %1156 = vmatprep.subr.bf16.mxu0 %v1259_v9 }
  0x3a   :  { %1184 = vmatprep.subr.bf16.mxu1 %v1260_v10 }
  0x3c   :  { %1157 = vmatpush3.bf16.msra.mxu0 %v1261_v11 }
  0x3d   :  { %1185 = vmatpush3.bf16.msra.mxu1 %v1262_v12  ;;  %1158 = vmatprep.subr.bf16.mxu0 %v1263_v13 }
  0x3e   :  { %1186 = vmatprep.subr.bf16.mxu1 %v1264_v14 }
  0x40   :  { %1159 = vmatpush3.bf16.msra.mxu0 %v1265_v15 }
  0x41   :  { %1187 = vmatpush3.bf16.msra.mxu1 %v1266_v16 }
  0x43   :  { %784 = vmatmul.mubr.bf16.vlgmr.msra.gmra.mrb[8].mxu0 %v993_v21 }
  0x44   :  { %833 = vmatmul.mubr.bf16.vlgmr.msra.gmra.mrb[8].mxu1 %v995_v23  ;;  %791 = vmatprep.mubr.bf16.mxu0 %v1002_v28 }
  0x45   :  { %840 = vmatprep.mubr.bf16.mxu1 %v1004_v30 }
  0x4b   :  { %792 = vmatmul.mubr.bf16.gmra.mrb[12].mxu0 %v1001_v35 }
  0x4c   :  { %841 = vmatmul.mubr.bf16.gmra.mrb[12].mxu1 %v1003_v36 }
  0xa1   :  { %v172_v37 = vpop.permute.xlu0 %171 }
  0xa2   :  { %v182_v55 = vpop.permute.xlu1 %181 }
  0xa6   :  { %v177_v39 = vpop.permute.xlu0 %176 }
  0xa7   :  { %v187_v62 = vpop.permute.xlu1 %186 }
  0xf6   :  { %v1104_v38 = vpop.f32.mrb[0].mxu0 }
  0xf7   :  { %v1132_v40 = vpop.f32.mrb[0].mxu1  ;;  %v1105_v41 = vpop.f32.mrb[1].mxu0 }
  0xf8   :  { %v1106_v42 = vadd.f32 %v1105_v41, %v1104_v38  ;;  %v1133_v43 = vpop.f32.mrb[1].mxu1  ;;  %v1107_v44 = vpop.f32.mrb[2].mxu0 }
  0xf9   :  { %v1134_v45 = vadd.f32 %v1133_v43, %v1132_v40  ;;  %v1135_v46 = vpop.f32.mrb[2].mxu1  ;;  %v1108_v47 = vpop.f32.mrb[3].mxu0 }
  0xfa   :  { %v688_v48 = vadd.f32 %v1106_v42, %v172_v37  ;;  %v1109_v49 = vadd.f32 %v1108_v47, %v1107_v44  ;;  %v1136_v50 = vpop.f32.mrb[3].mxu1 }
  0xfb   :  { %v1137_v51 = vadd.f32 %v1136_v50, %v1135_v46 }
  0xfc   :  { %v737_v52 = vadd.f32 %v1134_v45, %v688_v48  ;;  %v691_v53 = vadd.f32 %v1109_v49, %v177_v39 }
  0xfe   :  { %v740_v54 = vadd.f32 %v1137_v51, %v691_v53  ;;  %v1110_v56 = vpop.f32.mrb[4].mxu0 }
  0xff   :  { %v1111_v57 = vpop.f32.mrb[5].mxu0  ;;  %v1138_v0 = vpop.f32.mrb[4].mxu1 }
 0x100   :  { %v1112_v58 = vadd.f32 %v1111_v57, %v1110_v56  ;;  %v1113_v59 = vpop.f32.mrb[6].mxu0  ;;  %v1139_v1 = vpop.f32.mrb[5].mxu1 }
 0x101   :  { %v1114_v60 = vpop.f32.mrb[7].mxu0  ;;  %v1140_v2 = vadd.f32 %v1139_v1, %v1138_v0  ;;  %v1141_v3 = vpop.f32.mrb[6].mxu1 }
 0x102   :  { %v1115_v61 = vadd.f32 %v1114_v60, %v1113_v59  ;;  %v696_v63 = vadd.f32 %v1112_v58, %v182_v55  ;;  %v1142_v5 = vpop.f32.mrb[7].mxu1 }
 0x103   :  { %v1143_v7 = vadd.f32 %v1142_v5, %v1141_v3 }
 0x104   :  { %v699_v4 = vadd.f32 %v1115_v61, %v187_v62  ;;  %v745_v6 = vadd.f32 %v1140_v2, %v696_v63 }
 0x106   :  { %v748_v8 = vadd.f32 %v1143_v7, %v699_v4 }
 0x116   :  { %v1160_v9 = vpop.f32.mrb[8].mxu0 }
 0x117   :  { %v1188_v10 = vpop.f32.mrb[8].mxu1  ;;  %v1161_v11 = vpop.f32.mrb[9].mxu0 }
 0x118   :  { %v1189_v12 = vpop.f32.mrb[9].mxu1  ;;  %v1162_v13 = vadd.f32 %v1161_v11, %v1160_v9  ;;  %v1163_v15 = vpop.f32.mrb[10].mxu0  ;;  %v885_v11 = vld [vmem:[%s1615_s3] sm:$0xff] }
 0x119   :  { %v1190_v14 = vadd.f32 %v1189_v12, %v1188_v10  ;;  %v1191_v16 = vpop.f32.mrb[10].mxu1  ;;  %v1164_v17 = vpop.f32.mrb[11].mxu0 }
 0x11a   :  { %v1192_v18 = vpop.f32.mrb[11].mxu1  ;;  %v786_v19 = vadd.f32 %v1162_v13, %v737_v52  ;;  %v1165_v20 = vadd.f32 %v1164_v17, %v1163_v15  ;;  %v901_v17 = vld [vmem:[%s1616_s4] sm:$0xff] }
 0x11b   :  { %v1193_v21 = vadd.f32 %v1192_v18, %v1191_v16  ;;  %v902_v16 = vld [vmem:[%s1616_s4 + $0x8] sm:$0xff]  ;;  %v887_v18 = vld [vmem:[%s1615_s3 + $0x10] sm:$0xff] }
 0x11c   :  { %v1558_v22 = vadd.f32 %v1190_v14, %v786_v19  ;;  %v789_v23 = vadd.f32 %v1165_v20, %v740_v54 }
 0x11e   :  { %v1560_v24 = vadd.f32 %v1193_v21, %v789_v23  ;;  %v1166_v25 = vpop.f32.mrb[12].mxu0  ;;  %849 = vadd.xlane.f32.xlu0 %v1558_v22  ;;  %v857_v39 = vmul.f32 %v1558_v22, %v1558_v22 }
 0x11f   :  { %v1194_v26 = vpop.f32.mrb[12].mxu1  ;;  %v1167_v27 = vpop.f32.mrb[13].mxu0 }
 0x120   :  { %v1195_v28 = vpop.f32.mrb[13].mxu1  ;;  %v1168_v29 = vadd.f32 %v1167_v27, %v1166_v25  ;;  %v1169_v30 = vpop.f32.mrb[14].mxu0  ;;  %851 = vadd.xlane.f32.xlu1 %v1560_v24  ;;  %v858_v33 = vmul.f32 %v1560_v24, %v1560_v24 }
 0x121   :  { %v1196_v31 = vadd.f32 %v1195_v28, %v1194_v26  ;;  %v1197_v32 = vpop.f32.mrb[14].mxu1  ;;  %v1170_v34 = vpop.f32.mrb[15].mxu0  ;;  %v903_v26 = vld [vmem:[%s1616_s4 + $0x10] sm:$0xff]  ;;  %v888_v28 = vld [vmem:[%s1615_s3 + $0x18] sm:$0xff] }
 0x122   :  { %v1198_v35 = vpop.f32.mrb[15].mxu1  ;;  %v794_v36 = vadd.f32 %v1168_v29, %v745_v6  ;;  %v1171_v37 = vadd.f32 %v1170_v34, %v1169_v30  ;;  %863 = vadd.xlane.f32.xlu0 %v858_v33  ;;  %v904_v33 = vld [vmem:[%s1616_s4 + $0x18] sm:$0xff] }
 0x123   :  { %v1199_v38 = vadd.f32 %v1198_v35, %v1197_v32 }
 0x124   :  { %v1568_v40 = vadd.f32 %v1196_v31, %v794_v36  ;;  %v797_v41 = vadd.f32 %v1171_v37, %v748_v8  ;;  %861 = vadd.xlane.f32.xlu1 %v857_v39  ;;  %v886_v8 = vld [vmem:[%s1615_s3 + $0x8] sm:$0xff] }
 0x126   :  { %v1570_v42 = vadd.f32 %v1199_v38, %v797_v41  ;;  %853 = vadd.xlane.f32.xlu0 %v1568_v40  ;;  %v859_v43 = vmul.f32 %v1568_v40, %v1568_v40 }
 0x128   :  { %865 = vadd.xlane.f32.xlu1 %v859_v43  ;;  %v860_v44 = vmul.f32 %v1570_v42, %v1570_v42 }
 0x12a   :  { %855 = vadd.xlane.f32.xlu0 %v1570_v42 }
 0x12e   :  { %867 = vadd.xlane.f32.xlu0 %v860_v44 }
 0x1ab   :  { %v850_v45 = vpop.xlane.xlu0 %849 }
 0x1ac   :  { %v869_v47 = vmul.f32 0.0078125, %v850_v45 }
 0x1ad   :  { %v852_v46 = vpop.xlane.xlu1 %851 }
 0x1ae   :  { %v870_v48 = vmul.f32 0.0078125, %v852_v46  ;;  %v877_v53 = vmul.f32 %v869_v47, %v869_v47 }
 0x1af   :  { %v864_v49 = vpop.xlane.xlu0 %863 }
 0x1b0   :  { %v878_v50 = vmul.f32 %v870_v48, %v870_v48  ;;  %v874_v51 = vmul.f32 0.0078125, %v864_v49 }
 0x1b1   :  { %v862_v52 = vpop.xlane.xlu1 %861 }
 0x1b2   :  { %v882_v54 = vsub.f32 %v874_v51, %v878_v50  ;;  %v873_v55 = vmul.f32 0.0078125, %v862_v52 }
 0x1b3   :  { %v854_v56 = vpop.xlane.xlu0 %853 }
 0x1b4   :  { %v890_v57 = vadd.f32 1e-05, %v882_v54  ;;  %v881_v58 = vsub.f32 %v873_v55, %v877_v53  ;;  %v871_v59 = vmul.f32 0.0078125, %v854_v56 }
 0x1b5   :  { %v866_v60 = vpop.xlane.xlu1 %865 }
 0x1b6   :  { %1267 = vrsqrt.f32 %v890_v57  ;;  %v889_v61 = vadd.f32 1e-05, %v881_v58  ;;  %v879_v62 = vmul.f32 %v871_v59, %v871_v59  ;;  %v875_v63 = vmul.f32 0.0078125, %v866_v60 }
 0x1b7   :  { %v856_v0 = vpop.xlane.xlu0 %855 }
 0x1b8   :  { %1269 = vrsqrt.f32 %v889_v61  ;;  %v883_v1 = vsub.f32 %v875_v63, %v879_v62  ;;  %v872_v2 = vmul.f32 0.0078125, %v856_v0 }
 0x1ba   :  { %v891_v3 = vadd.f32 1e-05, %v883_v1  ;;  %v880_v5 = vmul.f32 %v872_v2, %v872_v2 }
 0x1bb   :  { %v868_v4 = vpop.xlane.xlu0 %867 }
 0x1bc   :  { %1271 = vrsqrt.f32 %v891_v3  ;;  %v876_v6 = vmul.f32 0.0078125, %v868_v4 }
 0x1be   :  { %v884_v7 = vsub.f32 %v876_v6, %v880_v5 }
 0x1c0   :  { %v1268_v9 = vpop.eup %1267  ;;  %v892_v10 = vadd.f32 1e-05, %v884_v7 }
 0x1c1   :  { %v898_v12 = vmul.f32 %v1268_v9, %v886_v8 }
 0x1c2   :  { %v1270_v13 = vpop.eup %1269  ;;  %1273 = vrsqrt.f32 %v892_v10 }
 0x1c3   :  { %920 = vperm.xlu0 %1201, %v898_v12   ;;  %v897_v14 = vmul.f32 %v1270_v13, %v885_v11  ;;  %v906_v15 = vmul.f32 %v898_v12, %v870_v48 }
 0x1c5   :  { %915 = vperm.xlu1 %1202, %v897_v14   ;;  %v905_v19 = vmul.f32 %v897_v14, %v869_v47  ;;  %v910_v21 = vsub.f32 %v902_v16, %v906_v15 }
 0x1c6   :  { %v1272_v20 = vpop.eup %1271 }
 0x1c7   :  { %v909_v23 = vsub.f32 %v901_v17, %v905_v19  ;;  %v899_v25 = vmul.f32 %v1272_v20, %v887_v18 }
 0x1c9   :  { %944 = vperm.xlu1 %1202, %v910_v21   ;;  %939 = vperm.xlu0 %1201, %v909_v23   ;;  %v907_v27 = vmul.f32 %v899_v25, %v871_v59 }
 0x1cb   :  { %v911_v29 = vsub.f32 %v903_v26, %v907_v27 }
 0x1cc   :  { %v1274_v30 = vpop.eup %1273 }
 0x1cd   :  { %925 = vperm.xlu1 %1202, %v899_v25   ;;  %949 = vperm.xlu0 %1201, %v911_v29   ;;  %v900_v31 = vmul.f32 %v1274_v30, %v888_v28 }
 0x1cf   :  { %v908_v32 = vmul.f32 %v900_v31, %v872_v2 }
 0x1d1   :  { %930 = vperm.xlu1 %1202, %v900_v31   ;;  %v912_v34 = vsub.f32 %v904_v33, %v908_v32 }
 0x1d5   :  { %954 = vperm.xlu1 %1202, %v912_v34  }
 0x242   :  { %v921_v35 = vpop.permute.xlu0 %920 }
 0x243   :  { %v934_v37 = vmul.f32 %v921_v35, %v1560_v24 }
 0x244   :  { %v916_v36 = vpop.permute.xlu1 %915 }
 0x245   :  { %v933_v38 = vmul.f32 %v916_v36, %v1558_v22 }
 0x248   :  { %v940_v39 = vpop.permute.xlu0 %939  ;;  %v945_v41 = vpop.permute.xlu1 %944 }
 0x249   :  { %v957_v43 = vadd.f32 %v940_v39, %v933_v38  ;;  %v958_v44 = vadd.f32 %v945_v41, %v934_v37 }
 0x24b   :  { %v961_v45 = vmax.f32 %v957_v43, 0.0  ;;  %v962_v46 = vmax.f32 %v958_v44, 0.0 }
 0x24c   :  { %v926_v47 = vpop.permute.xlu1 %925  ;;  %v950_v51 = vpop.permute.xlu0 %949 }
 0x24d   :  { %v1080_v48 = vpack.c.bf16 %v962_v46, %v961_v45  ;;  %v935_v49 = vmul.f32 %v926_v47, %v1568_v40 }
 0x24f   :  { %1081 = vst [vmem:[%s1617_s5] sm:$0xff] %v1080_v48   ;;  %v959_v52 = vadd.f32 %v950_v51, %v935_v49 }
 0x250   :  { %v931_v50 = vpop.permute.xlu1 %930 }
 0x251   :  { %v936_v24 = vmul.f32 %v931_v50, %v1570_v42  ;;  %v963_v54 = vmax.f32 %v959_v52, 0.0 }
 0x254   :  { %v955_v22 = vpop.permute.xlu1 %954 }
 0x255   :  { %v960_v53 = vadd.f32 %v955_v22, %v936_v24 }
 0x257   :  { %v964_v55 = vmax.f32 %v960_v53, 0.0 }
 0x259   :  { %v1085_v56 = vpack.c.bf16 %v964_v55, %v963_v54 }
 0x25b   :  { %1087 = vst [vmem:[%s1617_s5 + $0x8] sm:$0xff] %v1085_v56  }

// kernel: generator_forward.6
= control target key start
LH: loop header
LB: loop body
LE: loop exit
PB: predicated region body
PF: predicated region fallthrough
CT: control target
= control target key end

     0   :  { %v1483_v8 = vmov 0   ;;  %s1988_s0 = inlined_call_operand.vmem [shape: bf16[512,512], index: 0, kind: input, shape index: {}]   ;;  %s1989_s1 = inlined_call_operand.vmem [shape: bf16[16,512], index: 1, kind: input, shape index: {}]   ;;  %s1990_s2 = inlined_call_operand.vmem [shape: f32[16,1], index: 2, kind: input, shape index: {}]   ;;  %s1991_s3 = inlined_call_operand.vmem [shape: f32[16,1], index: 3, kind: input, shape index: {}]   ;;  %s1992_s4 = inlined_call_operand.vmem [shape: f32[16,1], index: 4, kind: input, shape index: {}]   ;;  %s1993_s5 = inlined_call_operand.vmem [shape: bf16[16,512], index: 5, kind: output, shape index: {}]  }
   0x1   :  { %v1281_v0 = vld [vmem:[%s1988_s0 + $0x4] ss:$16 sps:$4 sm:$0xff]   ;;  %v1283_v1 = vld [vmem:[%s1988_s0 + $0xc] ss:$16 sps:$4 sm:$0xff]   ;;  %v1285_v2 = vld [vmem:[%s1988_s0] ss:$16 sps:$4 sm:$0xff]   ;;  %1279 = vset.pattern.permute.xlu0 %v1483_v8  ;;  %1280 = vset.pattern.permute.xlu1 %v1483_v8 }
   0x2   :  { %824 = vmatprep.subr.bf16.mxu0 %v1281_v0  ;;  %v1286_v3 = vld [vmem:[%s1988_s0 + $0x8] ss:$16 sps:$4 sm:$0xff]   ;;  %910 = vmatprep.subr.bf16.mxu1 %v1283_v1  ;;  %v1287_v4 = vld [vmem:[%s1988_s0 + $0x24] ss:$16 sps:$4 sm:$0xff]   ;;  %v1289_v5 = vld [vmem:[%s1988_s0 + $0x2c] ss:$16 sps:$4 sm:$0xff]  }
   0x3   :  { %825 = vmatpush1.bf16.msra.mxu0 %v1285_v2  ;;  %911 = vmatpush1.bf16.msra.mxu1 %v1286_v3  ;;  %v1291_v6 = vld [vmem:[%s1988_s0 + $0x20] ss:$16 sps:$4 sm:$0xff]   ;;  %v1292_v7 = vld [vmem:[%s1988_s0 + $0x28] ss:$16 sps:$4 sm:$0xff]   ;;  %v1293_v9 = vld [vmem:[%s1988_s0 + $0x44] ss:$16 sps:$4 sm:$0xff]  }
   0x4   :  { %826 = vmatprep.subr.bf16.mxu0 %v1287_v4  ;;  %912 = vmatprep.subr.bf16.mxu1 %v1289_v5  ;;  %v1295_v10 = vld [vmem:[%s1988_s0 + $0x4c] ss:$16 sps:$4 sm:$0xff]   ;;  %v1297_v11 = vld [vmem:[%s1988_s0 + $0x40] ss:$16 sps:$4 sm:$0xff]   ;;  %v1298_v12 = vld [vmem:[%s1988_s0 + $0x48] ss:$16 sps:$4 sm:$0xff]  }
   0x5   :  { %v1299_v13 = vld [vmem:[%s1988_s0 + $0x64] ss:$16 sps:$4 sm:$0xff]   ;;  %v1301_v14 = vld [vmem:[%s1988_s0 + $0x6c] ss:$16 sps:$4 sm:$0xff]   ;;  %v1303_v15 = vld [vmem:[%s1988_s0 + $0x60] ss:$16 sps:$4 sm:$0xff]  }
   0x6   :  { %v1304_v16 = vld [vmem:[%s1988_s0 + $0x68] ss:$16 sps:$4 sm:$0xff]   ;;  %v1305_v17 = vld [vmem:[%s1988_s0 + $0x84] ss:$16 sps:$4 sm:$0xff]   ;;  %v1307_v18 = vld [vmem:[%s1988_s0 + $0x8c] ss:$16 sps:$4 sm:$0xff]  }
   0x7   :  { %827 = vmatpush1.bf16.msra.mxu0 %v1291_v6  ;;  %913 = vmatpush1.bf16.msra.mxu1 %v1292_v7  ;;  %v1309_v19 = vld [vmem:[%s1988_s0 + $0x80] ss:$16 sps:$4 sm:$0xff]   ;;  %v1310_v20 = vld [vmem:[%s1988_s0 + $0x88] ss:$16 sps:$4 sm:$0xff]   ;;  %v1311_v21 = vld [vmem:[%s1988_s0 + $0xa4] ss:$16 sps:$4 sm:$0xff]  }
   0x8   :  { %828 = vmatprep.subr.bf16.mxu0 %v1293_v9  ;;  %914 = vmatprep.subr.bf16.mxu1 %v1295_v10  ;;  %v1313_v22 = vld [vmem:[%s1988_s0 + $0xac] ss:$16 sps:$4 sm:$0xff]   ;;  %v1315_v23 = vld [vmem:[%s1988_s0 + $0xa0] ss:$16 sps:$4 sm:$0xff]   ;;  %v1316_v24 = vld [vmem:[%s1988_s0 + $0xa8] ss:$16 sps:$4 sm:$0xff]  }
   0x9   :  { %v1317_v25 = vld [vmem:[%s1988_s0 + $0xc4] ss:$16 sps:$4 sm:$0xff]   ;;  %v1319_v26 = vld [vmem:[%s1988_s0 + $0xcc] ss:$16 sps:$4 sm:$0xff]   ;;  %v1321_v27 = vld [vmem:[%s1988_s0 + $0xc0] ss:$16 sps:$4 sm:$0xff]  }
   0xa   :  { %v1322_v28 = vld [vmem:[%s1988_s0 + $0xc8] ss:$16 sps:$4 sm:$0xff]   ;;  %v1323_v29 = vld [vmem:[%s1988_s0 + $0xe4] ss:$16 sps:$4 sm:$0xff]   ;;  %v1325_v30 = vld [vmem:[%s1988_s0 + $0xec] ss:$16 sps:$4 sm:$0xff]  }
   0xb   :  { %829 = vmatpush1.bf16.msra.mxu0 %v1297_v11  ;;  %915 = vmatpush1.bf16.msra.mxu1 %v1298_v12  ;;  %v1327_v31 = vld [vmem:[%s1988_s0 + $0xe0] ss:$16 sps:$4 sm:$0xff]   ;;  %v1328_v32 = vld [vmem:[%s1988_s0 + $0xe8] ss:$16 sps:$4 sm:$0xff]   ;;  %v1329_v33 = vld [vmem:[%s1988_s0 + $0x104] ss:$16 sps:$4 sm:$0xff]  }
   0xc   :  { %830 = vmatprep.subr.bf16.mxu0 %v1299_v13  ;;  %916 = vmatprep.subr.bf16.mxu1 %v1301_v14  ;;  %v1331_v34 = vld [vmem:[%s1988_s0 + $0x10c] ss:$16 sps:$4 sm:$0xff]   ;;  %v1333_v35 = vld [vmem:[%s1988_s0 + $0x100] ss:$16 sps:$4 sm:$0xff]   ;;  %v1334_v36 = vld [vmem:[%s1988_s0 + $0x108] ss:$16 sps:$4 sm:$0xff]  }
   0xd   :  { %v1335_v37 = vld [vmem:[%s1988_s0 + $0x124] ss:$16 sps:$4 sm:$0xff]   ;;  %v1337_v38 = vld [vmem:[%s1988_s0 + $0x12c] ss:$16 sps:$4 sm:$0xff]   ;;  %v1339_v39 = vld [vmem:[%s1988_s0 + $0x120] ss:$16 sps:$4 sm:$0xff]  }
   0xe   :  { %v1340_v40 = vld [vmem:[%s1988_s0 + $0x128] ss:$16 sps:$4 sm:$0xff]   ;;  %v1341_v41 = vld [vmem:[%s1988_s0 + $0x144] ss:$16 sps:$4 sm:$0xff]   ;;  %v1343_v42 = vld [vmem:[%s1988_s0 + $0x14c] ss:$16 sps:$4 sm:$0xff]  }
   0xf   :  { %831 = vmatpush1.bf16.msra.mxu0 %v1303_v15  ;;  %917 = vmatpush1.bf16.msra.mxu1 %v1304_v16  ;;  %v1345_v43 = vld [vmem:[%s1988_s0 + $0x140] ss:$16 sps:$4 sm:$0xff]   ;;  %v1346_v44 = vld [vmem:[%s1988_s0 + $0x148] ss:$16 sps:$4 sm:$0xff]   ;;  %v1347_v45 = vld [vmem:[%s1988_s0 + $0x164] ss:$16 sps:$4 sm:$0xff]  }
  0x10   :  { %832 = vmatprep.subr.bf16.mxu0 %v1305_v17  ;;  %918 = vmatprep.subr.bf16.mxu1 %v1307_v18  ;;  %v1349_v46 = vld [vmem:[%s1988_s0 + $0x16c] ss:$16 sps:$4 sm:$0xff]   ;;  %v1351_v47 = vld [vmem:[%s1988_s0 + $0x160] ss:$16 sps:$4 sm:$0xff]   ;;  %v1352_v48 = vld [vmem:[%s1988_s0 + $0x168] ss:$16 sps:$4 sm:$0xff]  }
  0x11   :  { %v1379_v49 = vld [vmem:[%s1989_s1 + $0x4] ss:$16 sps:$4 sm:$0xff]   ;;  %v1355_v51 = vld [vmem:[%s1988_s0 + $0x18c] ss:$16 sps:$4 sm:$0xff]   ;;  %v1357_v52 = vld [vmem:[%s1988_s0 + $0x180] ss:$16 sps:$4 sm:$0xff]  }
  0x12   :  { %v1353_v50 = vld [vmem:[%s1988_s0 + $0x184] ss:$16 sps:$4 sm:$0xff]   ;;  %856 = vmatprep.mubr.bf16.mxu0 %v1379_v49  ;;  %942 = vmatprep.mubr.bf16.mxu1 %v1379_v49  ;;  %v1358_v53 = vld [vmem:[%s1988_s0 + $0x188] ss:$16 sps:$4 sm:$0xff]   ;;  %v1361_v55 = vld [vmem:[%s1988_s0 + $0x1ac] ss:$16 sps:$4 sm:$0xff]  }
  0x13   :  { %833 = vmatpush1.bf16.msra.mxu0 %v1309_v19  ;;  %919 = vmatpush1.bf16.msra.mxu1 %v1310_v20  ;;  %v1359_v54 = vld [vmem:[%s1988_s0 + $0x1a4] ss:$16 sps:$4 sm:$0xff]   ;;  %v1363_v56 = vld [vmem:[%s1988_s0 + $0x1a0] ss:$16 sps:$4 sm:$0xff]   ;;  %v1364_v57 = vld [vmem:[%s1988_s0 + $0x1a8] ss:$16 sps:$4 sm:$0xff]  }
  0x14   :  { %834 = vmatprep.subr.bf16.mxu0 %v1311_v21  ;;  %920 = vmatprep.subr.bf16.mxu1 %v1313_v22  ;;  %v1365_v58 = vld [vmem:[%s1988_s0 + $0x1c4] ss:$16 sps:$4 sm:$0xff]   ;;  %v1367_v59 = vld [vmem:[%s1988_s0 + $0x1cc] ss:$16 sps:$4 sm:$0xff]   ;;  %v1369_v60 = vld [vmem:[%s1988_s0 + $0x1c0] ss:$16 sps:$4 sm:$0xff]  }
  0x15   :  { %v1370_v61 = vld [vmem:[%s1988_s0 + $0x1c8] ss:$16 sps:$4 sm:$0xff]   ;;  %v1371_v62 = vld [vmem:[%s1988_s0 + $0x1e4] ss:$16 sps:$4 sm:$0xff]   ;;  %v1373_v63 = vld [vmem:[%s1988_s0 + $0x1ec] ss:$16 sps:$4 sm:$0xff]  }
  0x16   :  { %v1375_v0 = vld [vmem:[%s1988_s0 + $0x1e0] ss:$16 sps:$4 sm:$0xff]   ;;  %v1376_v1 = vld [vmem:[%s1988_s0 + $0x1e8] ss:$16 sps:$4 sm:$0xff]   ;;  %v1382_v2 = vld [vmem:[%s1988_s0 + $0x204] ss:$16 sps:$4 sm:$0xff]  }
  0x17   :  { %835 = vmatpush1.bf16.msra.mxu0 %v1315_v23  ;;  %921 = vmatpush1.bf16.msra.mxu1 %v1316_v24  ;;  %v1385_v3 = vld [vmem:[%s1988_s0 + $0x20c] ss:$16 sps:$4 sm:$0xff]   ;;  %v1377_v4 = vld [vmem:[%s1989_s1] ss:$16 sps:$4 sm:$0xff]   ;;  %v1383_v6 = vld [vmem:[%s1988_s0 + $0x208] ss:$16 sps:$4 sm:$0xff]  }
  0x18   :  { %836 = vmatprep.subr.bf16.mxu0 %v1317_v25  ;;  %922 = vmatprep.subr.bf16.mxu1 %v1319_v26  ;;  %v1380_v5 = vld [vmem:[%s1988_s0 + $0x200] ss:$16 sps:$4 sm:$0xff]   ;;  %v1388_v7 = vld [vmem:[%s1988_s0 + $0x224] ss:$16 sps:$4 sm:$0xff]   ;;  %v1391_v8 = vld [vmem:[%s1988_s0 + $0x22c] ss:$16 sps:$4 sm:$0xff]  }
  0x19   :  { %v1386_v9 = vld [vmem:[%s1988_s0 + $0x220] ss:$16 sps:$4 sm:$0xff]   ;;  %v1389_v10 = vld [vmem:[%s1988_s0 + $0x228] ss:$16 sps:$4 sm:$0xff]   ;;  %v1394_v11 = vld [vmem:[%s1988_s0 + $0x244] ss:$16 sps:$4 sm:$0xff]  }
  0x1a   :  { %v1397_v12 = vld [vmem:[%s1988_s0 + $0x24c] ss:$16 sps:$4 sm:$0xff]   ;;  %v1392_v13 = vld [vmem:[%s1988_s0 + $0x240] ss:$16 sps:$4 sm:$0xff]   ;;  %v1395_v14 = vld [vmem:[%s1988_s0 + $0x248] ss:$16 sps:$4 sm:$0xff]  }
  0x1b   :  { %837 = vmatpush1.bf16.msra.mxu0 %v1321_v27  ;;  %923 = vmatpush1.bf16.msra.mxu1 %v1322_v28  ;;  %v1400_v15 = vld [vmem:[%s1988_s0 + $0x264] ss:$16 sps:$4 sm:$0xff]   ;;  %v1403_v16 = vld [vmem:[%s1988_s0 + $0x26c] ss:$16 sps:$4 sm:$0xff]   ;;  %v1398_v17 = vld [vmem:[%s1988_s0 + $0x260] ss:$16 sps:$4 sm:$0xff]  }
  0x1c   :  { %838 = vmatprep.subr.bf16.mxu0 %v1323_v29  ;;  %924 = vmatprep.subr.bf16.mxu1 %v1325_v30  ;;  %v1401_v18 = vld [vmem:[%s1988_s0 + $0x268] ss:$16 sps:$4 sm:$0xff]   ;;  %v1406_v19 = vld [vmem:[%s1988_s0 + $0x284] ss:$16 sps:$4 sm:$0xff]   ;;  %v1409_v20 = vld [vmem:[%s1988_s0 + $0x28c] ss:$16 sps:$4 sm:$0xff]  }
  0x1d   :  { %v1404_v21 = vld [vmem:[%s1988_s0 + $0x280] ss:$16 sps:$4 sm:$0xff]   ;;  %v1407_v22 = vld [vmem:[%s1988_s0 + $0x288] ss:$16 sps:$4 sm:$0xff]   ;;  %v1412_v23 = vld [vmem:[%s1988_s0 + $0x2a4] ss:$16 sps:$4 sm:$0xff]  }
  0x1e   :  { %v1415_v24 = vld [vmem:[%s1988_s0 + $0x2ac] ss:$16 sps:$4 sm:$0xff]   ;;  %v1410_v25 = vld [vmem:[%s1988_s0 + $0x2a0] ss:$16 sps:$4 sm:$0xff]   ;;  %v1413_v26 = vld [vmem:[%s1988_s0 + $0x2a8] ss:$16 sps:$4 sm:$0xff]  }
  0x1f   :  { %839 = vmatpush1.bf16.msra.mxu0 %v1327_v31  ;;  %925 = vmatpush1.bf16.msra.mxu1 %v1328_v32  ;;  %v1418_v27 = vld [vmem:[%s1988_s0 + $0x2c4] ss:$16 sps:$4 sm:$0xff]   ;;  %v1421_v28 = vld [vmem:[%s1988_s0 + $0x2cc] ss:$16 sps:$4 sm:$0xff]   ;;  %v1416_v30 = vld [vmem:[%s1988_s0 + $0x2c0] ss:$16 sps:$4 sm:$0xff]  }
  0x20   :  { %840 = vmatprep.subr.bf16.mxu0 %v1329_v33  ;;  %926 = vmatprep.subr.bf16.mxu1 %v1331_v34  ;;  %v1478_v29 = vld [vmem:[%s1989_s1 + $0xc] ss:$16 sps:$4 sm:$0xff]   ;;  %v1419_v31 = vld [vmem:[%s1988_s0 + $0x2c8] ss:$16 sps:$4 sm:$0xff]   ;;  %v152_v32 = vld [vmem:[%s1990_s2] sm:$0xff] }
  0x21   :  { %v1424_v33 = vld [vmem:[%s1988_s0 + $0x2e4] ss:$16 sps:$4 sm:$0xff]   ;;  %v1427_v34 = vld [vmem:[%s1988_s0 + $0x2ec] ss:$16 sps:$4 sm:$0xff]   ;;  %156 = vperm.xlu0 %1279, %v152_v32   ;;  %v1443_v49 = vld [vmem:[%s1988_s0 + $0x348] ss:$16 sps:$4 sm:$0xff]  }
  0x23   :  { %841 = vmatpush1.bf16.msra.mxu0 %v1333_v35  ;;  %927 = vmatpush1.bf16.msra.mxu1 %v1334_v36  ;;  %v1422_v35 = vld [vmem:[%s1988_s0 + $0x2e0] ss:$16 sps:$4 sm:$0xff]   ;;  %v1425_v36 = vld [vmem:[%s1988_s0 + $0x2e8] ss:$16 sps:$4 sm:$0xff]  }
  0x24   :  { %842 = vmatprep.subr.bf16.mxu0 %v1335_v37  ;;  %928 = vmatprep.subr.bf16.mxu1 %v1337_v38  ;;  %v153_v37 = vld [vmem:[%s1990_s2 + $0x8] sm:$0xff]  ;;  %v1430_v38 = vld [vmem:[%s1988_s0 + $0x304] ss:$16 sps:$4 sm:$0xff]  }
  0x25   :  { %161 = vperm.xlu0 %1279, %v153_v37  }
  0x27   :  { %843 = vmatpush1.bf16.msra.mxu0 %v1339_v39  ;;  %929 = vmatpush1.bf16.msra.mxu1 %v1340_v40  ;;  %v1433_v39 = vld [vmem:[%s1988_s0 + $0x30c] ss:$16 sps:$4 sm:$0xff]   ;;  %v1428_v40 = vld [vmem:[%s1988_s0 + $0x300] ss:$16 sps:$4 sm:$0xff]  }
  0x28   :  { %844 = vmatprep.subr.bf16.mxu0 %v1341_v41  ;;  %930 = vmatprep.subr.bf16.mxu1 %v1343_v42  ;;  %v1431_v41 = vld [vmem:[%s1988_s0 + $0x308] ss:$16 sps:$4 sm:$0xff]   ;;  %v1436_v42 = vld [vmem:[%s1988_s0 + $0x324] ss:$16 sps:$4 sm:$0xff]  }
  0x2b   :  { %845 = vmatpush1.bf16.msra.mxu0 %v1345_v43  ;;  %931 = vmatpush1.bf16.msra.mxu1 %v1346_v44  ;;  %v1439_v43 = vld [vmem:[%s1988_s0 + $0x32c] ss:$16 sps:$4 sm:$0xff]   ;;  %v1434_v44 = vld [vmem:[%s1988_s0 + $0x320] ss:$16 sps:$4 sm:$0xff]  }
  0x2c   :  { %846 = vmatprep.subr.bf16.mxu0 %v1347_v45  ;;  %932 = vmatprep.subr.bf16.mxu1 %v1349_v46  ;;  %v1437_v45 = vld [vmem:[%s1988_s0 + $0x328] ss:$16 sps:$4 sm:$0xff]   ;;  %v1442_v46 = vld [vmem:[%s1988_s0 + $0x344] ss:$16 sps:$4 sm:$0xff]  }
  0x2f   :  { %847 = vmatpush1.bf16.msra.mxu0 %v1351_v47  ;;  %933 = vmatpush1.bf16.msra.mxu1 %v1352_v48  ;;  %v1445_v47 = vld [vmem:[%s1988_s0 + $0x34c] ss:$16 sps:$4 sm:$0xff]   ;;  %v1440_v48 = vld [vmem:[%s1988_s0 + $0x340] ss:$16 sps:$4 sm:$0xff]  }
  0x30   :  { %848 = vmatprep.subr.bf16.mxu0 %v1353_v50  ;;  %934 = vmatprep.subr.bf16.mxu1 %v1355_v51  ;;  %v1448_v50 = vld [vmem:[%s1988_s0 + $0x364] ss:$16 sps:$4 sm:$0xff]   ;;  %v1451_v51 = vld [vmem:[%s1988_s0 + $0x36c] ss:$16 sps:$4 sm:$0xff]  }
  0x33   :  { %849 = vmatpush1.bf16.msra.mxu0 %v1357_v52  ;;  %935 = vmatpush1.bf16.msra.mxu1 %v1358_v53  ;;  %v1446_v52 = vld [vmem:[%s1988_s0 + $0x360] ss:$16 sps:$4 sm:$0xff]   ;;  %v1449_v53 = vld [vmem:[%s1988_s0 + $0x368] ss:$16 sps:$4 sm:$0xff]  }
  0x34   :  { %850 = vmatprep.subr.bf16.mxu0 %v1359_v54  ;;  %936 = vmatprep.subr.bf16.mxu1 %v1361_v55  ;;  %v1454_v54 = vld [vmem:[%s1988_s0 + $0x384] ss:$16 sps:$4 sm:$0xff]   ;;  %v1457_v55 = vld [vmem:[%s1988_s0 + $0x38c] ss:$16 sps:$4 sm:$0xff]  }
  0x37   :  { %851 = vmatpush1.bf16.msra.mxu0 %v1363_v56  ;;  %937 = vmatpush1.bf16.msra.mxu1 %v1364_v57  ;;  %v1452_v56 = vld [vmem:[%s1988_s0 + $0x380] ss:$16 sps:$4 sm:$0xff]   ;;  %v1455_v57 = vld [vmem:[%s1988_s0 + $0x388] ss:$16 sps:$4 sm:$0xff]  }
  0x38   :  { %852 = vmatprep.subr.bf16.mxu0 %v1365_v58  ;;  %938 = vmatprep.subr.bf16.mxu1 %v1367_v59  ;;  %v1460_v58 = vld [vmem:[%s1988_s0 + $0x3a4] ss:$16 sps:$4 sm:$0xff]   ;;  %v1463_v59 = vld [vmem:[%s1988_s0 + $0x3ac] ss:$16 sps:$4 sm:$0xff]  }
  0x3b   :  { %853 = vmatpush1.bf16.msra.mxu0 %v1369_v60  ;;  %939 = vmatpush1.bf16.msra.mxu1 %v1370_v61  ;;  %v1458_v60 = vld [vmem:[%s1988_s0 + $0x3a0] ss:$16 sps:$4 sm:$0xff]   ;;  %v1461_v61 = vld [vmem:[%s1988_s0 + $0x3a8] ss:$16 sps:$4 sm:$0xff]  }
  0x3c   :  { %854 = vmatprep.subr.bf16.mxu0 %v1371_v62  ;;  %940 = vmatprep.subr.bf16.mxu1 %v1373_v63  ;;  %v1466_v62 = vld [vmem:[%s1988_s0 + $0x3c4] ss:$16 sps:$4 sm:$0xff]   ;;  %v1469_v63 = vld [vmem:[%s1988_s0 + $0x3cc] ss:$16 sps:$4 sm:$0xff]  }
  0x3f   :  { %855 = vmatpush1.bf16.msra.mxu0 %v1375_v0  ;;  %941 = vmatpush1.bf16.msra.mxu1 %v1376_v1  ;;  %v1464_v0 = vld [vmem:[%s1988_s0 + $0x3c0] ss:$16 sps:$4 sm:$0xff]   ;;  %v1467_v1 = vld [vmem:[%s1988_s0 + $0x3c8] ss:$16 sps:$4 sm:$0xff]  }
  0x40   :  { %867 = vmatprep.subr.bf16.mxu0 %v1382_v2  ;;  %953 = vmatprep.subr.bf16.mxu1 %v1385_v3  ;;  %v1472_v2 = vld [vmem:[%s1988_s0 + $0x3e4] ss:$16 sps:$4 sm:$0xff]   ;;  %v1475_v3 = vld [vmem:[%s1988_s0 + $0x3ec] ss:$16 sps:$4 sm:$0xff]  }
  0x42   :  { %857 = vmatmul.mubr.bf16.vlgmr.msra.gmra.mrb[0].mxu0 %v1377_v4  ;;  %943 = vmatmul.mubr.bf16.vlgmr.msra.gmra.mrb[0].mxu1 %v1377_v4  ;;  %v1470_v4 = vld [vmem:[%s1988_s0 + $0x3e0] ss:$16 sps:$4 sm:$0xff]  }
  0x43   :  { %868 = vmatpush1.bf16.msra.mxu0 %v1380_v5  ;;  %954 = vmatpush1.bf16.msra.mxu1 %v1383_v6  ;;  %v1473_v5 = vld [vmem:[%s1988_s0 + $0x3e8] ss:$16 sps:$4 sm:$0xff]  }
  0x44   :  { %869 = vmatprep.subr.bf16.mxu0 %v1388_v7  ;;  %955 = vmatprep.subr.bf16.mxu1 %v1391_v8  ;;  %v1476_v6 = vld [vmem:[%s1989_s1 + $0x8] ss:$16 sps:$4 sm:$0xff]  }
  0x45   :  { %899 = vmatprep.mubr.bf16.mxu0 %v1478_v29  ;;  %985 = vmatprep.mubr.bf16.mxu1 %v1478_v29 }
  0x47   :  { %870 = vmatpush1.bf16.msra.mxu0 %v1386_v9  ;;  %956 = vmatpush1.bf16.msra.mxu1 %v1389_v10 }
  0x48   :  { %871 = vmatprep.subr.bf16.mxu0 %v1394_v11  ;;  %957 = vmatprep.subr.bf16.mxu1 %v1397_v12 }
  0x4b   :  { %872 = vmatpush1.bf16.msra.mxu0 %v1392_v13  ;;  %958 = vmatpush1.bf16.msra.mxu1 %v1395_v14 }
  0x4c   :  { %873 = vmatprep.subr.bf16.mxu0 %v1400_v15  ;;  %959 = vmatprep.subr.bf16.mxu1 %v1403_v16 }
  0x4f   :  { %874 = vmatpush1.bf16.msra.mxu0 %v1398_v17  ;;  %960 = vmatpush1.bf16.msra.mxu1 %v1401_v18 }
  0x50   :  { %875 = vmatprep.subr.bf16.mxu0 %v1406_v19  ;;  %961 = vmatprep.subr.bf16.mxu1 %v1409_v20 }
  0x53   :  { %876 = vmatpush1.bf16.msra.mxu0 %v1404_v21  ;;  %962 = vmatpush1.bf16.msra.mxu1 %v1407_v22 }
  0x54   :  { %877 = vmatprep.subr.bf16.mxu0 %v1412_v23  ;;  %963 = vmatprep.subr.bf16.mxu1 %v1415_v24 }
  0x57   :  { %878 = vmatpush1.bf16.msra.mxu0 %v1410_v25  ;;  %964 = vmatpush1.bf16.msra.mxu1 %v1413_v26 }
  0x58   :  { %879 = vmatprep.subr.bf16.mxu0 %v1418_v27  ;;  %965 = vmatprep.subr.bf16.mxu1 %v1421_v28 }
  0x5b   :  { %880 = vmatpush1.bf16.msra.mxu0 %v1416_v30  ;;  %966 = vmatpush1.bf16.msra.mxu1 %v1419_v31 }
  0x5c   :  { %881 = vmatprep.subr.bf16.mxu0 %v1424_v33  ;;  %967 = vmatprep.subr.bf16.mxu1 %v1427_v34 }
  0x5f   :  { %882 = vmatpush1.bf16.msra.mxu0 %v1422_v35  ;;  %968 = vmatpush1.bf16.msra.mxu1 %v1425_v36 }
  0x60   :  { %883 = vmatprep.subr.bf16.mxu0 %v1430_v38  ;;  %969 = vmatprep.subr.bf16.mxu1 %v1433_v39 }
  0x63   :  { %884 = vmatpush1.bf16.msra.mxu0 %v1428_v40  ;;  %970 = vmatpush1.bf16.msra.mxu1 %v1431_v41 }
  0x64   :  { %885 = vmatprep.subr.bf16.mxu0 %v1436_v42  ;;  %971 = vmatprep.subr.bf16.mxu1 %v1439_v43 }
  0x67   :  { %886 = vmatpush1.bf16.msra.mxu0 %v1434_v44  ;;  %972 = vmatpush1.bf16.msra.mxu1 %v1437_v45 }
  0x68   :  { %887 = vmatprep.subr.bf16.mxu0 %v1442_v46  ;;  %973 = vmatprep.subr.bf16.mxu1 %v1445_v47 }
  0x6b   :  { %888 = vmatpush1.bf16.msra.mxu0 %v1440_v48  ;;  %974 = vmatpush1.bf16.msra.mxu1 %v1443_v49 }
  0x6c   :  { %889 = vmatprep.subr.bf16.mxu0 %v1448_v50  ;;  %975 = vmatprep.subr.bf16.mxu1 %v1451_v51 }
  0x6f   :  { %890 = vmatpush1.bf16.msra.mxu0 %v1446_v52  ;;  %976 = vmatpush1.bf16.msra.mxu1 %v1449_v53 }
  0x70   :  { %891 = vmatprep.subr.bf16.mxu0 %v1454_v54  ;;  %977 = vmatprep.subr.bf16.mxu1 %v1457_v55 }
  0x73   :  { %892 = vmatpush1.bf16.msra.mxu0 %v1452_v56  ;;  %978 = vmatpush1.bf16.msra.mxu1 %v1455_v57 }
  0x74   :  { %893 = vmatprep.subr.bf16.mxu0 %v1460_v58  ;;  %979 = vmatprep.subr.bf16.mxu1 %v1463_v59  ;;  %v1032_v59 = vld [vmem:[%s1991_s3] sm:$0xff] }
  0x77   :  { %894 = vmatpush1.bf16.msra.mxu0 %v1458_v60  ;;  %980 = vmatpush1.bf16.msra.mxu1 %v1461_v61 }
  0x78   :  { %895 = vmatprep.subr.bf16.mxu0 %v1466_v62  ;;  %981 = vmatprep.subr.bf16.mxu1 %v1469_v63  ;;  %v1033_v62 = vld [vmem:[%s1991_s3 + $0x8] sm:$0xff] }
  0x7b   :  { %896 = vmatpush1.bf16.msra.mxu0 %v1464_v0  ;;  %982 = vmatpush1.bf16.msra.mxu1 %v1467_v1 }
  0x7c   :  { %897 = vmatprep.subr.bf16.mxu0 %v1472_v2  ;;  %983 = vmatprep.subr.bf16.mxu1 %v1475_v3  ;;  %v1040_v2 = vld [vmem:[%s1992_s4] sm:$0xff] }
  0x7f   :  { %898 = vmatpush1.bf16.msra.mxu0 %v1470_v4  ;;  %984 = vmatpush1.bf16.msra.mxu1 %v1473_v5  ;;  %v1041_v5 = vld [vmem:[%s1992_s4 + $0x8] sm:$0xff] }
  0x82   :  { %900 = vmatmul.mubr.bf16.vlgmr.msra.gmra.mrb[0].mxu0 %v1476_v6  ;;  %986 = vmatmul.mubr.bf16.vlgmr.msra.gmra.mrb[0].mxu1 %v1476_v6 }
  0xa0   :  { %v157_v7 = vpop.permute.xlu0 %156 }
  0xa4   :  { %v162_v8 = vpop.permute.xlu0 %161 }
 0x155   :  { %v901_v9 = vpop.f32.mrb[0].mxu0  ;;  %v987_v10 = vpop.f32.mrb[0].mxu1 }
 0x156   :  { %v1916_v11 = vadd.f32 %v901_v9, %v157_v7  ;;  %v1918_v12 = vadd.f32 %v987_v10, %v157_v7  ;;  %v903_v13 = vpop.f32.mrb[1].mxu0  ;;  %v989_v14 = vpop.f32.mrb[1].mxu1 }
 0x157   :  { %v1920_v15 = vadd.f32 %v903_v13, %v157_v7  ;;  %v905_v16 = vpop.f32.mrb[2].mxu0  ;;  %v991_v17 = vpop.f32.mrb[2].mxu1  ;;  %v1924_v19 = vadd.f32 %v989_v14, %v157_v7 }
 0x158   :  { %v1006_v18 = vmul.f32 %v1916_v11, %v1916_v11  ;;  %v1926_v20 = vadd.f32 %v905_v16, %v162_v8  ;;  %v907_v21 = vpop.f32.mrb[3].mxu0  ;;  %v993_v22 = vpop.f32.mrb[3].mxu1  ;;  %v1008_v26 = vmul.f32 %v1918_v12, %v1918_v12  ;;  %v1938_v28 = vadd.f32 %v991_v17, %v162_v8 }
 0x159   :  { %v1007_v23 = vmul.f32 %v1920_v15, %v1920_v15  ;;  %v1930_v24 = vadd.f32 %v907_v21, %v162_v8  ;;  %v996_v25 = vadd.f32 %v1920_v15, %v1916_v11  ;;  %v1009_v33 = vmul.f32 %v1924_v19, %v1924_v19 }
 0x15a   :  { %v1010_v27 = vmul.f32 %v1926_v20, %v1926_v20  ;;  %v1012_v38 = vmul.f32 %v1938_v28, %v1938_v28  ;;  %v1951_v39 = vadd.f32 %v993_v22, %v162_v8 }
 0x15b   :  { %v1001_v29 = vadd.f32 %v1930_v24, %v1926_v20  ;;  %v1011_v30 = vmul.f32 %v1930_v24, %v1930_v24  ;;  %v997_v31 = vadd.f32 %v1918_v12, %v996_v25  ;;  %v1014_v32 = vadd.f32 %v1007_v23, %v1006_v18 }
 0x15c   :  { %v1013_v43 = vmul.f32 %v1951_v39, %v1951_v39 }
 0x15d   :  { %v998_v34 = vadd.f32 %v1924_v19, %v997_v31  ;;  %v1015_v35 = vadd.f32 %v1014_v32, %v1008_v26  ;;  %v1002_v36 = vadd.f32 %v1938_v28, %v1001_v29  ;;  %v1019_v37 = vadd.f32 %v1011_v30, %v1010_v27 }
 0x15f   :  { %999 = vadd.xlane.f32.xlu1 %v998_v34  ;;  %v1016_v40 = vadd.f32 %v1015_v35, %v1009_v33  ;;  %v1003_v41 = vadd.f32 %v1951_v39, %v1002_v36  ;;  %v1020_v42 = vadd.f32 %v1019_v37, %v1012_v38 }
 0x161   :  { %1017 = vadd.xlane.f32.xlu0 %v1016_v40  ;;  %v1021_v44 = vadd.f32 %v1020_v42, %v1013_v43 }
 0x163   :  { %1004 = vadd.xlane.f32.xlu1 %v1003_v41 }
 0x167   :  { %1022 = vadd.xlane.f32.xlu1 %v1021_v44 }
 0x1ec   :  { %v1000_v45 = vpop.xlane.xlu1 %999 }
 0x1ed   :  { %v1024_v46 = vmul.f32 0.001953125, %v1000_v45 }
 0x1ee   :  { %v1018_v47 = vpop.xlane.xlu0 %1017 }
 0x1ef   :  { %v1028_v48 = vmul.f32 %v1024_v46, %v1024_v46  ;;  %v1026_v49 = vmul.f32 0.001953125, %v1018_v47 }
 0x1f0   :  { %v1005_v50 = vpop.xlane.xlu1 %1004 }
 0x1f1   :  { %v1030_v51 = vsub.f32 %v1026_v49, %v1028_v48  ;;  %v1025_v52 = vmul.f32 0.001953125, %v1005_v50 }
 0x1f3   :  { %v1034_v53 = vadd.f32 1e-05, %v1030_v51  ;;  %v1029_v55 = vmul.f32 %v1025_v52, %v1025_v52 }
 0x1f4   :  { %v1023_v54 = vpop.xlane.xlu1 %1022 }
 0x1f5   :  { %1479 = vrsqrt.f32 %v1034_v53  ;;  %v1027_v56 = vmul.f32 0.001953125, %v1023_v54 }
 0x1f7   :  { %v1031_v57 = vsub.f32 %v1027_v56, %v1029_v55 }
 0x1f9   :  { %v1035_v58 = vadd.f32 1e-05, %v1031_v57 }
 0x1fb   :  { %1481 = vrsqrt.f32 %v1035_v58 }
 0x1ff   :  { %v1480_v60 = vpop.eup %1479 }
 0x200   :  { %v1038_v61 = vmul.f32 %v1480_v60, %v1032_v59 }
 0x202   :  { %1048 = vperm.xlu1 %1280, %v1038_v61   ;;  %v1042_v1 = vmul.f32 %v1038_v61, %v1024_v46 }
 0x204   :  { %v1044_v3 = vsub.f32 %v1040_v2, %v1042_v1 }
 0x205   :  { %v1482_v63 = vpop.eup %1481 }
 0x206   :  { %v1039_v0 = vmul.f32 %v1482_v63, %v1033_v62 }
 0x208   :  { %1053 = vperm.xlu1 %1280, %v1039_v0   ;;  %v1043_v4 = vmul.f32 %v1039_v0, %v1025_v52 }
 0x20a   :  { %v1045_v6 = vsub.f32 %v1041_v5, %v1043_v4 }
 0x20c   :  { %1066 = vperm.xlu1 %1280, %v1044_v3  }
 0x210   :  { %1071 = vperm.xlu1 %1280, %v1045_v6  }
 0x281   :  { %v1049_v7 = vpop.permute.xlu1 %1048 }
 0x282   :  { %v1056_v9 = vmul.f32 %v1916_v11, %v1049_v7  ;;  %v1057_v10 = vmul.f32 %v1920_v15, %v1049_v7  ;;  %v1058_v13 = vmul.f32 %v1918_v12, %v1049_v7  ;;  %v1059_v14 = vmul.f32 %v1924_v19, %v1049_v7 }
 0x287   :  { %v1054_v8 = vpop.permute.xlu1 %1053 }
 0x288   :  { %v1060_v23 = vmul.f32 %v1926_v20, %v1054_v8  ;;  %v1061_v25 = vmul.f32 %v1930_v24, %v1054_v8  ;;  %v1062_v11 = vmul.f32 %v1938_v28, %v1054_v8  ;;  %v1063_v15 = vmul.f32 %v1951_v39, %v1054_v8 }
 0x28b   :  { %v1067_v16 = vpop.permute.xlu1 %1066 }
 0x28c   :  { %v1074_v17 = vadd.f32 %v1067_v16, %v1056_v9  ;;  %v1075_v18 = vadd.f32 %v1067_v16, %v1057_v10  ;;  %v1076_v21 = vadd.f32 %v1067_v16, %v1058_v13  ;;  %v1077_v22 = vadd.f32 %v1067_v16, %v1059_v14 }
 0x28e   :  { %v1082_v26 = vmax.f32 %v1074_v17, 0.0  ;;  %v1083_v27 = vmax.f32 %v1075_v18, 0.0  ;;  %v1084_v29 = vmax.f32 %v1076_v21, 0.0  ;;  %v1085_v30 = vmax.f32 %v1077_v22, 0.0 }
 0x28f   :  { %v1072_v12 = vpop.permute.xlu1 %1071 }
 0x290   :  { %v1258_v31 = vpack.c.bf16 %v1083_v27, %v1082_v26  ;;  %v1259_v19 = vpack.c.bf16 %v1085_v30, %v1084_v29  ;;  %v1078_v32 = vadd.f32 %v1072_v12, %v1060_v23  ;;  %v1079_v33 = vadd.f32 %v1072_v12, %v1061_v25 }
 0x291   :  { %v1080_v34 = vadd.f32 %v1072_v12, %v1062_v11  ;;  %v1081_v35 = vadd.f32 %v1072_v12, %v1063_v15 }
 0x292   :  { %1114 = vst [vmem:[%s1993_s5] sm:$0xff] %v1258_v31  ;;  %1115 = vst [vmem:[%s1993_s5 + $0x8] sm:$0xff] %v1259_v19  ;;  %v1086_v20 = vmax.f32 %v1078_v32, 0.0  ;;  %v1087_v24 = vmax.f32 %v1079_v33, 0.0 }
 0x293   :  { %v1088_v28 = vmax.f32 %v1080_v34, 0.0  ;;  %v1089_v36 = vmax.f32 %v1081_v35, 0.0 }
 0x294   :  { %v1260_v37 = vpack.c.bf16 %v1087_v24, %v1086_v20 }
 0x295   :  { %v1261_v38 = vpack.c.bf16 %v1089_v36, %v1088_v28 }
 0x296   :  { %1116 = vst [vmem:[%s1993_s5 + $0x10] sm:$0xff] %v1260_v37 }
 0x297   :  { %1117 = vst [vmem:[%s1993_s5 + $0x18] sm:$0xff] %v1261_v38 }

// kernel: generator_forward.7
= control target key start
LH: loop header
LB: loop body
LE: loop exit
PB: predicated region body
PF: predicated region fallthrough
CT: control target
= control target key end

     0   :  { %v2222_v60 = vmov 0   ;;  %s3109_s0 = inlined_call_operand.vmem [shape: bf16[256,2048], index: 0, kind: input, shape index: {}]   ;;  %s3110_s1 = inlined_call_operand.vmem [shape: bf16[8,256], index: 1, kind: input, shape index: {}]   ;;  %s3111_s2 = inlined_call_operand.vmem [shape: f32[8,1], index: 2, kind: input, shape index: {}]   ;;  %s3112_s3 = inlined_call_operand.vmem [shape: f32[8,2048], index: 3, kind: output, shape index: {}]  }
   0x1   :  { %v15_v0 = vld [vmem:[%s3109_s0] sm:$0xff]  ;;  %v16_v2 = vld [vmem:[%s3109_s0 + $0x8] sm:$0xff]  ;;  %2187 = vset.pattern.permute.xlu0 %v2222_v60 }
   0x2   :  { %v23_v1 = vld [vmem:[%s3109_s0 + $0x40] sm:$0xff]  ;;  %v24_v4 = vld [vmem:[%s3109_s0 + $0x48] sm:$0xff] }
   0x3   :  { %v1931_v3 = vcombine.high %v15_v0, %v23_v1  ;;  %v1930_v5 = vcombine.low %v15_v0, %v23_v1  ;;  %v31_v6 = vld [vmem:[%s3109_s0 + $0x80] sm:$0xff]  ;;  %v1933_v8 = vcombine.high %v16_v2, %v24_v4  ;;  %v1932_v9 = vcombine.low %v16_v2, %v24_v4  ;;  %v32_v11 = vld [vmem:[%s3109_s0 + $0x88] sm:$0xff] }
   0x4   :  { %v39_v7 = vld [vmem:[%s3109_s0 + $0xc0] sm:$0xff]  ;;  %v40_v12 = vld [vmem:[%s3109_s0 + $0xc8] sm:$0xff] }
   0x5   :  { %v1947_v10 = vcombine.high %v31_v6, %v39_v7  ;;  %v47_v13 = vld [vmem:[%s3109_s0 + $0x100] sm:$0xff]  ;;  %1564 = vmatprep.subr.bf16.mxu0 %v1931_v3  ;;  %v1949_v14 = vcombine.high %v32_v11, %v40_v12  ;;  %v48_v16 = vld [vmem:[%s3109_s0 + $0x108] sm:$0xff]  ;;  %1605 = vmatprep.subr.bf16.mxu1 %v1933_v8  ;;  %v1946_v18 = vcombine.low %v31_v6, %v39_v7 }
   0x6   :  { %v55_v15 = vld [vmem:[%s3109_s0 + $0x140] sm:$0xff]  ;;  %v56_v17 = vld [vmem:[%s3109_s0 + $0x148] sm:$0xff]  ;;  %1565 = vmatpush1.bf16.msra.mxu0 %v1930_v5  ;;  %1606 = vmatpush1.bf16.msra.mxu1 %v1932_v9  ;;  %v1948_v19 = vcombine.low %v32_v11, %v40_v12 }
   0x7   :  { %1566 = vmatprep.subr.bf16.mxu0 %v1947_v10  ;;  %v1963_v20 = vcombine.high %v47_v13, %v55_v15  ;;  %1607 = vmatprep.subr.bf16.mxu1 %v1949_v14  ;;  %v1965_v21 = vcombine.high %v48_v16, %v56_v17  ;;  %v63_v22 = vld [vmem:[%s3109_s0 + $0x180] sm:$0xff]  ;;  %v64_v24 = vld [vmem:[%s3109_s0 + $0x188] sm:$0xff]  ;;  %v1962_v26 = vcombine.low %v47_v13, %v55_v15 }
   0x8   :  { %v71_v23 = vld [vmem:[%s3109_s0 + $0x1c0] sm:$0xff]  ;;  %v72_v25 = vld [vmem:[%s3109_s0 + $0x1c8] sm:$0xff]  ;;  %v1964_v27 = vcombine.low %v48_v16, %v56_v17 }
   0x9   :  { %v1979_v28 = vcombine.high %v63_v22, %v71_v23  ;;  %v1981_v29 = vcombine.high %v64_v24, %v72_v25  ;;  %v79_v30 = vld [vmem:[%s3109_s0 + $0x200] sm:$0xff]  ;;  %v80_v32 = vld [vmem:[%s3109_s0 + $0x208] sm:$0xff]  ;;  %v1978_v34 = vcombine.low %v63_v22, %v71_v23  ;;  %v1980_v35 = vcombine.low %v64_v24, %v72_v25 }
   0xa   :  { %1567 = vmatpush1.bf16.msra.mxu0 %v1946_v18  ;;  %1608 = vmatpush1.bf16.msra.mxu1 %v1948_v19  ;;  %v87_v31 = vld [vmem:[%s3109_s0 + $0x240] sm:$0xff]  ;;  %v88_v33 = vld [vmem:[%s3109_s0 + $0x248] sm:$0xff] }
   0xb   :  { %1568 = vmatprep.subr.bf16.mxu0 %v1963_v20  ;;  %1609 = vmatprep.subr.bf16.mxu1 %v1965_v21  ;;  %v1995_v36 = vcombine.high %v79_v30, %v87_v31  ;;  %v1997_v37 = vcombine.high %v80_v32, %v88_v33  ;;  %v95_v38 = vld [vmem:[%s3109_s0 + $0x280] sm:$0xff]  ;;  %v96_v40 = vld [vmem:[%s3109_s0 + $0x288] sm:$0xff]  ;;  %v1994_v42 = vcombine.low %v79_v30, %v87_v31 }
   0xc   :  { %v103_v39 = vld [vmem:[%s3109_s0 + $0x2c0] sm:$0xff]  ;;  %v104_v41 = vld [vmem:[%s3109_s0 + $0x2c8] sm:$0xff]  ;;  %v1996_v43 = vcombine.low %v80_v32, %v88_v33 }
   0xd   :  { %v2011_v44 = vcombine.high %v95_v38, %v103_v39  ;;  %v2013_v45 = vcombine.high %v96_v40, %v104_v41  ;;  %v111_v46 = vld [vmem:[%s3109_s0 + $0x300] sm:$0xff]  ;;  %v112_v48 = vld [vmem:[%s3109_s0 + $0x308] sm:$0xff]  ;;  %v2010_v50 = vcombine.low %v95_v38, %v103_v39  ;;  %v2012_v51 = vcombine.low %v96_v40, %v104_v41 }
   0xe   :  { %1569 = vmatpush1.bf16.msra.mxu0 %v1962_v26  ;;  %1610 = vmatpush1.bf16.msra.mxu1 %v1964_v27  ;;  %v119_v47 = vld [vmem:[%s3109_s0 + $0x340] sm:$0xff]  ;;  %v120_v49 = vld [vmem:[%s3109_s0 + $0x348] sm:$0xff] }
   0xf   :  { %1570 = vmatprep.subr.bf16.mxu0 %v1979_v28  ;;  %1611 = vmatprep.subr.bf16.mxu1 %v1981_v29  ;;  %v2027_v52 = vcombine.high %v111_v46, %v119_v47  ;;  %v2330_v53 = vld [vmem:[%s3110_s1] sm:$0xff]  ;;  %v2029_v54 = vcombine.high %v112_v48, %v120_v49  ;;  %v128_v58 = vld [vmem:[%s3109_s0 + $0x388] sm:$0xff]  ;;  %v2026_v61 = vcombine.low %v111_v46, %v119_v47 }
  0x10   :  { %v127_v55 = vld [vmem:[%s3109_s0 + $0x380] sm:$0xff]  ;;  %v2340_v57 = vcombine.high %v2330_v53, %v2330_v53  ;;  %v136_v59 = vld [vmem:[%s3109_s0 + $0x3c8] sm:$0xff]  ;;  %v2028_v62 = vcombine.low %v112_v48, %v120_v49 }
  0x11   :  { %v135_v56 = vld [vmem:[%s3109_s0 + $0x3c0] sm:$0xff]  ;;  %v2045_v0 = vcombine.high %v128_v58, %v136_v59  ;;  %v144_v3 = vld [vmem:[%s3109_s0 + $0x408] sm:$0xff]  ;;  %v2044_v6 = vcombine.low %v128_v58, %v136_v59 }
  0x12   :  { %1571 = vmatpush1.bf16.msra.mxu0 %v1978_v34  ;;  %1612 = vmatpush1.bf16.msra.mxu1 %v1980_v35  ;;  %v2043_v63 = vcombine.high %v127_v55, %v135_v56  ;;  %v143_v1 = vld [vmem:[%s3109_s0 + $0x400] sm:$0xff]  ;;  %v152_v4 = vld [vmem:[%s3109_s0 + $0x448] sm:$0xff]  ;;  %v2042_v5 = vcombine.low %v127_v55, %v135_v56 }
  0x13   :  { %1572 = vmatprep.subr.bf16.mxu0 %v1995_v36  ;;  %1613 = vmatprep.subr.bf16.mxu1 %v1997_v37  ;;  %v151_v2 = vld [vmem:[%s3109_s0 + $0x440] sm:$0xff]  ;;  %v2061_v8 = vcombine.high %v144_v3, %v152_v4  ;;  %v160_v11 = vld [vmem:[%s3109_s0 + $0x488] sm:$0xff]  ;;  %v2060_v14 = vcombine.low %v144_v3, %v152_v4  ;;  %v17_v4 = vld [vmem:[%s3109_s0 + $0x10] sm:$0xff] }
  0x14   :  { %1596 = vmatprep.mubr.bf16.mxu0 %v2340_v57  ;;  %1637 = vmatprep.mubr.bf16.mxu1 %v2340_v57  ;;  %v2059_v7 = vcombine.high %v143_v1, %v151_v2  ;;  %v159_v9 = vld [vmem:[%s3109_s0 + $0x480] sm:$0xff]  ;;  %v168_v12 = vld [vmem:[%s3109_s0 + $0x4c8] sm:$0xff]  ;;  %v2058_v13 = vcombine.low %v143_v1, %v151_v2 }
  0x15   :  { %v167_v10 = vld [vmem:[%s3109_s0 + $0x4c0] sm:$0xff]  ;;  %v2077_v16 = vcombine.high %v160_v11, %v168_v12  ;;  %v176_v19 = vld [vmem:[%s3109_s0 + $0x508] sm:$0xff]  ;;  %v2076_v22 = vcombine.low %v160_v11, %v168_v12  ;;  %v33_v12 = vld [vmem:[%s3109_s0 + $0x90] sm:$0xff] }
  0x16   :  { %1573 = vmatpush1.bf16.msra.mxu0 %v1994_v42  ;;  %1614 = vmatpush1.bf16.msra.mxu1 %v1996_v43  ;;  %v2075_v15 = vcombine.high %v159_v9, %v167_v10  ;;  %v175_v17 = vld [vmem:[%s3109_s0 + $0x500] sm:$0xff]  ;;  %v184_v20 = vld [vmem:[%s3109_s0 + $0x548] sm:$0xff]  ;;  %v2074_v21 = vcombine.low %v159_v9, %v167_v10 }
  0x17   :  { %1574 = vmatprep.subr.bf16.mxu0 %v2011_v44  ;;  %1615 = vmatprep.subr.bf16.mxu1 %v2013_v45  ;;  %v183_v18 = vld [vmem:[%s3109_s0 + $0x540] sm:$0xff]  ;;  %v2093_v24 = vcombine.high %v176_v19, %v184_v20  ;;  %v192_v27 = vld [vmem:[%s3109_s0 + $0x588] sm:$0xff]  ;;  %v2092_v30 = vcombine.low %v176_v19, %v184_v20 }
  0x18   :  { %v2091_v23 = vcombine.high %v175_v17, %v183_v18  ;;  %v191_v25 = vld [vmem:[%s3109_s0 + $0x580] sm:$0xff]  ;;  %v200_v28 = vld [vmem:[%s3109_s0 + $0x5c8] sm:$0xff]  ;;  %v2090_v29 = vcombine.low %v175_v17, %v183_v18 }
  0x19   :  { %v199_v26 = vld [vmem:[%s3109_s0 + $0x5c0] sm:$0xff]  ;;  %v2109_v32 = vcombine.high %v192_v27, %v200_v28  ;;  %v208_v35 = vld [vmem:[%s3109_s0 + $0x608] sm:$0xff]  ;;  %v2108_v38 = vcombine.low %v192_v27, %v200_v28  ;;  %v65_v28 = vld [vmem:[%s3109_s0 + $0x190] sm:$0xff] }
  0x1a   :  { %1575 = vmatpush1.bf16.msra.mxu0 %v2010_v50  ;;  %1616 = vmatpush1.bf16.msra.mxu1 %v2012_v51  ;;  %v2107_v31 = vcombine.high %v191_v25, %v199_v26  ;;  %v207_v33 = vld [vmem:[%s3109_s0 + $0x600] sm:$0xff]  ;;  %v216_v36 = vld [vmem:[%s3109_s0 + $0x648] sm:$0xff]  ;;  %v2106_v37 = vcombine.low %v191_v25, %v199_v26 }
  0x1b   :  { %1576 = vmatprep.subr.bf16.mxu0 %v2027_v52  ;;  %1617 = vmatprep.subr.bf16.mxu1 %v2029_v54  ;;  %v215_v34 = vld [vmem:[%s3109_s0 + $0x640] sm:$0xff]  ;;  %v2125_v40 = vcombine.high %v208_v35, %v216_v36  ;;  %v224_v43 = vld [vmem:[%s3109_s0 + $0x688] sm:$0xff]  ;;  %v2124_v46 = vcombine.low %v208_v35, %v216_v36  ;;  %v81_v36 = vld [vmem:[%s3109_s0 + $0x210] sm:$0xff] }
  0x1c   :  { %v2123_v39 = vcombine.high %v207_v33, %v215_v34  ;;  %v223_v41 = vld [vmem:[%s3109_s0 + $0x680] sm:$0xff]  ;;  %v232_v44 = vld [vmem:[%s3109_s0 + $0x6c8] sm:$0xff]  ;;  %v2122_v45 = vcombine.low %v207_v33, %v215_v34 }
  0x1d   :  { %v231_v42 = vld [vmem:[%s3109_s0 + $0x6c0] sm:$0xff]  ;;  %v2141_v48 = vcombine.high %v224_v43, %v232_v44  ;;  %v240_v51 = vld [vmem:[%s3109_s0 + $0x708] sm:$0xff]  ;;  %v2140_v56 = vcombine.low %v224_v43, %v232_v44  ;;  %v97_v44 = vld [vmem:[%s3109_s0 + $0x290] sm:$0xff] }
  0x1e   :  { %1577 = vmatpush1.bf16.msra.mxu0 %v2026_v61  ;;  %1618 = vmatpush1.bf16.msra.mxu1 %v2028_v62  ;;  %v2139_v47 = vcombine.high %v223_v41, %v231_v42  ;;  %v239_v49 = vld [vmem:[%s3109_s0 + $0x700] sm:$0xff]  ;;  %v248_v52 = vld [vmem:[%s3109_s0 + $0x748] sm:$0xff]  ;;  %v2138_v55 = vcombine.low %v223_v41, %v231_v42 }
  0x1f   :  { %1578 = vmatprep.subr.bf16.mxu0 %v2043_v63  ;;  %1619 = vmatprep.subr.bf16.mxu1 %v2045_v0  ;;  %v247_v50 = vld [vmem:[%s3109_s0 + $0x740] sm:$0xff]  ;;  %v2157_v59 = vcombine.high %v240_v51, %v248_v52  ;;  %v256_v62 = vld [vmem:[%s3109_s0 + $0x788] sm:$0xff]  ;;  %v2156_v1 = vcombine.low %v240_v51, %v248_v52  ;;  %v113_v52 = vld [vmem:[%s3109_s0 + $0x310] sm:$0xff] }
  0x20   :  { %v271_v54 = vld [vmem:[%s3111_s2] sm:$0xff]  ;;  %v2155_v58 = vcombine.high %v239_v49, %v247_v50  ;;  %v264_v63 = vld [vmem:[%s3109_s0 + $0x7c8] sm:$0xff]  ;;  %v2154_v0 = vcombine.low %v239_v49, %v247_v50 }
  0x21   :  { %274 = vperm.xlu0 %2187, %v271_v54   ;;  %v255_v60 = vld [vmem:[%s3109_s0 + $0x780] sm:$0xff]  ;;  %v2173_v3 = vcombine.high %v256_v62, %v264_v63  ;;  %v2172_v9 = vcombine.low %v256_v62, %v264_v63  ;;  %v121_v54 = vld [vmem:[%s3109_s0 + $0x350] sm:$0xff] }
  0x22   :  { %1579 = vmatpush1.bf16.msra.mxu0 %v2042_v5  ;;  %1620 = vmatpush1.bf16.msra.mxu1 %v2044_v6  ;;  %v263_v61 = vld [vmem:[%s3109_s0 + $0x7c0] sm:$0xff]  ;;  %v25_v5 = vld [vmem:[%s3109_s0 + $0x50] sm:$0xff]  ;;  %v18_v6 = vld [vmem:[%s3109_s0 + $0x18] sm:$0xff] }
  0x23   :  { %1580 = vmatprep.subr.bf16.mxu0 %v2059_v7  ;;  %1621 = vmatprep.subr.bf16.mxu1 %v2061_v8  ;;  %v2171_v2 = vcombine.high %v255_v60, %v263_v61  ;;  %v26_v7 = vld [vmem:[%s3109_s0 + $0x58] sm:$0xff]  ;;  %v2170_v8 = vcombine.low %v255_v60, %v263_v61  ;;  %v1935_v10 = vcombine.high %v17_v4, %v25_v5  ;;  %v129_v62 = vld [vmem:[%s3109_s0 + $0x390] sm:$0xff] }
  0x24   :  { %v1937_v11 = vcombine.high %v18_v6, %v26_v7  ;;  %v1934_v17 = vcombine.low %v17_v4, %v25_v5  ;;  %v1936_v18 = vcombine.low %v18_v6, %v26_v7  ;;  %v2031_v60 = vcombine.high %v113_v52, %v121_v54  ;;  %v137_v63 = vld [vmem:[%s3109_s0 + $0x3d0] sm:$0xff] }
  0x25   :  { %v2047_v4 = vcombine.high %v129_v62, %v137_v63  ;;  %v145_v6 = vld [vmem:[%s3109_s0 + $0x410] sm:$0xff] }
  0x26   :  { %1581 = vmatpush1.bf16.msra.mxu0 %v2058_v13  ;;  %1622 = vmatpush1.bf16.msra.mxu1 %v2060_v14  ;;  %v41_v13 = vld [vmem:[%s3109_s0 + $0xd0] sm:$0xff]  ;;  %v2469_v14 = vcombine.low %v2330_v53, %v2330_v53 }
  0x27   :  { %1582 = vmatprep.subr.bf16.mxu0 %v2075_v15  ;;  %1623 = vmatprep.subr.bf16.mxu1 %v2077_v16  ;;  %v34_v15 = vld [vmem:[%s3109_s0 + $0x98] sm:$0xff]  ;;  %v1951_v19 = vcombine.high %v33_v12, %v41_v13  ;;  %v49_v53 = vld [vmem:[%s3109_s0 + $0x110] sm:$0xff] }
  0x28   :  { %v42_v16 = vld [vmem:[%s3109_s0 + $0xd8] sm:$0xff]  ;;  %v153_v7 = vld [vmem:[%s3109_s0 + $0x450] sm:$0xff] }
  0x29   :  { %v1953_v20 = vcombine.high %v34_v15, %v42_v16  ;;  %v1952_v25 = vcombine.low %v34_v15, %v42_v16  ;;  %v161_v15 = vld [vmem:[%s3109_s0 + $0x490] sm:$0xff] }
  0x2a   :  { %1583 = vmatpush1.bf16.msra.mxu0 %v2074_v21  ;;  %1624 = vmatpush1.bf16.msra.mxu1 %v2076_v22  ;;  %v57_v21 = vld [vmem:[%s3109_s0 + $0x150] sm:$0xff]  ;;  %v50_v22 = vld [vmem:[%s3109_s0 + $0x118] sm:$0xff] }
  0x2b   :  { %1584 = vmatprep.subr.bf16.mxu0 %v2091_v23  ;;  %1625 = vmatprep.subr.bf16.mxu1 %v2093_v24  ;;  %v58_v23 = vld [vmem:[%s3109_s0 + $0x158] sm:$0xff]  ;;  %v1950_v24 = vcombine.low %v33_v12, %v41_v13  ;;  %v1967_v26 = vcombine.high %v49_v53, %v57_v21  ;;  %v2063_v12 = vcombine.high %v145_v6, %v153_v7  ;;  %v169_v16 = vld [vmem:[%s3109_s0 + $0x4d0] sm:$0xff] }
  0x2c   :  { %v1969_v27 = vcombine.high %v50_v22, %v58_v23  ;;  %v1968_v33 = vcombine.low %v50_v22, %v58_v23  ;;  %v177_v22 = vld [vmem:[%s3109_s0 + $0x510] sm:$0xff] }
  0x2d   :  { %v185_v23 = vld [vmem:[%s3109_s0 + $0x550] sm:$0xff] }
  0x2e   :  { %1585 = vmatpush1.bf16.msra.mxu0 %v2090_v29  ;;  %1626 = vmatpush1.bf16.msra.mxu1 %v2092_v30  ;;  %v73_v29 = vld [vmem:[%s3109_s0 + $0x1d0] sm:$0xff]  ;;  %v66_v30 = vld [vmem:[%s3109_s0 + $0x198] sm:$0xff] }
  0x2f   :  { %1586 = vmatprep.subr.bf16.mxu0 %v2107_v31  ;;  %1627 = vmatprep.subr.bf16.mxu1 %v2109_v32  ;;  %v74_v31 = vld [vmem:[%s3109_s0 + $0x1d8] sm:$0xff]  ;;  %v1966_v32 = vcombine.low %v49_v53, %v57_v21  ;;  %v1983_v34 = vcombine.high %v65_v28, %v73_v29  ;;  %v2079_v53 = vcombine.high %v161_v15, %v169_v16 }
  0x30   :  { %v1985_v35 = vcombine.high %v66_v30, %v74_v31  ;;  %v1984_v41 = vcombine.low %v66_v30, %v74_v31  ;;  %v193_v30 = vld [vmem:[%s3109_s0 + $0x590] sm:$0xff] }
  0x31   :  { %v201_v31 = vld [vmem:[%s3109_s0 + $0x5d0] sm:$0xff] }
  0x32   :  { %1587 = vmatpush1.bf16.msra.mxu0 %v2106_v37  ;;  %1628 = vmatpush1.bf16.msra.mxu1 %v2108_v38  ;;  %v89_v37 = vld [vmem:[%s3109_s0 + $0x250] sm:$0xff]  ;;  %v82_v38 = vld [vmem:[%s3109_s0 + $0x218] sm:$0xff] }
  0x33   :  { %1588 = vmatprep.subr.bf16.mxu0 %v2123_v39  ;;  %1629 = vmatprep.subr.bf16.mxu1 %v2125_v40  ;;  %v90_v39 = vld [vmem:[%s3109_s0 + $0x258] sm:$0xff]  ;;  %v1982_v40 = vcombine.low %v65_v28, %v73_v29  ;;  %v1999_v42 = vcombine.high %v81_v36, %v89_v37  ;;  %v2095_v28 = vcombine.high %v177_v22, %v185_v23 }
  0x34   :  { %v2001_v43 = vcombine.high %v82_v38, %v90_v39  ;;  %v2000_v49 = vcombine.low %v82_v38, %v90_v39  ;;  %v209_v38 = vld [vmem:[%s3109_s0 + $0x610] sm:$0xff] }
  0x35   :  { %v217_v39 = vld [vmem:[%s3109_s0 + $0x650] sm:$0xff] }
  0x36   :  { %1589 = vmatpush1.bf16.msra.mxu0 %v2122_v45  ;;  %1630 = vmatpush1.bf16.msra.mxu1 %v2124_v46  ;;  %v105_v45 = vld [vmem:[%s3109_s0 + $0x2d0] sm:$0xff]  ;;  %v98_v46 = vld [vmem:[%s3109_s0 + $0x298] sm:$0xff] }
  0x37   :  { %1590 = vmatprep.subr.bf16.mxu0 %v2139_v47  ;;  %1631 = vmatprep.subr.bf16.mxu1 %v2141_v48  ;;  %v106_v47 = vld [vmem:[%s3109_s0 + $0x2d8] sm:$0xff]  ;;  %v1998_v48 = vcombine.low %v81_v36, %v89_v37  ;;  %v2015_v50 = vcombine.high %v97_v44, %v105_v45  ;;  %v2111_v36 = vcombine.high %v193_v30, %v201_v31 }
  0x38   :  { %v2017_v51 = vcombine.high %v98_v46, %v106_v47 }
  0x3a   :  { %1591 = vmatpush1.bf16.msra.mxu0 %v2138_v55  ;;  %1632 = vmatpush1.bf16.msra.mxu1 %v2140_v56  ;;  %v114_v55 = vld [vmem:[%s3109_s0 + $0x318] sm:$0xff] }
  0x3b   :  { %1592 = vmatprep.subr.bf16.mxu0 %v2155_v58  ;;  %1633 = vmatprep.subr.bf16.mxu1 %v2157_v59  ;;  %v122_v56 = vld [vmem:[%s3109_s0 + $0x358] sm:$0xff]  ;;  %v2014_v58 = vcombine.low %v97_v44, %v105_v45  ;;  %v2016_v59 = vcombine.low %v98_v46, %v106_v47  ;;  %v2127_v44 = vcombine.high %v209_v38, %v217_v39  ;;  %v225_v46 = vld [vmem:[%s3109_s0 + $0x690] sm:$0xff] }
  0x3c   :  { %v2033_v61 = vcombine.high %v114_v55, %v122_v56  ;;  %v233_v47 = vld [vmem:[%s3109_s0 + $0x6d0] sm:$0xff] }
  0x3e   :  { %1593 = vmatpush1.bf16.msra.mxu0 %v2154_v0  ;;  %1634 = vmatpush1.bf16.msra.mxu1 %v2156_v1  ;;  %v130_v0 = vld [vmem:[%s3109_s0 + $0x398] sm:$0xff] }
  0x3f   :  { %1594 = vmatprep.subr.bf16.mxu0 %v2171_v2  ;;  %1635 = vmatprep.subr.bf16.mxu1 %v2173_v3  ;;  %v138_v1 = vld [vmem:[%s3109_s0 + $0x3d8] sm:$0xff]  ;;  %v2030_v2 = vcombine.low %v113_v52, %v121_v54  ;;  %v2032_v3 = vcombine.low %v114_v55, %v122_v56  ;;  %v2143_v52 = vcombine.high %v225_v46, %v233_v47  ;;  %v241_v55 = vld [vmem:[%s3109_s0 + $0x710] sm:$0xff] }
  0x40   :  { %v2049_v5 = vcombine.high %v130_v0, %v138_v1  ;;  %v249_v56 = vld [vmem:[%s3109_s0 + $0x750] sm:$0xff] }
  0x42   :  { %1595 = vmatpush1.bf16.msra.mxu0 %v2170_v8  ;;  %1636 = vmatpush1.bf16.msra.mxu1 %v2172_v9  ;;  %v146_v8 = vld [vmem:[%s3109_s0 + $0x418] sm:$0xff] }
  0x43   :  { %1646 = vmatprep.subr.bf16.mxu0 %v1935_v10  ;;  %1687 = vmatprep.subr.bf16.mxu1 %v1937_v11  ;;  %v154_v9 = vld [vmem:[%s3109_s0 + $0x458] sm:$0xff]  ;;  %v2046_v10 = vcombine.low %v129_v62, %v137_v63  ;;  %v2048_v11 = vcombine.low %v130_v0, %v138_v1  ;;  %v2159_v62 = vcombine.high %v241_v55, %v249_v56  ;;  %v257_v0 = vld [vmem:[%s3109_s0 + $0x790] sm:$0xff] }
  0x44   :  { %v2065_v13 = vcombine.high %v146_v8, %v154_v9  ;;  %v265_v1 = vld [vmem:[%s3109_s0 + $0x7d0] sm:$0xff] }
  0x45   :  { %1597 = vmatmul.mubr.bf16.vlgmr.msra.gmra.mrb[0].mxu0 %v2469_v14  ;;  %1638 = vmatmul.mubr.bf16.vlgmr.msra.gmra.mrb[0].mxu1 %v2469_v14 }
  0x46   :  { %1647 = vmatpush1.bf16.msra.mxu0 %v1934_v17  ;;  %1688 = vmatpush1.bf16.msra.mxu1 %v1936_v18  ;;  %v162_v17 = vld [vmem:[%s3109_s0 + $0x498] sm:$0xff] }
  0x47   :  { %1648 = vmatprep.subr.bf16.mxu0 %v1951_v19  ;;  %1689 = vmatprep.subr.bf16.mxu1 %v1953_v20  ;;  %v170_v18 = vld [vmem:[%s3109_s0 + $0x4d8] sm:$0xff]  ;;  %v2062_v19 = vcombine.low %v145_v6, %v153_v7  ;;  %v2064_v20 = vcombine.low %v146_v8, %v154_v9  ;;  %v2175_v6 = vcombine.high %v257_v0, %v265_v1  ;;  %v19_v8 = vld [vmem:[%s3109_s0 + $0x20] sm:$0xff] }
  0x48   :  { %1678 = vmatprep.mubr.bf16.mxu0 %v2340_v57  ;;  %1719 = vmatprep.mubr.bf16.mxu1 %v2340_v57  ;;  %v2081_v21 = vcombine.high %v162_v17, %v170_v18  ;;  %v27_v9 = vld [vmem:[%s3109_s0 + $0x60] sm:$0xff] }
  0x4a   :  { %1649 = vmatpush1.bf16.msra.mxu0 %v1950_v24  ;;  %1690 = vmatpush1.bf16.msra.mxu1 %v1952_v25  ;;  %v178_v24 = vld [vmem:[%s3109_s0 + $0x518] sm:$0xff] }
  0x4b   :  { %1650 = vmatprep.subr.bf16.mxu0 %v1967_v26  ;;  %1691 = vmatprep.subr.bf16.mxu1 %v1969_v27  ;;  %v186_v25 = vld [vmem:[%s3109_s0 + $0x558] sm:$0xff]  ;;  %v2078_v26 = vcombine.low %v161_v15, %v169_v16  ;;  %v2080_v27 = vcombine.low %v162_v17, %v170_v18  ;;  %v1939_v15 = vcombine.high %v19_v8, %v27_v9  ;;  %v35_v17 = vld [vmem:[%s3109_s0 + $0xa0] sm:$0xff] }
  0x4c   :  { %v2097_v29 = vcombine.high %v178_v24, %v186_v25  ;;  %v43_v18 = vld [vmem:[%s3109_s0 + $0xe0] sm:$0xff] }
  0x4e   :  { %1651 = vmatpush1.bf16.msra.mxu0 %v1966_v32  ;;  %1692 = vmatpush1.bf16.msra.mxu1 %v1968_v33  ;;  %v194_v32 = vld [vmem:[%s3109_s0 + $0x598] sm:$0xff] }
  0x4f   :  { %1652 = vmatprep.subr.bf16.mxu0 %v1983_v34  ;;  %1693 = vmatprep.subr.bf16.mxu1 %v1985_v35  ;;  %v202_v33 = vld [vmem:[%s3109_s0 + $0x5d8] sm:$0xff]  ;;  %v2094_v34 = vcombine.low %v177_v22, %v185_v23  ;;  %v2096_v35 = vcombine.low %v178_v24, %v186_v25  ;;  %v1955_v22 = vcombine.high %v35_v17, %v43_v18  ;;  %v51_v24 = vld [vmem:[%s3109_s0 + $0x120] sm:$0xff] }
  0x50   :  { %v2113_v37 = vcombine.high %v194_v32, %v202_v33  ;;  %v59_v25 = vld [vmem:[%s3109_s0 + $0x160] sm:$0xff] }
  0x52   :  { %1653 = vmatpush1.bf16.msra.mxu0 %v1982_v40  ;;  %1694 = vmatpush1.bf16.msra.mxu1 %v1984_v41  ;;  %v210_v40 = vld [vmem:[%s3109_s0 + $0x618] sm:$0xff] }
  0x53   :  { %1654 = vmatprep.subr.bf16.mxu0 %v1999_v42  ;;  %1695 = vmatprep.subr.bf16.mxu1 %v2001_v43  ;;  %v218_v41 = vld [vmem:[%s3109_s0 + $0x658] sm:$0xff]  ;;  %v2110_v42 = vcombine.low %v193_v30, %v201_v31  ;;  %v2112_v43 = vcombine.low %v194_v32, %v202_v33  ;;  %v1971_v30 = vcombine.high %v51_v24, %v59_v25  ;;  %v67_v32 = vld [vmem:[%s3109_s0 + $0x1a0] sm:$0xff] }
  0x54   :  { %v2129_v45 = vcombine.high %v210_v40, %v218_v41  ;;  %v75_v33 = vld [vmem:[%s3109_s0 + $0x1e0] sm:$0xff] }
  0x56   :  { %1655 = vmatpush1.bf16.msra.mxu0 %v1998_v48  ;;  %1696 = vmatpush1.bf16.msra.mxu1 %v2000_v49  ;;  %v226_v48 = vld [vmem:[%s3109_s0 + $0x698] sm:$0xff] }
  0x57   :  { %1656 = vmatprep.subr.bf16.mxu0 %v2015_v50  ;;  %1697 = vmatprep.subr.bf16.mxu1 %v2017_v51  ;;  %v234_v49 = vld [vmem:[%s3109_s0 + $0x6d8] sm:$0xff]  ;;  %v2126_v50 = vcombine.low %v209_v38, %v217_v39  ;;  %v2128_v51 = vcombine.low %v210_v40, %v218_v41  ;;  %v1987_v38 = vcombine.high %v67_v32, %v75_v33  ;;  %v83_v40 = vld [vmem:[%s3109_s0 + $0x220] sm:$0xff] }
  0x58   :  { %v2145_v54 = vcombine.high %v226_v48, %v234_v49  ;;  %v91_v41 = vld [vmem:[%s3109_s0 + $0x260] sm:$0xff] }
  0x5a   :  { %1657 = vmatpush1.bf16.msra.mxu0 %v2014_v58  ;;  %1698 = vmatpush1.bf16.msra.mxu1 %v2016_v59  ;;  %v242_v58 = vld [vmem:[%s3109_s0 + $0x718] sm:$0xff] }
  0x5b   :  { %1658 = vmatprep.subr.bf16.mxu0 %v2031_v60  ;;  %1699 = vmatprep.subr.bf16.mxu1 %v2033_v61  ;;  %v250_v59 = vld [vmem:[%s3109_s0 + $0x758] sm:$0xff]  ;;  %v2142_v60 = vcombine.low %v225_v46, %v233_v47  ;;  %v2144_v61 = vcombine.low %v226_v48, %v234_v49  ;;  %v2003_v46 = vcombine.high %v83_v40, %v91_v41  ;;  %v99_v48 = vld [vmem:[%s3109_s0 + $0x2a0] sm:$0xff] }
  0x5c   :  { %v2161_v63 = vcombine.high %v242_v58, %v250_v59  ;;  %v107_v49 = vld [vmem:[%s3109_s0 + $0x2e0] sm:$0xff] }
  0x5e   :  { %1659 = vmatpush1.bf16.msra.mxu0 %v2030_v2  ;;  %1700 = vmatpush1.bf16.msra.mxu1 %v2032_v3  ;;  %v258_v2 = vld [vmem:[%s3109_s0 + $0x798] sm:$0xff] }
  0x5f   :  { %1660 = vmatprep.subr.bf16.mxu0 %v2047_v4  ;;  %1701 = vmatprep.subr.bf16.mxu1 %v2049_v5  ;;  %v266_v3 = vld [vmem:[%s3109_s0 + $0x7d8] sm:$0xff]  ;;  %v2158_v4 = vcombine.low %v241_v55, %v249_v56  ;;  %v2160_v5 = vcombine.low %v242_v58, %v250_v59  ;;  %v2019_v55 = vcombine.high %v99_v48, %v107_v49  ;;  %v115_v58 = vld [vmem:[%s3109_s0 + $0x320] sm:$0xff] }
  0x60   :  { %v2177_v7 = vcombine.high %v258_v2, %v266_v3  ;;  %v123_v59 = vld [vmem:[%s3109_s0 + $0x360] sm:$0xff] }
  0x62   :  { %1661 = vmatpush1.bf16.msra.mxu0 %v2046_v10  ;;  %1702 = vmatpush1.bf16.msra.mxu1 %v2048_v11  ;;  %v20_v10 = vld [vmem:[%s3109_s0 + $0x28] sm:$0xff] }
  0x63   :  { %1662 = vmatprep.subr.bf16.mxu0 %v2063_v12  ;;  %1703 = vmatprep.subr.bf16.mxu1 %v2065_v13  ;;  %v28_v11 = vld [vmem:[%s3109_s0 + $0x68] sm:$0xff]  ;;  %v2174_v12 = vcombine.low %v257_v0, %v265_v1  ;;  %v2176_v13 = vcombine.low %v258_v2, %v266_v3  ;;  %v2035_v0 = vcombine.high %v115_v58, %v123_v59  ;;  %v131_v2 = vld [vmem:[%s3109_s0 + $0x3a0] sm:$0xff] }
  0x64   :  { %v1941_v16 = vcombine.high %v20_v10, %v28_v11  ;;  %v139_v3 = vld [vmem:[%s3109_s0 + $0x3e0] sm:$0xff] }
  0x66   :  { %1663 = vmatpush1.bf16.msra.mxu0 %v2062_v19  ;;  %1704 = vmatpush1.bf16.msra.mxu1 %v2064_v20  ;;  %v36_v19 = vld [vmem:[%s3109_s0 + $0xa8] sm:$0xff] }
  0x67   :  { %1664 = vmatprep.subr.bf16.mxu0 %v2079_v53  ;;  %1705 = vmatprep.subr.bf16.mxu1 %v2081_v21  ;;  %v44_v20 = vld [vmem:[%s3109_s0 + $0xe8] sm:$0xff]  ;;  %v1938_v53 = vcombine.low %v19_v8, %v27_v9  ;;  %v1940_v21 = vcombine.low %v20_v10, %v28_v11  ;;  %v2051_v8 = vcombine.high %v131_v2, %v139_v3  ;;  %v147_v10 = vld [vmem:[%s3109_s0 + $0x420] sm:$0xff] }
  0x68   :  { %v1957_v23 = vcombine.high %v36_v19, %v44_v20  ;;  %v155_v11 = vld [vmem:[%s3109_s0 + $0x460] sm:$0xff] }
  0x6a   :  { %1665 = vmatpush1.bf16.msra.mxu0 %v2078_v26  ;;  %1706 = vmatpush1.bf16.msra.mxu1 %v2080_v27  ;;  %v52_v26 = vld [vmem:[%s3109_s0 + $0x128] sm:$0xff] }
  0x6b   :  { %1666 = vmatprep.subr.bf16.mxu0 %v2095_v28  ;;  %1707 = vmatprep.subr.bf16.mxu1 %v2097_v29  ;;  %v60_v27 = vld [vmem:[%s3109_s0 + $0x168] sm:$0xff]  ;;  %v1954_v28 = vcombine.low %v35_v17, %v43_v18  ;;  %v1956_v29 = vcombine.low %v36_v19, %v44_v20  ;;  %v2067_v17 = vcombine.high %v147_v10, %v155_v11  ;;  %v163_v19 = vld [vmem:[%s3109_s0 + $0x4a0] sm:$0xff] }
  0x6c   :  { %v1973_v31 = vcombine.high %v52_v26, %v60_v27  ;;  %v171_v20 = vld [vmem:[%s3109_s0 + $0x4e0] sm:$0xff] }
  0x6e   :  { %1667 = vmatpush1.bf16.msra.mxu0 %v2094_v34  ;;  %1708 = vmatpush1.bf16.msra.mxu1 %v2096_v35  ;;  %v68_v34 = vld [vmem:[%s3109_s0 + $0x1a8] sm:$0xff] }
  0x6f   :  { %1668 = vmatprep.subr.bf16.mxu0 %v2111_v36  ;;  %1709 = vmatprep.subr.bf16.mxu1 %v2113_v37  ;;  %v76_v35 = vld [vmem:[%s3109_s0 + $0x1e8] sm:$0xff]  ;;  %v1970_v36 = vcombine.low %v51_v24, %v59_v25  ;;  %v1972_v37 = vcombine.low %v52_v26, %v60_v27  ;;  %v2083_v24 = vcombine.high %v163_v19, %v171_v20  ;;  %v179_v26 = vld [vmem:[%s3109_s0 + $0x520] sm:$0xff] }
  0x70   :  { %v1989_v39 = vcombine.high %v68_v34, %v76_v35  ;;  %v187_v27 = vld [vmem:[%s3109_s0 + $0x560] sm:$0xff] }
  0x72   :  { %1669 = vmatpush1.bf16.msra.mxu0 %v2110_v42  ;;  %1710 = vmatpush1.bf16.msra.mxu1 %v2112_v43  ;;  %v84_v42 = vld [vmem:[%s3109_s0 + $0x228] sm:$0xff] }
  0x73   :  { %1670 = vmatprep.subr.bf16.mxu0 %v2127_v44  ;;  %1711 = vmatprep.subr.bf16.mxu1 %v2129_v45  ;;  %v92_v43 = vld [vmem:[%s3109_s0 + $0x268] sm:$0xff]  ;;  %v1986_v44 = vcombine.low %v67_v32, %v75_v33  ;;  %v1988_v45 = vcombine.low %v68_v34, %v76_v35  ;;  %v2099_v32 = vcombine.high %v179_v26, %v187_v27  ;;  %v195_v34 = vld [vmem:[%s3109_s0 + $0x5a0] sm:$0xff] }
  0x74   :  { %v2005_v47 = vcombine.high %v84_v42, %v92_v43  ;;  %v203_v35 = vld [vmem:[%s3109_s0 + $0x5e0] sm:$0xff] }
  0x76   :  { %1671 = vmatpush1.bf16.msra.mxu0 %v2126_v50  ;;  %1712 = vmatpush1.bf16.msra.mxu1 %v2128_v51  ;;  %v100_v50 = vld [vmem:[%s3109_s0 + $0x2a8] sm:$0xff] }
  0x77   :  { %1672 = vmatprep.subr.bf16.mxu0 %v2143_v52  ;;  %1713 = vmatprep.subr.bf16.mxu1 %v2145_v54  ;;  %v108_v51 = vld [vmem:[%s3109_s0 + $0x2e8] sm:$0xff]  ;;  %v2002_v52 = vcombine.low %v83_v40, %v91_v41  ;;  %v2004_v54 = vcombine.low %v84_v42, %v92_v43  ;;  %v2115_v40 = vcombine.high %v195_v34, %v203_v35  ;;  %v211_v42 = vld [vmem:[%s3109_s0 + $0x620] sm:$0xff] }
  0x78   :  { %v2021_v56 = vcombine.high %v100_v50, %v108_v51  ;;  %v219_v43 = vld [vmem:[%s3109_s0 + $0x660] sm:$0xff] }
  0x7a   :  { %1673 = vmatpush1.bf16.msra.mxu0 %v2142_v60  ;;  %1714 = vmatpush1.bf16.msra.mxu1 %v2144_v61  ;;  %v116_v60 = vld [vmem:[%s3109_s0 + $0x328] sm:$0xff] }
  0x7b   :  { %1674 = vmatprep.subr.bf16.mxu0 %v2159_v62  ;;  %1715 = vmatprep.subr.bf16.mxu1 %v2161_v63  ;;  %v124_v61 = vld [vmem:[%s3109_s0 + $0x368] sm:$0xff]  ;;  %v2018_v62 = vcombine.low %v99_v48, %v107_v49  ;;  %v2020_v63 = vcombine.low %v100_v50, %v108_v51  ;;  %v2131_v48 = vcombine.high %v211_v42, %v219_v43  ;;  %v227_v50 = vld [vmem:[%s3109_s0 + $0x6a0] sm:$0xff] }
  0x7c   :  { %v2037_v1 = vcombine.high %v116_v60, %v124_v61  ;;  %v235_v51 = vld [vmem:[%s3109_s0 + $0x6e0] sm:$0xff] }
  0x7e   :  { %1675 = vmatpush1.bf16.msra.mxu0 %v2158_v4  ;;  %1716 = vmatpush1.bf16.msra.mxu1 %v2160_v5  ;;  %v132_v4 = vld [vmem:[%s3109_s0 + $0x3a8] sm:$0xff] }
  0x7f   :  { %1676 = vmatprep.subr.bf16.mxu0 %v2175_v6  ;;  %1717 = vmatprep.subr.bf16.mxu1 %v2177_v7  ;;  %v140_v5 = vld [vmem:[%s3109_s0 + $0x3e8] sm:$0xff]  ;;  %v2034_v6 = vcombine.low %v115_v58, %v123_v59  ;;  %v2036_v7 = vcombine.low %v116_v60, %v124_v61  ;;  %v2147_v58 = vcombine.high %v227_v50, %v235_v51  ;;  %v243_v60 = vld [vmem:[%s3109_s0 + $0x720] sm:$0xff] }
  0x80   :  { %v2053_v9 = vcombine.high %v132_v4, %v140_v5  ;;  %v251_v61 = vld [vmem:[%s3109_s0 + $0x760] sm:$0xff] }
  0x82   :  { %1677 = vmatpush1.bf16.msra.mxu0 %v2174_v12  ;;  %1718 = vmatpush1.bf16.msra.mxu1 %v2176_v13  ;;  %v148_v12 = vld [vmem:[%s3109_s0 + $0x428] sm:$0xff] }
  0x83   :  { %1728 = vmatprep.subr.bf16.mxu0 %v1939_v15  ;;  %1769 = vmatprep.subr.bf16.mxu1 %v1941_v16  ;;  %v156_v13 = vld [vmem:[%s3109_s0 + $0x468] sm:$0xff]  ;;  %v2050_v15 = vcombine.low %v131_v2, %v139_v3  ;;  %v2052_v16 = vcombine.low %v132_v4, %v140_v5  ;;  %v2163_v2 = vcombine.high %v243_v60, %v251_v61  ;;  %v259_v4 = vld [vmem:[%s3109_s0 + $0x7a0] sm:$0xff] }
  0x84   :  { %v2069_v18 = vcombine.high %v148_v12, %v156_v13  ;;  %v267_v5 = vld [vmem:[%s3109_s0 + $0x7e0] sm:$0xff] }
  0x85   :  { %1679 = vmatmul.mubr.bf16.vlgmr.msra.gmra.mrb[4].mxu0 %v2469_v14  ;;  %1720 = vmatmul.mubr.bf16.vlgmr.msra.gmra.mrb[4].mxu1 %v2469_v14 }
  0x86   :  { %1729 = vmatpush1.bf16.msra.mxu0 %v1938_v53  ;;  %1770 = vmatpush1.bf16.msra.mxu1 %v1940_v21  ;;  %v164_v53 = vld [vmem:[%s3109_s0 + $0x4a8] sm:$0xff] }
  0x87   :  { %1730 = vmatprep.subr.bf16.mxu0 %v1955_v22  ;;  %1771 = vmatprep.subr.bf16.mxu1 %v1957_v23  ;;  %v172_v21 = vld [vmem:[%s3109_s0 + $0x4e8] sm:$0xff]  ;;  %v2066_v22 = vcombine.low %v147_v10, %v155_v11  ;;  %v2068_v23 = vcombine.low %v148_v12, %v156_v13  ;;  %v2179_v10 = vcombine.high %v259_v4, %v267_v5  ;;  %v21_v12 = vld [vmem:[%s3109_s0 + $0x30] sm:$0xff] }
  0x88   :  { %1760 = vmatprep.mubr.bf16.mxu0 %v2340_v57  ;;  %1801 = vmatprep.mubr.bf16.mxu1 %v2340_v57  ;;  %v2085_v25 = vcombine.high %v164_v53, %v172_v21  ;;  %v29_v13 = vld [vmem:[%s3109_s0 + $0x70] sm:$0xff] }
  0x8a   :  { %1731 = vmatpush1.bf16.msra.mxu0 %v1954_v28  ;;  %1772 = vmatpush1.bf16.msra.mxu1 %v1956_v29  ;;  %v180_v28 = vld [vmem:[%s3109_s0 + $0x528] sm:$0xff] }
  0x8b   :  { %1732 = vmatprep.subr.bf16.mxu0 %v1971_v30  ;;  %1773 = vmatprep.subr.bf16.mxu1 %v1973_v31  ;;  %v188_v29 = vld [vmem:[%s3109_s0 + $0x568] sm:$0xff]  ;;  %v2082_v30 = vcombine.low %v163_v19, %v171_v20  ;;  %v2084_v31 = vcombine.low %v164_v53, %v172_v21  ;;  %v1943_v19 = vcombine.high %v21_v12, %v29_v13  ;;  %v37_v53 = vld [vmem:[%s3109_s0 + $0xb0] sm:$0xff] }
  0x8c   :  { %v2101_v33 = vcombine.high %v180_v28, %v188_v29  ;;  %v45_v21 = vld [vmem:[%s3109_s0 + $0xf0] sm:$0xff] }
  0x8e   :  { %1733 = vmatpush1.bf16.msra.mxu0 %v1970_v36  ;;  %1774 = vmatpush1.bf16.msra.mxu1 %v1972_v37  ;;  %v196_v36 = vld [vmem:[%s3109_s0 + $0x5a8] sm:$0xff] }
  0x8f   :  { %1734 = vmatprep.subr.bf16.mxu0 %v1987_v38  ;;  %1775 = vmatprep.subr.bf16.mxu1 %v1989_v39  ;;  %v204_v37 = vld [vmem:[%s3109_s0 + $0x5e8] sm:$0xff]  ;;  %v2098_v38 = vcombine.low %v179_v26, %v187_v27  ;;  %v2100_v39 = vcombine.low %v180_v28, %v188_v29  ;;  %v1959_v26 = vcombine.high %v37_v53, %v45_v21  ;;  %v53_v28 = vld [vmem:[%s3109_s0 + $0x130] sm:$0xff] }
  0x90   :  { %v2117_v41 = vcombine.high %v196_v36, %v204_v37  ;;  %v61_v29 = vld [vmem:[%s3109_s0 + $0x170] sm:$0xff] }
  0x92   :  { %1735 = vmatpush1.bf16.msra.mxu0 %v1986_v44  ;;  %1776 = vmatpush1.bf16.msra.mxu1 %v1988_v45  ;;  %v212_v44 = vld [vmem:[%s3109_s0 + $0x628] sm:$0xff] }
  0x93   :  { %1736 = vmatprep.subr.bf16.mxu0 %v2003_v46  ;;  %1777 = vmatprep.subr.bf16.mxu1 %v2005_v47  ;;  %v220_v45 = vld [vmem:[%s3109_s0 + $0x668] sm:$0xff]  ;;  %v2114_v46 = vcombine.low %v195_v34, %v203_v35  ;;  %v2116_v47 = vcombine.low %v196_v36, %v204_v37  ;;  %v1975_v34 = vcombine.high %v53_v28, %v61_v29  ;;  %v69_v36 = vld [vmem:[%s3109_s0 + $0x1b0] sm:$0xff] }
  0x94   :  { %v2133_v49 = vcombine.high %v212_v44, %v220_v45  ;;  %v77_v37 = vld [vmem:[%s3109_s0 + $0x1f0] sm:$0xff] }
  0x96   :  { %1737 = vmatpush1.bf16.msra.mxu0 %v2002_v52  ;;  %1778 = vmatpush1.bf16.msra.mxu1 %v2004_v54  ;;  %v228_v52 = vld [vmem:[%s3109_s0 + $0x6a8] sm:$0xff] }
  0x97   :  { %1738 = vmatprep.subr.bf16.mxu0 %v2019_v55  ;;  %1779 = vmatprep.subr.bf16.mxu1 %v2021_v56  ;;  %v236_v54 = vld [vmem:[%s3109_s0 + $0x6e8] sm:$0xff]  ;;  %v2130_v55 = vcombine.low %v211_v42, %v219_v43  ;;  %v2132_v56 = vcombine.low %v212_v44, %v220_v45  ;;  %v1991_v42 = vcombine.high %v69_v36, %v77_v37  ;;  %v85_v44 = vld [vmem:[%s3109_s0 + $0x230] sm:$0xff] }
  0x98   :  { %v2149_v59 = vcombine.high %v228_v52, %v236_v54  ;;  %v93_v45 = vld [vmem:[%s3109_s0 + $0x270] sm:$0xff] }
  0x9a   :  { %1739 = vmatpush1.bf16.msra.mxu0 %v2018_v62  ;;  %1780 = vmatpush1.bf16.msra.mxu1 %v2020_v63  ;;  %v244_v62 = vld [vmem:[%s3109_s0 + $0x728] sm:$0xff] }
  0x9b   :  { %1740 = vmatprep.subr.bf16.mxu0 %v2035_v0  ;;  %1781 = vmatprep.subr.bf16.mxu1 %v2037_v1  ;;  %v252_v63 = vld [vmem:[%s3109_s0 + $0x768] sm:$0xff]  ;;  %v2146_v0 = vcombine.low %v227_v50, %v235_v51  ;;  %v2148_v1 = vcombine.low %v228_v52, %v236_v54  ;;  %v101_v51 = vld [vmem:[%s3109_s0 + $0x2b0] sm:$0xff]  ;;  %v102_v54 = vld [vmem:[%s3109_s0 + $0x2b8] sm:$0xff] }
  0x9c   :  { %v2165_v3 = vcombine.high %v244_v62, %v252_v63  ;;  %v109_v52 = vld [vmem:[%s3109_s0 + $0x2f0] sm:$0xff] }
  0x9e   :  { %1741 = vmatpush1.bf16.msra.mxu0 %v2034_v6  ;;  %1782 = vmatpush1.bf16.msra.mxu1 %v2036_v7  ;;  %v260_v6 = vld [vmem:[%s3109_s0 + $0x7a8] sm:$0xff] }
  0x9f   :  { %1742 = vmatprep.subr.bf16.mxu0 %v2051_v8  ;;  %1783 = vmatprep.subr.bf16.mxu1 %v2053_v9  ;;  %v268_v7 = vld [vmem:[%s3109_s0 + $0x7e8] sm:$0xff]  ;;  %v2162_v8 = vcombine.low %v243_v60, %v251_v61  ;;  %v2164_v9 = vcombine.low %v244_v62, %v252_v63  ;;  %v117_v61 = vld [vmem:[%s3109_s0 + $0x330] sm:$0xff]  ;;  %v118_v63 = vld [vmem:[%s3109_s0 + $0x338] sm:$0xff] }
  0xa0   :  { %v2181_v11 = vcombine.high %v260_v6, %v268_v7  ;;  %v125_v62 = vld [vmem:[%s3109_s0 + $0x370] sm:$0xff] }
  0xa2   :  { %1743 = vmatpush1.bf16.msra.mxu0 %v2050_v15  ;;  %1784 = vmatpush1.bf16.msra.mxu1 %v2052_v16  ;;  %v22_v15 = vld [vmem:[%s3109_s0 + $0x38] sm:$0xff] }
  0xa3   :  { %1744 = vmatprep.subr.bf16.mxu0 %v2067_v17  ;;  %1785 = vmatprep.subr.bf16.mxu1 %v2069_v18  ;;  %v30_v16 = vld [vmem:[%s3109_s0 + $0x78] sm:$0xff]  ;;  %v2178_v17 = vcombine.low %v259_v4, %v267_v5  ;;  %v2180_v18 = vcombine.low %v260_v6, %v268_v7  ;;  %v133_v5 = vld [vmem:[%s3109_s0 + $0x3b0] sm:$0xff] }
  0xa4   :  { %v1945_v20 = vcombine.high %v22_v15, %v30_v16  ;;  %v141_v6 = vld [vmem:[%s3109_s0 + $0x3f0] sm:$0xff]  ;;  %v134_v7 = vld [vmem:[%s3109_s0 + $0x3b8] sm:$0xff] }
  0xa6   :  { %1745 = vmatpush1.bf16.msra.mxu0 %v2066_v22  ;;  %1786 = vmatpush1.bf16.msra.mxu1 %v2068_v23  ;;  %v38_v22 = vld [vmem:[%s3109_s0 + $0xb8] sm:$0xff] }
  0xa7   :  { %1746 = vmatprep.subr.bf16.mxu0 %v2083_v24  ;;  %1787 = vmatprep.subr.bf16.mxu1 %v2085_v25  ;;  %v46_v23 = vld [vmem:[%s3109_s0 + $0xf8] sm:$0xff]  ;;  %v1942_v24 = vcombine.low %v21_v12, %v29_v13  ;;  %v1944_v25 = vcombine.low %v22_v15, %v30_v16  ;;  %v149_v13 = vld [vmem:[%s3109_s0 + $0x430] sm:$0xff] }
  0xa8   :  { %v1961_v27 = vcombine.high %v38_v22, %v46_v23  ;;  %v157_v15 = vld [vmem:[%s3109_s0 + $0x470] sm:$0xff]  ;;  %v150_v16 = vld [vmem:[%s3109_s0 + $0x438] sm:$0xff] }
  0xaa   :  { %1747 = vmatpush1.bf16.msra.mxu0 %v2082_v30  ;;  %1788 = vmatpush1.bf16.msra.mxu1 %v2084_v31  ;;  %v54_v30 = vld [vmem:[%s3109_s0 + $0x138] sm:$0xff] }
  0xab   :  { %1748 = vmatprep.subr.bf16.mxu0 %v2099_v32  ;;  %1789 = vmatprep.subr.bf16.mxu1 %v2101_v33  ;;  %v62_v31 = vld [vmem:[%s3109_s0 + $0x178] sm:$0xff]  ;;  %v1958_v32 = vcombine.low %v37_v53, %v45_v21  ;;  %v1960_v33 = vcombine.low %v38_v22, %v46_v23  ;;  %v165_v21 = vld [vmem:[%s3109_s0 + $0x4b0] sm:$0xff] }
  0xac   :  { %v1977_v35 = vcombine.high %v54_v30, %v62_v31  ;;  %v173_v22 = vld [vmem:[%s3109_s0 + $0x4f0] sm:$0xff]  ;;  %v166_v23 = vld [vmem:[%s3109_s0 + $0x4b8] sm:$0xff] }
  0xae   :  { %1749 = vmatpush1.bf16.msra.mxu0 %v2098_v38  ;;  %1790 = vmatpush1.bf16.msra.mxu1 %v2100_v39  ;;  %v70_v38 = vld [vmem:[%s3109_s0 + $0x1b8] sm:$0xff] }
  0xaf   :  { %1750 = vmatprep.subr.bf16.mxu0 %v2115_v40  ;;  %1791 = vmatprep.subr.bf16.mxu1 %v2117_v41  ;;  %v78_v39 = vld [vmem:[%s3109_s0 + $0x1f8] sm:$0xff]  ;;  %v1974_v40 = vcombine.low %v53_v28, %v61_v29  ;;  %v1976_v41 = vcombine.low %v54_v30, %v62_v31  ;;  %v181_v29 = vld [vmem:[%s3109_s0 + $0x530] sm:$0xff] }
  0xb0   :  { %v1993_v43 = vcombine.high %v70_v38, %v78_v39  ;;  %v189_v30 = vld [vmem:[%s3109_s0 + $0x570] sm:$0xff]  ;;  %v182_v31 = vld [vmem:[%s3109_s0 + $0x538] sm:$0xff] }
  0xb2   :  { %1751 = vmatpush1.bf16.msra.mxu0 %v2114_v46  ;;  %1792 = vmatpush1.bf16.msra.mxu1 %v2116_v47  ;;  %v94_v46 = vld [vmem:[%s3109_s0 + $0x278] sm:$0xff]  ;;  %v1990_v47 = vcombine.low %v69_v36, %v77_v37  ;;  %v197_v37 = vld [vmem:[%s3109_s0 + $0x5b0] sm:$0xff] }
  0xb3   :  { %1752 = vmatprep.subr.bf16.mxu0 %v2131_v48  ;;  %1793 = vmatprep.subr.bf16.mxu1 %v2133_v49  ;;  %v1992_v48 = vcombine.low %v70_v38, %v78_v39  ;;  %v2007_v49 = vcombine.high %v85_v44, %v93_v45  ;;  %v205_v38 = vld [vmem:[%s3109_s0 + $0x5f0] sm:$0xff]  ;;  %v198_v39 = vld [vmem:[%s3109_s0 + $0x5b8] sm:$0xff] }
  0xb6   :  { %1753 = vmatpush1.bf16.msra.mxu0 %v2130_v55  ;;  %1794 = vmatpush1.bf16.msra.mxu1 %v2132_v56  ;;  %v110_v55 = vld [vmem:[%s3109_s0 + $0x2f8] sm:$0xff]  ;;  %v2006_v56 = vcombine.low %v85_v44, %v93_v45  ;;  %v213_v45 = vld [vmem:[%s3109_s0 + $0x630] sm:$0xff] }
  0xb7   :  { %1754 = vmatprep.subr.bf16.mxu0 %v2147_v58  ;;  %1795 = vmatprep.subr.bf16.mxu1 %v2149_v59  ;;  %v2023_v59 = vcombine.high %v101_v51, %v109_v52  ;;  %v2025_v60 = vcombine.high %v102_v54, %v110_v55 }
  0xba   :  { %1755 = vmatpush1.bf16.msra.mxu0 %v2146_v0  ;;  %1796 = vmatpush1.bf16.msra.mxu1 %v2148_v1  ;;  %v126_v0 = vld [vmem:[%s3109_s0 + $0x378] sm:$0xff]  ;;  %v2022_v1 = vcombine.low %v101_v51, %v109_v52  ;;  %v229_v52 = vld [vmem:[%s3109_s0 + $0x6b0] sm:$0xff] }
  0xbb   :  { %1756 = vmatprep.subr.bf16.mxu0 %v2163_v2  ;;  %1797 = vmatprep.subr.bf16.mxu1 %v2165_v3  ;;  %v2024_v2 = vcombine.low %v102_v54, %v110_v55  ;;  %v2039_v3 = vcombine.high %v117_v61, %v125_v62  ;;  %v2041_v4 = vcombine.high %v118_v63, %v126_v0  ;;  %v237_v54 = vld [vmem:[%s3109_s0 + $0x6f0] sm:$0xff]  ;;  %v230_v55 = vld [vmem:[%s3109_s0 + $0x6b8] sm:$0xff] }
  0xbe   :  { %1757 = vmatpush1.bf16.msra.mxu0 %v2162_v8  ;;  %1798 = vmatpush1.bf16.msra.mxu1 %v2164_v9  ;;  %v142_v8 = vld [vmem:[%s3109_s0 + $0x3f8] sm:$0xff]  ;;  %v2038_v9 = vcombine.low %v117_v61, %v125_v62  ;;  %v245_v62 = vld [vmem:[%s3109_s0 + $0x730] sm:$0xff] }
  0xbf   :  { %1758 = vmatprep.subr.bf16.mxu0 %v2179_v10  ;;  %1799 = vmatprep.subr.bf16.mxu1 %v2181_v11  ;;  %v2040_v10 = vcombine.low %v118_v63, %v126_v0  ;;  %v2055_v11 = vcombine.high %v133_v5, %v141_v6  ;;  %v2057_v12 = vcombine.high %v134_v7, %v142_v8  ;;  %v253_v63 = vld [vmem:[%s3109_s0 + $0x770] sm:$0xff]  ;;  %v246_v0 = vld [vmem:[%s3109_s0 + $0x738] sm:$0xff] }
  0xc2   :  { %1759 = vmatpush1.bf16.msra.mxu0 %v2178_v17  ;;  %1800 = vmatpush1.bf16.msra.mxu1 %v2180_v18  ;;  %v158_v17 = vld [vmem:[%s3109_s0 + $0x478] sm:$0xff]  ;;  %v2054_v18 = vcombine.low %v133_v5, %v141_v6  ;;  %v261_v6 = vld [vmem:[%s3109_s0 + $0x7b0] sm:$0xff] }
  0xc3   :  { %1810 = vmatprep.subr.bf16.mxu0 %v1943_v19  ;;  %1851 = vmatprep.subr.bf16.mxu1 %v1945_v20  ;;  %v2056_v19 = vcombine.low %v134_v7, %v142_v8  ;;  %v2071_v20 = vcombine.high %v149_v13, %v157_v15  ;;  %v2073_v53 = vcombine.high %v150_v16, %v158_v17  ;;  %v269_v7 = vld [vmem:[%s3109_s0 + $0x7f0] sm:$0xff]  ;;  %v262_v8 = vld [vmem:[%s3109_s0 + $0x7b8] sm:$0xff] }
  0xc5   :  { %1761 = vmatmul.mubr.bf16.vlgmr.msra.gmra.mrb[8].mxu0 %v2469_v14  ;;  %1802 = vmatmul.mubr.bf16.vlgmr.msra.gmra.mrb[8].mxu1 %v2469_v14 }
  0xc6   :  { %1811 = vmatpush1.bf16.msra.mxu0 %v1942_v24  ;;  %1852 = vmatpush1.bf16.msra.mxu1 %v1944_v25  ;;  %v174_v24 = vld [vmem:[%s3109_s0 + $0x4f8] sm:$0xff]  ;;  %v2070_v25 = vcombine.low %v149_v13, %v157_v15  ;;  %v2182_v15 = vcombine.low %v261_v6, %v269_v7 }
  0xc7   :  { %1812 = vmatprep.subr.bf16.mxu0 %v1959_v26  ;;  %1853 = vmatprep.subr.bf16.mxu1 %v1961_v27  ;;  %v2072_v26 = vcombine.low %v150_v16, %v158_v17  ;;  %v2087_v27 = vcombine.high %v165_v21, %v173_v22  ;;  %v2089_v28 = vcombine.high %v166_v23, %v174_v24  ;;  %v3043_v17 = vpop.permute.xlu0 %274 }
  0xc8   :  { %1842 = vmatprep.mubr.bf16.mxu0 %v2340_v57  ;;  %1883 = vmatprep.mubr.bf16.mxu1 %v2340_v57  ;;  %v86_v57 = vld [vmem:[%s3109_s0 + $0x238] sm:$0xff] }
  0xc9   :  { %v2009_v50 = vcombine.high %v86_v57, %v94_v46  ;;  %v2008_v58 = vcombine.low %v86_v57, %v94_v46  ;;  %v221_v57 = vld [vmem:[%s3109_s0 + $0x670] sm:$0xff]  ;;  %v214_v46 = vld [vmem:[%s3109_s0 + $0x638] sm:$0xff] }
  0xca   :  { %1813 = vmatpush1.bf16.msra.mxu0 %v1958_v32  ;;  %1854 = vmatpush1.bf16.msra.mxu1 %v1960_v33  ;;  %v190_v32 = vld [vmem:[%s3109_s0 + $0x578] sm:$0xff]  ;;  %v2086_v33 = vcombine.low %v165_v21, %v173_v22 }
  0xcb   :  { %1814 = vmatprep.subr.bf16.mxu0 %v1975_v34  ;;  %1855 = vmatprep.subr.bf16.mxu1 %v1977_v35  ;;  %v2088_v34 = vcombine.low %v166_v23, %v174_v24  ;;  %v2103_v35 = vcombine.high %v181_v29, %v189_v30  ;;  %v2105_v36 = vcombine.high %v182_v31, %v190_v32 }
  0xce   :  { %1815 = vmatpush1.bf16.msra.mxu0 %v1974_v40  ;;  %1856 = vmatpush1.bf16.msra.mxu1 %v1976_v41  ;;  %v206_v40 = vld [vmem:[%s3109_s0 + $0x5f8] sm:$0xff]  ;;  %v2102_v41 = vcombine.low %v181_v29, %v189_v30 }
  0xcf   :  { %1816 = vmatprep.subr.bf16.mxu0 %v1991_v42  ;;  %1857 = vmatprep.subr.bf16.mxu1 %v1993_v43  ;;  %v2104_v42 = vcombine.low %v182_v31, %v190_v32  ;;  %v2119_v43 = vcombine.high %v197_v37, %v205_v38  ;;  %v2121_v44 = vcombine.high %v198_v39, %v206_v40 }
  0xd2   :  { %1817 = vmatpush1.bf16.msra.mxu0 %v1990_v47  ;;  %1858 = vmatpush1.bf16.msra.mxu1 %v1992_v48  ;;  %v222_v47 = vld [vmem:[%s3109_s0 + $0x678] sm:$0xff]  ;;  %v2118_v48 = vcombine.low %v197_v37, %v205_v38 }
  0xd3   :  { %1818 = vmatprep.subr.bf16.mxu0 %v2007_v49  ;;  %1859 = vmatprep.subr.bf16.mxu1 %v2009_v50  ;;  %v2120_v49 = vcombine.low %v198_v39, %v206_v40  ;;  %v2135_v50 = vcombine.high %v213_v45, %v221_v57  ;;  %v2137_v51 = vcombine.high %v214_v46, %v222_v47 }
  0xd6   :  { %1819 = vmatpush1.bf16.msra.mxu0 %v2006_v56  ;;  %1860 = vmatpush1.bf16.msra.mxu1 %v2008_v58  ;;  %v238_v56 = vld [vmem:[%s3109_s0 + $0x6f8] sm:$0xff]  ;;  %v2134_v58 = vcombine.low %v213_v45, %v221_v57 }
  0xd7   :  { %1820 = vmatprep.subr.bf16.mxu0 %v2023_v59  ;;  %1861 = vmatprep.subr.bf16.mxu1 %v2025_v60  ;;  %v2136_v59 = vcombine.low %v214_v46, %v222_v47  ;;  %v2151_v60 = vcombine.high %v229_v52, %v237_v54  ;;  %v2153_v61 = vcombine.high %v230_v55, %v238_v56 }
  0xda   :  { %1821 = vmatpush1.bf16.msra.mxu0 %v2022_v1  ;;  %1862 = vmatpush1.bf16.msra.mxu1 %v2024_v2  ;;  %v254_v1 = vld [vmem:[%s3109_s0 + $0x778] sm:$0xff]  ;;  %v2150_v2 = vcombine.low %v229_v52, %v237_v54 }
  0xdb   :  { %1822 = vmatprep.subr.bf16.mxu0 %v2039_v3  ;;  %1863 = vmatprep.subr.bf16.mxu1 %v2041_v4  ;;  %v2152_v3 = vcombine.low %v230_v55, %v238_v56  ;;  %v2167_v4 = vcombine.high %v245_v62, %v253_v63  ;;  %v2169_v5 = vcombine.high %v246_v0, %v254_v1 }
  0xde   :  { %1823 = vmatpush1.bf16.msra.mxu0 %v2038_v9  ;;  %1864 = vmatpush1.bf16.msra.mxu1 %v2040_v10  ;;  %v270_v9 = vld [vmem:[%s3109_s0 + $0x7f8] sm:$0xff]  ;;  %v2166_v10 = vcombine.low %v245_v62, %v253_v63 }
  0xdf   :  { %1824 = vmatprep.subr.bf16.mxu0 %v2055_v11  ;;  %1865 = vmatprep.subr.bf16.mxu1 %v2057_v12  ;;  %v2168_v11 = vcombine.low %v246_v0, %v254_v1  ;;  %v2183_v12 = vcombine.high %v261_v6, %v269_v7  ;;  %v2185_v13 = vcombine.high %v262_v8, %v270_v9 }
  0xe0   :  { %v2184_v16 = vcombine.low %v262_v8, %v270_v9 }
  0xe2   :  { %1825 = vmatpush1.bf16.msra.mxu0 %v2054_v18  ;;  %1866 = vmatpush1.bf16.msra.mxu1 %v2056_v19 }
  0xe3   :  { %1826 = vmatprep.subr.bf16.mxu0 %v2071_v20  ;;  %1867 = vmatprep.subr.bf16.mxu1 %v2073_v53 }
  0xe6   :  { %1827 = vmatpush1.bf16.msra.mxu0 %v2070_v25  ;;  %1868 = vmatpush1.bf16.msra.mxu1 %v2072_v26 }
  0xe7   :  { %1828 = vmatprep.subr.bf16.mxu0 %v2087_v27  ;;  %1869 = vmatprep.subr.bf16.mxu1 %v2089_v28 }
  0xea   :  { %1829 = vmatpush1.bf16.msra.mxu0 %v2086_v33  ;;  %1870 = vmatpush1.bf16.msra.mxu1 %v2088_v34 }
  0xeb   :  { %1830 = vmatprep.subr.bf16.mxu0 %v2103_v35  ;;  %1871 = vmatprep.subr.bf16.mxu1 %v2105_v36 }
  0xee   :  { %1831 = vmatpush1.bf16.msra.mxu0 %v2102_v41  ;;  %1872 = vmatpush1.bf16.msra.mxu1 %v2104_v42 }
  0xef   :  { %1832 = vmatprep.subr.bf16.mxu0 %v2119_v43  ;;  %1873 = vmatprep.subr.bf16.mxu1 %v2121_v44 }
  0xf2   :  { %1833 = vmatpush1.bf16.msra.mxu0 %v2118_v48  ;;  %1874 = vmatpush1.bf16.msra.mxu1 %v2120_v49 }
  0xf3   :  { %1834 = vmatprep.subr.bf16.mxu0 %v2135_v50  ;;  %1875 = vmatprep.subr.bf16.mxu1 %v2137_v51 }
  0xf6   :  { %1835 = vmatpush1.bf16.msra.mxu0 %v2134_v58  ;;  %1876 = vmatpush1.bf16.msra.mxu1 %v2136_v59 }
  0xf7   :  { %1836 = vmatprep.subr.bf16.mxu0 %v2151_v60  ;;  %1877 = vmatprep.subr.bf16.mxu1 %v2153_v61 }
  0xfa   :  { %1837 = vmatpush1.bf16.msra.mxu0 %v2150_v2  ;;  %1878 = vmatpush1.bf16.msra.mxu1 %v2152_v3 }
  0xfb   :  { %1838 = vmatprep.subr.bf16.mxu0 %v2167_v4  ;;  %1879 = vmatprep.subr.bf16.mxu1 %v2169_v5 }
  0xfe   :  { %1839 = vmatpush1.bf16.msra.mxu0 %v2166_v10  ;;  %1880 = vmatpush1.bf16.msra.mxu1 %v2168_v11 }
  0xff   :  { %1840 = vmatprep.subr.bf16.mxu0 %v2183_v12  ;;  %1881 = vmatprep.subr.bf16.mxu1 %v2185_v13 }
 0x102   :  { %1841 = vmatpush1.bf16.msra.mxu0 %v2182_v15  ;;  %1882 = vmatpush1.bf16.msra.mxu1 %v2184_v16 }
 0x105   :  { %1843 = vmatmul.mubr.bf16.vlgmr.msra.gmra.mrb[12].mxu0 %v2469_v14  ;;  %1884 = vmatmul.mubr.bf16.vlgmr.msra.gmra.mrb[12].mxu1 %v2469_v14 }
 0x118   :  { %v1598_v18 = vpop.f32.mrb[0].mxu0  ;;  %v1639_v19 = vpop.f32.mrb[0].mxu1 }
 0x119   :  { %v1599_v20 = vadd.f32 %v1598_v18, %v3043_v17  ;;  %v1600_v53 = vpop.f32.mrb[1].mxu0  ;;  %v1640_v21 = vadd.f32 %v1639_v19, %v3043_v17  ;;  %v1641_v23 = vpop.f32.mrb[1].mxu1 }
 0x11a   :  { %v1601_v22 = vadd.f32 %v1600_v53, %v3043_v17  ;;  %v1602_v24 = vpop.f32.mrb[2].mxu0  ;;  %v1642_v25 = vadd.f32 %v1641_v23, %v3043_v17  ;;  %v1643_v26 = vpop.f32.mrb[2].mxu1 }
 0x11b   :  { %2190 = vtanh.f32 %v1599_v20  ;;  %v1603_v27 = vpop.f32.mrb[3].mxu0  ;;  %v1644_v14 = vpop.f32.mrb[3].mxu1 }
 0x11c   :  { %2192 = vtanh.f32 %v1640_v21 }
 0x11d   :  { %2194 = vtanh.f32 %v1601_v22 }
 0x11e   :  { %2196 = vtanh.f32 %v1642_v25 }
 0x125   :  { %v2191_v28 = vpop.eup %2190 }
 0x126   :  { %v2193_v29 = vpop.eup %2192  ;;  %1908 = vst [vmem:[%s3112_s3] sm:$0xff] %v2191_v28 }
 0x127   :  { %v2195_v30 = vpop.eup %2194  ;;  %1910 = vst [vmem:[%s3112_s3 + $0x10] sm:$0xff] %v2193_v29 }
 0x128   :  { %v2197_v31 = vpop.eup %2196  ;;  %1909 = vst [vmem:[%s3112_s3 + $0x8] sm:$0xff] %v2195_v30 }
 0x129   :  { %1911 = vst [vmem:[%s3112_s3 + $0x18] sm:$0xff] %v2197_v31 }
 0x158   :  { %v1680_v32 = vpop.f32.mrb[4].mxu0  ;;  %v1721_v34 = vpop.f32.mrb[4].mxu1 }
 0x159   :  { %v1681_v33 = vadd.f32 %v1680_v32, %v3043_v17  ;;  %v1682_v35 = vpop.f32.mrb[5].mxu0  ;;  %v1722_v36 = vadd.f32 %v1721_v34, %v3043_v17  ;;  %v1723_v38 = vpop.f32.mrb[5].mxu1 }
 0x15a   :  { %v1683_v37 = vadd.f32 %v1682_v35, %v3043_v17  ;;  %v1684_v39 = vpop.f32.mrb[6].mxu0  ;;  %v1724_v40 = vadd.f32 %v1723_v38, %v3043_v17  ;;  %v1725_v41 = vpop.f32.mrb[6].mxu1 }
 0x15b   :  { %2198 = vtanh.f32 %v1681_v33  ;;  %v1685_v42 = vpop.f32.mrb[7].mxu0  ;;  %v1726_v43 = vpop.f32.mrb[7].mxu1 }
 0x15c   :  { %2200 = vtanh.f32 %v1722_v36 }
 0x15d   :  { %2202 = vtanh.f32 %v1683_v37 }
 0x15e   :  { %2204 = vtanh.f32 %v1724_v40 }
 0x165   :  { %v2199_v44 = vpop.eup %2198 }
 0x166   :  { %v2201_v45 = vpop.eup %2200  ;;  %1912 = vst [vmem:[%s3112_s3 + $0x20] sm:$0xff] %v2199_v44 }
 0x167   :  { %v2203_v57 = vpop.eup %2202  ;;  %1914 = vst [vmem:[%s3112_s3 + $0x30] sm:$0xff] %v2201_v45 }
 0x168   :  { %v2205_v46 = vpop.eup %2204  ;;  %1913 = vst [vmem:[%s3112_s3 + $0x28] sm:$0xff] %v2203_v57 }
 0x169   :  { %1915 = vst [vmem:[%s3112_s3 + $0x38] sm:$0xff] %v2205_v46 }
 0x198   :  { %v1762_v47 = vpop.f32.mrb[8].mxu0  ;;  %v1803_v49 = vpop.f32.mrb[8].mxu1 }
 0x199   :  { %v1763_v48 = vadd.f32 %v1762_v47, %v3043_v17  ;;  %v1764_v50 = vpop.f32.mrb[9].mxu0  ;;  %v1804_v51 = vadd.f32 %v1803_v49, %v3043_v17  ;;  %v1805_v54 = vpop.f32.mrb[9].mxu1 }
 0x19a   :  { %v1765_v52 = vadd.f32 %v1764_v50, %v3043_v17  ;;  %v1766_v55 = vpop.f32.mrb[10].mxu0  ;;  %v1806_v56 = vadd.f32 %v1805_v54, %v3043_v17  ;;  %v1807_v58 = vpop.f32.mrb[10].mxu1 }
 0x19b   :  { %2206 = vtanh.f32 %v1763_v48  ;;  %v1767_v59 = vpop.f32.mrb[11].mxu0  ;;  %v1808_v60 = vpop.f32.mrb[11].mxu1 }
 0x19c   :  { %2208 = vtanh.f32 %v1804_v51 }
 0x19d   :  { %2210 = vtanh.f32 %v1765_v52 }
 0x19e   :  { %2212 = vtanh.f32 %v1806_v56 }
 0x1a5   :  { %v2207_v61 = vpop.eup %2206 }
 0x1a6   :  { %v2209_v62 = vpop.eup %2208  ;;  %1916 = vst [vmem:[%s3112_s3 + $0x40] sm:$0xff] %v2207_v61 }
 0x1a7   :  { %v2211_v63 = vpop.eup %2210  ;;  %1918 = vst [vmem:[%s3112_s3 + $0x50] sm:$0xff] %v2209_v62 }
 0x1a8   :  { %v2213_v0 = vpop.eup %2212  ;;  %1917 = vst [vmem:[%s3112_s3 + $0x48] sm:$0xff] %v2211_v63 }
 0x1a9   :  { %1919 = vst [vmem:[%s3112_s3 + $0x58] sm:$0xff] %v2213_v0 }
 0x1d8   :  { %v1844_v1 = vpop.f32.mrb[12].mxu0  ;;  %v1885_v3 = vpop.f32.mrb[12].mxu1 }
 0x1d9   :  { %v1845_v2 = vadd.f32 %v1844_v1, %v3043_v17  ;;  %v1846_v4 = vpop.f32.mrb[13].mxu0  ;;  %v1886_v5 = vadd.f32 %v1885_v3, %v3043_v17  ;;  %v1887_v7 = vpop.f32.mrb[13].mxu1 }
 0x1da   :  { %v1847_v6 = vadd.f32 %v1846_v4, %v3043_v17  ;;  %v1848_v8 = vpop.f32.mrb[14].mxu0  ;;  %v1888_v9 = vadd.f32 %v1887_v7, %v3043_v17  ;;  %v1889_v10 = vpop.f32.mrb[14].mxu1 }
 0x1db   :  { %2214 = vtanh.f32 %v1845_v2  ;;  %v1849_v11 = vpop.f32.mrb[15].mxu0  ;;  %v1890_v12 = vpop.f32.mrb[15].mxu1 }
 0x1dc   :  { %2216 = vtanh.f32 %v1886_v5 }
 0x1dd   :  { %2218 = vtanh.f32 %v1847_v6 }
 0x1de   :  { %2220 = vtanh.f32 %v1888_v9 }
 0x1e5   :  { %v2215_v13 = vpop.eup %2214 }
 0x1e6   :  { %v2217_v15 = vpop.eup %2216  ;;  %1920 = vst [vmem:[%s3112_s3 + $0x60] sm:$0xff] %v2215_v13 }
 0x1e7   :  { %v2219_v16 = vpop.eup %2218  ;;  %1922 = vst [vmem:[%s3112_s3 + $0x70] sm:$0xff] %v2217_v15 }
 0x1e8   :  { %v2221_v18 = vpop.eup %2220  ;;  %1921 = vst [vmem:[%s3112_s3 + $0x68] sm:$0xff] %v2219_v16 }
 0x1e9   :  { %1923 = vst [vmem:[%s3112_s3 + $0x78] sm:$0xff] %v2221_v18 }

</bundles_post_ra>
